<compile_context>
chip_gen: v6e
topology: v6e:2x2x1
jax: 0.10.0
libtpu: 0.0.40
codegen_flags: <defaults>
</compile_context>

<pallas_src>
import functools

import jax
import jax.numpy as jnp
from jax.experimental import pallas as pl
from jax.experimental.pallas import tpu as pltpu


MM_DTYPE = jnp.bfloat16              # MXU operand dtype (accumulation stays f32)
_ROW_BLOCK_BYTES = 8 * 1024 * 1024   # target per-block working set
_VMEM_LIMIT = 48 * 1024 * 1024       # stays well under v7x's 64 MiB physical VMEM
_LN_EPS = 1e-5


# ----------------------------- kernel helpers -----------------------------

def _layernorm(x, g, b, eps=_LN_EPS):
    mu = jnp.mean(x, axis=-1, keepdims=True)
    var = jnp.mean(jnp.square(x - mu), axis=-1, keepdims=True)
    return (x - mu) * jax.lax.rsqrt(var + eps) * g + b


def _attn_head_contrib(x, bias, lng, lnb, wqkv_h, bqkv_h, wo_h):
    """One attention head over the last sequence axis of a [rb, N, D] block.

    wqkv_h: [D, 3*hd] fused per-head Q|K|V projection (bf16); wo_h: [hd, D].
    Returns the f32 [rb, N, D] contribution of this head to the residual update.
    """
    hd = wo_h.shape[0]
    scale = hd ** -0.5
    h = _layernorm(x, lng, lnb).astype(MM_DTYPE)
    qkv = jnp.einsum('rnd,de->rne', h, wqkv_h,
                     preferred_element_type=jnp.float32) + bqkv_h       # [rb, N, 3hd]
    q = qkv[..., :hd].astype(MM_DTYPE)
    k = qkv[..., hd:2 * hd].astype(MM_DTYPE)
    v = qkv[..., 2 * hd:].astype(MM_DTYPE)
    s = jnp.einsum('rqe,rke->rqk', q, k,
                   preferred_element_type=jnp.float32) * scale          # [rb, N, N]
    s = s + bias[:, None, :]
    s = s - jnp.max(s, axis=-1, keepdims=True)
    p = jnp.exp(s)
    p = p * pl.reciprocal(jnp.sum(p, axis=-1, keepdims=True), approx=True)
    c = jnp.einsum('rqk,rke->rqe', p.astype(MM_DTYPE), v,
                   preferred_element_type=jnp.float32)                  # [rb, N, hd]
    return jnp.einsum('rne,ed->rnd', c.astype(MM_DTYPE), wo_h,
                      preferred_element_type=jnp.float32)               # [rb, N, D]


def _transition(y, lng, lnb, w1, b1, w2, b2):
    """Pre-LN pointwise GELU transition (D -> F -> D) + residual."""
    h = _layernorm(y, lng, lnb).astype(MM_DTYPE)
    u = jnp.einsum('rnd,df->rnf', h, w1, preferred_element_type=jnp.float32) + b1
    u = jax.nn.gelu(u).astype(MM_DTYPE)
    return y + jnp.einsum('rnf,fd->rnd', u, w2,
                          preferred_element_type=jnp.float32) + b2


# ----------------------------- kernels -----------------------------

def attn_kernel(x_ref, bias_ref, lng_ref, lnb_ref, wqkv_ref, bqkv_ref,
                wo_ref, bo_ref, o_ref, acc_ref):
    """Pre-LN MHA + residual; heads accumulate over grid axis 1."""
    h_idx = pl.program_id(1)
    x = x_ref[...]
    contrib = _attn_head_contrib(x, bias_ref[...], lng_ref[...], lnb_ref[...],
                                 wqkv_ref[...], bqkv_ref[...], wo_ref[...])

    @pl.when(h_idx == 0)
    def _():
        acc_ref[...] = x + bo_ref[...] + contrib

    @pl.when(h_idx > 0)
    def _():
        acc_ref[...] = acc_ref[...] + contrib

    @pl.when(h_idx == pl.num_programs(1) - 1)
    def _():
        o_ref[...] = acc_ref[...]


def attn_ff_kernel(x_ref, bias_ref,
                   a_lng_ref, a_lnb_ref, a_wqkv_ref, a_bqkv_ref, a_wo_ref, a_bo_ref,
                   f_lng_ref, f_lnb_ref, w1_ref, b1_ref, w2_ref, b2_ref,
                   o_ref, acc_ref):
    """MHA + residual, fused with the GELU transition on the last head step."""
    h_idx = pl.program_id(1)
    x = x_ref[...]
    contrib = _attn_head_contrib(x, bias_ref[...], a_lng_ref[...], a_lnb_ref[...],
                                 a_wqkv_ref[...], a_bqkv_ref[...], a_wo_ref[...])

    @pl.when(h_idx == 0)
    def _():
        acc_ref[...] = x + a_bo_ref[...] + contrib

    @pl.when(h_idx > 0)
    def _():
        acc_ref[...] = acc_ref[...] + contrib

    @pl.when(h_idx == pl.num_programs(1) - 1)
    def _():
        o_ref[...] = _transition(acc_ref[...], f_lng_ref[...], f_lnb_ref[...],
                                 w1_ref[...], b1_ref[...], w2_ref[...], b2_ref[...])


def attn_ff_head_kernel(x_ref, bias_ref,
                        a_lng_ref, a_lnb_ref, a_wqkv_ref, a_bqkv_ref, a_wo_ref, a_bo_ref,
                        f_lng_ref, f_lnb_ref, w1_ref, b1_ref, w2_ref, b2_ref,
                        ow_ref, ob_ref,
                        logit_ref, acc_ref):
    """Last layer: MHA + transition + D->1 output head; emits lane-dense logits."""
    h_idx = pl.program_id(1)
    x = x_ref[...]
    contrib = _attn_head_contrib(x, bias_ref[...], a_lng_ref[...], a_lnb_ref[...],
                                 a_wqkv_ref[...], a_bqkv_ref[...], a_wo_ref[...])

    @pl.when(h_idx == 0)
    def _():
        acc_ref[...] = x + a_bo_ref[...] + contrib

    @pl.when(h_idx > 0)
    def _():
        acc_ref[...] = acc_ref[...] + contrib

    @pl.when(h_idx == pl.num_programs(1) - 1)
    def _():
        y = _transition(acc_ref[...], f_lng_ref[...], f_lnb_ref[...],
                        w1_ref[...], b1_ref[...], w2_ref[...], b2_ref[...])
        # D -> 1 head as a VPU reduction; output stays lane-dense [rb, N].
        logit_ref[...] = jnp.sum(y * ow_ref[...], axis=-1) + ob_ref[...]


# ----------------------------- pallas wrappers -----------------------------

def _round_up(x, m):
    return ((x + m - 1) // m) * m


def _pick_row_block(R, N, D, H):
    """Rows per block: as many as a VMEM budget allows (multiple of 8), but small
    enough to keep >= 2 parallel grid steps so both v7x TensorCores get work."""
    hd = D // H
    per_row = 4 * (4 * N * D + 2 * N * N + 4 * N * hd + 3 * N * hd)  # rough f32 bytes
    rb = max(8, (_ROW_BLOCK_BYTES // max(per_row, 1)) // 8 * 8)
    if R > 8:
        rb = min(rb, _round_up((R + 1) // 2, 8))
    return int(min(rb, _round_up(R, 8)))


def _axial_pass(x, bias, attn_p, ff_p=None, head_p=None):
    """Pre-LN MHA over the last sequence axis of x (+ residual), optionally fused
    with the GELU transition and the D->1 output head.

    x: [B, S1, S2, D] f32; bias: [B, S1, S2] additive key bias.
    Returns [B, S1, S2, D] latent, or [B, S1, S2] logits if head_p is given.
    """
    B, S1, S2, D = x.shape
    H = attn_p['wqkv_h'].shape[0]
    R = B * S1

    xr = x.reshape(R, S2, D)
    br = bias.reshape(R, S2)

    rb = _pick_row_block(R, S2, D, H)
    R_pad = _round_up(R, rb)
    if R_pad != R:
        xr = jnp.pad(xr, ((0, R_pad - R), (0, 0), (0, 0)))
        br = jnp.pad(br, ((0, R_pad - R), (0, 0)))

    x_spec = pl.BlockSpec((rb, S2, D), lambda i, h: (i, 0, 0))
    b_spec = pl.BlockSpec((rb, S2), lambda i, h: (i, 0))

    def head_spec(arr):
        _, d1, d2 = arr.shape
        return pl.BlockSpec((None, d1, d2), lambda i, h: (h, 0, 0))

    def const_spec(arr):
        nd = arr.ndim
        return pl.BlockSpec(arr.shape, lambda i, h, _nd=nd: (0,) * _nd)

    attn_vals = [attn_p['ln_g'], attn_p['ln_b'],
                 attn_p['wqkv_h'].astype(MM_DTYPE), attn_p['bqkv_h'],
                 attn_p['wo_h'].astype(MM_DTYPE), attn_p['bo']]
    attn_specs = [const_spec(attn_vals[0]), const_spec(attn_vals[1]),
                  head_spec(attn_vals[2]), head_spec(attn_vals[3]),
                  head_spec(attn_vals[4]), const_spec(attn_vals[5])]

    inputs = [xr, br] + attn_vals
    in_specs = [x_spec, b_spec] + attn_specs

    if ff_p is not None:
        ff_vals = [ff_p['ln_g'], ff_p['ln_b'],
                   ff_p['w1'].astype(MM_DTYPE), ff_p['b1'],
                   ff_p['w2'].astype(MM_DTYPE), ff_p['b2']]
        inputs += ff_vals
        in_specs += [const_spec(v) for v in ff_vals]

    scratch = [pltpu.VMEM((rb, S2, D), jnp.float32)]
    cparams = pltpu.CompilerParams(
        dimension_semantics=("parallel", "arbitrary"),
        vmem_limit_bytes=_VMEM_LIMIT)
    grid = (R_pad // rb, H)

    if head_p is None:
        kernel = attn_kernel if ff_p is None else attn_ff_kernel
        out = pl.pallas_call(
            kernel,
            out_shape=jax.ShapeDtypeStruct((R_pad, S2, D), jnp.float32),
            grid=grid,
            in_specs=in_specs,
            out_specs=x_spec,
            scratch_shapes=scratch,
            compiler_params=cparams,
        )(*inputs)
        if R_pad != R:
            out = out[:R]
        return out.reshape(B, S1, S2, D)

    assert ff_p is not None
    inputs += [head_p['w'], head_p['b']]
    in_specs += [const_spec(head_p['w']), const_spec(head_p['b'])]
    logits = pl.pallas_call(
        attn_ff_head_kernel,
        out_shape=jax.ShapeDtypeStruct((R_pad, S2), jnp.float32),
        grid=grid,
        in_specs=in_specs,
        out_specs=pl.BlockSpec((rb, S2), lambda i, h: (i, 0)),
        scratch_shapes=scratch,
        compiler_params=cparams,
    )(*inputs)
    if R_pad != R:
        logits = logits[:R]
    return logits.reshape(B, S1, S2)


# ----------------------------- model (glue) -----------------------------

def init_params(key, cfg):
    D = cfg['model_dim']
    F = cfg['ff_dim']
    V = cfg['seq_vocab_size']
    L = cfg['n_layers']
    H = cfg['num_heads']
    hd = D // H
    std = cfg['initializer_range']
    keys = iter(jax.random.split(key, 1024))

    def nrm(shape, s=std):
        return jax.random.normal(next(keys), shape, jnp.float32) * s

    def attn_block():
        # wqkv_h[h] == [Wq_h | Wk_h | Wv_h] (per-head column slices of a fused
        # QKV projection); wo_h[h] == rows [h*hd:(h+1)*hd] of the output proj.
        return dict(
            ln_g=jnp.ones((1, D), jnp.float32),
            ln_b=jnp.zeros((1, D), jnp.float32),
            wqkv_h=nrm((H, D, 3 * hd)),
            bqkv_h=jnp.zeros((H, 1, 3 * hd), jnp.float32),
            wo_h=nrm((H, hd, D)),
            bo=jnp.zeros((1, D), jnp.float32),
        )

    params = {
        'emb1': nrm((V, D)),
        'emb2': nrm((V, D)),
        'pdb_w': nrm((1, D)),            # nn.Linear(1, D) -> [in, out]
        'pdb_b': jnp.zeros((1, D), jnp.float32),
        'out_w': nrm((D, 1)),            # nn.Linear(D, 1), normal(std=init_range)
        'out_b': jnp.zeros((1, 1), jnp.float32),
        'layers': [],
    }
    for _ in range(L):
        params['layers'].append(dict(
            row=attn_block(),
            col=attn_block(),
            ff=dict(
                ln_g=jnp.ones((1, D), jnp.float32),
                ln_b=jnp.zeros((1, D), jnp.float32),
                w1=nrm((D, F)), b1=jnp.zeros((1, F), jnp.float32),
                w2=nrm((F, D)), b2=jnp.zeros((1, D), jnp.float32),
            )))
    return params


def riboformer_forward(params, src_seq, src_len, pdb_sample, cfg):
    B, N = src_seq.shape

    # make_pair_mask: True == padded pair (torch.bitwise_not semantics)
    encode_mask = jnp.arange(N)[None, :] < src_len[:, None]             # [B, N] bool
    pair_mask = ~(encode_mask[:, None, :] & encode_mask[:, :, None])    # [B, N, N]

    # seq2mat_embed: outer sum of two token embeddings -> [B, N, N, D]
    e1 = params['emb1'][src_seq]
    e2 = params['emb2'][src_seq]
    pair_latent = e1[:, None, :, :] + e2[:, :, None, :]

    # pdf_embedding(pdb_sample)[:, None, None, :]
    pdb_emb = pdb_sample @ params['pdb_w'] + params['pdb_b']            # [B, D]
    x = (pair_latent + pdb_emb[:, None, None, :]).astype(jnp.float32)

    neg = jnp.where(pair_mask, -1e9, 0.0).astype(jnp.float32)           # [B, N, N]
    neg_t = jnp.swapaxes(neg, 1, 2)

    head = {'w': jnp.transpose(params['out_w']),                        # [1, D]
            'b': params['out_b']}                                       # [1, 1]

    n_layers = len(params['layers'])
    logits_t = None
    for li, layer in enumerate(params['layers']):
        last = li == n_layers - 1
        # row attention (attend over the column axis)
        x = _axial_pass(x, neg, layer['row'])
        # column attention + transition (attend over the row axis), in transposed
        # layout; on the last layer the output head is fused and the latent is
        # never written back to HBM.
        xt = jnp.transpose(x, (0, 2, 1, 3))
        if last:
            logits_t = _axial_pass(xt, neg_t, layer['col'], ff_p=layer['ff'],
                                   head_p=head)                          # [B, N, N]
        else:
            xt = _axial_pass(xt, neg_t, layer['col'], ff_p=layer['ff'])
            x = jnp.transpose(xt, (0, 2, 1, 3))

    logits = jnp.swapaxes(logits_t, 1, 2)[..., None]                     # [B, N, N, 1]
    return logits, pair_mask


# ----------------------------- main -----------------------------

if __name__ == "__main__":
    cfg = dict(model_dim=32, n_layers=2, num_heads=2, ff_dim=64,
               seq_vocab_size=5, initializer_range=0.02)

    key = jax.random.PRNGKey(0)
    pkey, skey, dkey = jax.random.split(key, 3)
    params = init_params(pkey, cfg)

    B, N = 2, 8
    src_seq = jax.random.randint(skey, (B, N), 0, cfg['seq_vocab_size'],
                                 dtype=jnp.int32)
    src_len = jnp.array([8, 5], dtype=jnp.int32)
    pdb_sample = jax.random.uniform(dkey, (B, 1), dtype=jnp.float32)

    fwd = jax.jit(lambda p, s, l, d: riboformer_forward(p, s, l, d, cfg))
    logits, pair_mask = fwd(params, src_seq, src_len, pdb_sample)
    jax.block_until_ready((logits, pair_mask))

    assert logits.shape == (B, N, N, 1), logits.shape
    assert pair_mask.shape == (B, N, N) and pair_mask.dtype == jnp.bool_
    assert bool(jnp.all(jnp.isfinite(logits)))
    print("KERNEL_OK")
</pallas_src>

<mosaic_0001>
module attributes {stable_mosaic.version = 11 : i64} {
  func.func @attn_kernel(%arg0: i32, %arg1: i32, %arg2: memref<8x8x32xf32, #tpu.memory_space<vmem>>, %arg3: memref<8x8xf32, #tpu.memory_space<vmem>>, %arg4: memref<1x32xf32, #tpu.memory_space<vmem>>, %arg5: memref<1x32xf32, #tpu.memory_space<vmem>>, %arg6: memref<1x32x48xbf16, #tpu.memory_space<vmem>>, %arg7: memref<1x1x48xf32, #tpu.memory_space<vmem>>, %arg8: memref<1x16x32xbf16, #tpu.memory_space<vmem>>, %arg9: memref<1x32xf32, #tpu.memory_space<vmem>>, %arg10: memref<8x8x32xf32, #tpu.memory_space<vmem>>, %arg11: memref<8x8x32xf32, #tpu.memory_space<vmem>>) attributes {dimension_semantics = [#tpu.dimension_semantics<parallel>, #tpu.dimension_semantics<arbitrary>], iteration_bounds = array<i64: 2, 2>, scalar_prefetch = 0 : i64, scratch_operands = 1 : i64, tpu.core_type = #tpu.core_type<tc>, window_params = [{transform_indices = @transform_0, window_bounds = array<i64: 8, 8, 32>}, {transform_indices = @transform_1, window_bounds = array<i64: 8, 8>}, {pipeline_mode = #tpu.pipeline_mode<synchronous>, transform_indices = @transform_2, window_bounds = array<i64: 1, 32>}, {pipeline_mode = #tpu.pipeline_mode<synchronous>, transform_indices = @transform_3, window_bounds = array<i64: 1, 32>}, {transform_indices = @transform_4, window_bounds = array<i64: 1, 32, 48>}, {transform_indices = @transform_5, window_bounds = array<i64: 1, 1, 48>}, {transform_indices = @transform_6, window_bounds = array<i64: 1, 16, 32>}, {pipeline_mode = #tpu.pipeline_mode<synchronous>, transform_indices = @transform_7, window_bounds = array<i64: 1, 32>}, {transform_indices = @transform_8, window_bounds = array<i64: 8, 8, 32>}]} {
    %c0 = arith.constant 0 : index
    %c0_0 = arith.constant 0 : index
    %c0_1 = arith.constant 0 : index
    %0 = vector.load %arg2[%c0, %c0_0, %c0_1] : memref<8x8x32xf32, #tpu.memory_space<vmem>>, vector<8x8x32xf32>
    %c0_2 = arith.constant 0 : index
    %c0_3 = arith.constant 0 : index
    %1 = vector.load %arg3[%c0_2, %c0_3] : memref<8x8xf32, #tpu.memory_space<vmem>>, vector<8x8xf32>
    %c0_4 = arith.constant 0 : index
    %c0_5 = arith.constant 0 : index
    %2 = vector.load %arg4[%c0_4, %c0_5] : memref<1x32xf32, #tpu.memory_space<vmem>>, vector<1x32xf32>
    %c0_6 = arith.constant 0 : index
    %c0_7 = arith.constant 0 : index
    %3 = vector.load %arg5[%c0_6, %c0_7] : memref<1x32xf32, #tpu.memory_space<vmem>>, vector<1x32xf32>
    %c0_8 = arith.constant 0 : index
    %c0_9 = arith.constant 0 : index
    %c0_10 = arith.constant 0 : index
    %4 = vector.load %arg6[%c0_8, %c0_9, %c0_10] : memref<1x32x48xbf16, #tpu.memory_space<vmem>>, vector<1x32x48xbf16>
    %5 = vector.shape_cast %4 : vector<1x32x48xbf16> to vector<32x48xbf16>
    %c0_11 = arith.constant 0 : index
    %c0_12 = arith.constant 0 : index
    %c0_13 = arith.constant 0 : index
    %6 = vector.load %arg7[%c0_11, %c0_12, %c0_13] : memref<1x1x48xf32, #tpu.memory_space<vmem>>, vector<1x1x48xf32>
    %7 = vector.shape_cast %6 : vector<1x1x48xf32> to vector<1x48xf32>
    %c0_14 = arith.constant 0 : index
    %c0_15 = arith.constant 0 : index
    %c0_16 = arith.constant 0 : index
    %8 = vector.load %arg8[%c0_14, %c0_15, %c0_16] : memref<1x16x32xbf16, #tpu.memory_space<vmem>>, vector<1x16x32xbf16>
    %9 = vector.shape_cast %8 : vector<1x16x32xbf16> to vector<16x32xbf16>
    %cst = arith.constant dense<0.000000e+00> : vector<8x8xf32>
    %10 = vector.multi_reduction <add>, %0, %cst [2] : vector<8x8x32xf32> to vector<8x8xf32>
    %11 = vector.shape_cast %10 : vector<8x8xf32> to vector<8x8x1xf32>
    %cst_17 = arith.constant 3.200000e+01 : f32
    %12 = vector.broadcast %cst_17 : f32 to vector<8x8x1xf32>
    %13 = arith.divf %11, %12 : vector<8x8x1xf32>
    %14 = vector.broadcast %13 : vector<8x8x1xf32> to vector<8x8x32xf32>
    %15 = arith.subf %0, %14 : vector<8x8x32xf32>
    %16 = arith.mulf %15, %15 : vector<8x8x32xf32>
    %cst_18 = arith.constant dense<0.000000e+00> : vector<8x8xf32>
    %17 = vector.multi_reduction <add>, %16, %cst_18 [2] : vector<8x8x32xf32> to vector<8x8xf32>
    %18 = vector.shape_cast %17 : vector<8x8xf32> to vector<8x8x1xf32>
    %cst_19 = arith.constant 3.200000e+01 : f32
    %19 = vector.broadcast %cst_19 : f32 to vector<8x8x1xf32>
    %20 = arith.divf %18, %19 : vector<8x8x1xf32>
    %21 = vector.broadcast %13 : vector<8x8x1xf32> to vector<8x8x32xf32>
    %22 = arith.subf %0, %21 : vector<8x8x32xf32>
    %cst_20 = arith.constant 9.99999974E-6 : f32
    %23 = vector.broadcast %cst_20 : f32 to vector<8x8x1xf32>
    %24 = arith.addf %20, %23 : vector<8x8x1xf32>
    %25 = math.rsqrt %24 : vector<8x8x1xf32>
    %26 = vector.broadcast %25 : vector<8x8x1xf32> to vector<8x8x32xf32>
    %27 = arith.mulf %22, %26 : vector<8x8x32xf32>
    %28 = vector.shape_cast %2 : vector<1x32xf32> to vector<1x1x32xf32>
    %29 = vector.broadcast %28 : vector<1x1x32xf32> to vector<8x8x32xf32>
    %30 = arith.mulf %27, %29 : vector<8x8x32xf32>
    %31 = vector.shape_cast %3 : vector<1x32xf32> to vector<1x1x32xf32>
    %32 = vector.broadcast %31 : vector<1x1x32xf32> to vector<8x8x32xf32>
    %33 = arith.addf %30, %32 : vector<8x8x32xf32>
    %34 = arith.truncf %33 : vector<8x8x32xf32> to vector<8x8x32xbf16>
    "tpu.trace_start"() <{level = 10 : i32, message = "rnd,de->rne"}> : () -> ()
    %cst_21 = arith.constant dense<0.000000e+00> : vector<8x8x48xf32>
    %35 = tpu.matmul %34, %5, %cst_21 {dimension_numbers = #tpu.dot_dimension_numbers<[2], [0], [0, 1], [1], [0, 0, 0, 1, 1, 1], [], []>} : vector<8x8x32xbf16>, vector<32x48xbf16>, vector<8x8x48xf32> -> vector<8x8x48xf32>
    "tpu.trace_stop"() : () -> ()
    %36 = vector.shape_cast %7 : vector<1x48xf32> to vector<1x1x48xf32>
    %37 = vector.broadcast %36 : vector<1x1x48xf32> to vector<8x8x48xf32>
    %38 = arith.addf %35, %37 : vector<8x8x48xf32>
    %39 = vector.extract_strided_slice %38 {offsets = [0, 0, 0], sizes = [8, 8, 16], strides = [1, 1, 1]} : vector<8x8x48xf32> to vector<8x8x16xf32>
    %40 = arith.truncf %39 : vector<8x8x16xf32> to vector<8x8x16xbf16>
    %41 = vector.extract_strided_slice %38 {offsets = [0, 0, 16], sizes = [8, 8, 16], strides = [1, 1, 1]} : vector<8x8x48xf32> to vector<8x8x16xf32>
    %42 = arith.truncf %41 : vector<8x8x16xf32> to vector<8x8x16xbf16>
    %43 = vector.extract_strided_slice %38 {offsets = [0, 0, 32], sizes = [8, 8, 16], strides = [1, 1, 1]} : vector<8x8x48xf32> to vector<8x8x16xf32>
    %44 = arith.truncf %43 : vector<8x8x16xf32> to vector<8x8x16xbf16>
    "tpu.trace_start"() <{level = 10 : i32, message = "rqe,rke->rqk"}> : () -> ()
    %cst_22 = arith.constant dense<0.000000e+00> : vector<8x8x8xf32>
    %45 = tpu.matmul %40, %42, %cst_22 {dimension_numbers = #tpu.dot_dimension_numbers<[2], [2], [1], [1], [0, 0, 0, 1, 1, 1], [0], [0]>} : vector<8x8x16xbf16>, vector<8x8x16xbf16>, vector<8x8x8xf32> -> vector<8x8x8xf32>
    "tpu.trace_stop"() : () -> ()
    %cst_23 = arith.constant 2.500000e-01 : f32
    %46 = vector.broadcast %cst_23 : f32 to vector<8x8x8xf32>
    %47 = arith.mulf %45, %46 : vector<8x8x8xf32>
    %48 = vector.shape_cast %1 : vector<8x8xf32> to vector<8x1x8xf32>
    %49 = vector.broadcast %48 : vector<8x1x8xf32> to vector<8x8x8xf32>
    %50 = arith.addf %47, %49 : vector<8x8x8xf32>
    %cst_24 = arith.constant dense<0xFF800000> : vector<8x8xf32>
    %51 = vector.multi_reduction <maximumf>, %50, %cst_24 [2] : vector<8x8x8xf32> to vector<8x8xf32>
    %52 = vector.shape_cast %51 : vector<8x8xf32> to vector<8x8x1xf32>
    %53 = vector.broadcast %52 : vector<8x8x1xf32> to vector<8x8x8xf32>
    %54 = arith.subf %50, %53 : vector<8x8x8xf32>
    %55 = math.exp %54 : vector<8x8x8xf32>
    %cst_25 = arith.constant dense<0.000000e+00> : vector<8x8xf32>
    %56 = vector.multi_reduction <add>, %55, %cst_25 [2] : vector<8x8x8xf32> to vector<8x8xf32>
    %57 = vector.shape_cast %56 : vector<8x8xf32> to vector<8x8x1xf32>
    %58 = tpu.reciprocal %57 {approx = true} : vector<8x8x1xf32> -> vector<8x8x1xf32>
    %59 = vector.broadcast %58 : vector<8x8x1xf32> to vector<8x8x8xf32>
    %60 = arith.mulf %55, %59 : vector<8x8x8xf32>
    %61 = arith.truncf %60 : vector<8x8x8xf32> to vector<8x8x8xbf16>
    "tpu.trace_start"() <{level = 10 : i32, message = "rqk,rke->rqe"}> : () -> ()
    %cst_26 = arith.constant dense<0.000000e+00> : vector<8x8x16xf32>
    %62 = tpu.matmul %61, %44, %cst_26 {dimension_numbers = #tpu.dot_dimension_numbers<[2], [1], [1], [2], [0, 0, 0, 1, 1, 2], [0], [0]>} : vector<8x8x8xbf16>, vector<8x8x16xbf16>, vector<8x8x16xf32> -> vector<8x8x16xf32>
    "tpu.trace_stop"() : () -> ()
    %63 = arith.truncf %62 : vector<8x8x16xf32> to vector<8x8x16xbf16>
    "tpu.trace_start"() <{level = 10 : i32, message = "rne,ed->rnd"}> : () -> ()
    %cst_27 = arith.constant dense<0.000000e+00> : vector<8x8x32xf32>
    %64 = tpu.matmul %63, %9, %cst_27 {dimension_numbers = #tpu.dot_dimension_numbers<[2], [0], [0, 1], [1], [0, 0, 0, 1, 1, 1], [], []>} : vector<8x8x16xbf16>, vector<16x32xbf16>, vector<8x8x32xf32> -> vector<8x8x32xf32>
    %c0_i32 = arith.constant 0 : i32
    "tpu.trace_stop"() : () -> ()
    %65 = arith.cmpi eq, %arg1, %c0_i32 : i32
    %66 = arith.extui %65 : i1 to i32
    %c0_i32_28 = arith.constant 0 : i32
    %67 = arith.cmpi ne, %66, %c0_i32_28 : i32
    scf.if %67 {
      %c0_32 = arith.constant 0 : index
      %c0_33 = arith.constant 0 : index
      %74 = vector.load %arg9[%c0_32, %c0_33] : memref<1x32xf32, #tpu.memory_space<vmem>>, vector<1x32xf32>
      %75 = vector.shape_cast %74 : vector<1x32xf32> to vector<1x1x32xf32>
      %76 = vector.broadcast %75 : vector<1x1x32xf32> to vector<8x8x32xf32>
      %77 = arith.addf %0, %76 : vector<8x8x32xf32>
      %78 = arith.addf %77, %64 : vector<8x8x32xf32>
      %c0_34 = arith.constant 0 : index
      %c0_35 = arith.constant 0 : index
      %c0_36 = arith.constant 0 : index
      %79 = vector.load %arg11[%c0_34, %c0_35, %c0_36] : memref<8x8x32xf32, #tpu.memory_space<vmem>>, vector<8x8x32xf32>
      tpu.vector_store %arg11[%c0_34, %c0_35, %c0_36], %78 {strides = array<i32>} : memref<8x8x32xf32, #tpu.memory_space<vmem>>, vector<8x8x32xf32>,
    } else {
    }
    %c0_i32_29 = arith.constant 0 : i32
    %68 = arith.cmpi sgt, %arg1, %c0_i32_29 : i32
    %69 = arith.extui %68 : i1 to i32
    %c0_i32_30 = arith.constant 0 : i32
    %70 = arith.cmpi ne, %69, %c0_i32_30 : i32
    scf.if %70 {
      %c0_32 = arith.constant 0 : index
      %c0_33 = arith.constant 0 : index
      %c0_34 = arith.constant 0 : index
      %74 = vector.load %arg11[%c0_32, %c0_33, %c0_34] : memref<8x8x32xf32, #tpu.memory_space<vmem>>, vector<8x8x32xf32>
      %75 = arith.addf %74, %64 : vector<8x8x32xf32>
      %c0_35 = arith.constant 0 : index
      %c0_36 = arith.constant 0 : index
      %c0_37 = arith.constant 0 : index
      %76 = vector.load %arg11[%c0_35, %c0_36, %c0_37] : memref<8x8x32xf32, #tpu.memory_space<vmem>>, vector<8x8x32xf32>
      tpu.vector_store %arg11[%c0_35, %c0_36, %c0_37], %75 {strides = array<i32>} : memref<8x8x32xf32, #tpu.memory_space<vmem>>, vector<8x8x32xf32>,
    } else {
    }
    %c1_i32 = arith.constant 1 : i32
    %71 = arith.cmpi eq, %arg1, %c1_i32 : i32
    %72 = arith.extui %71 : i1 to i32
    %c0_i32_31 = arith.constant 0 : i32
    %73 = arith.cmpi ne, %72, %c0_i32_31 : i32
    scf.if %73 {
      %c0_32 = arith.constant 0 : index
      %c0_33 = arith.constant 0 : index
      %c0_34 = arith.constant 0 : index
      %74 = vector.load %arg11[%c0_32, %c0_33, %c0_34] : memref<8x8x32xf32, #tpu.memory_space<vmem>>, vector<8x8x32xf32>
      %c0_35 = arith.constant 0 : index
      %c0_36 = arith.constant 0 : index
      %c0_37 = arith.constant 0 : index
      %75 = vector.load %arg10[%c0_35, %c0_36, %c0_37] : memref<8x8x32xf32, #tpu.memory_space<vmem>>, vector<8x8x32xf32>
      tpu.vector_store %arg10[%c0_35, %c0_36, %c0_37], %74 {strides = array<i32>} : memref<8x8x32xf32, #tpu.memory_space<vmem>>, vector<8x8x32xf32>,
    } else {
    }
    return
  }
  func.func @transform_0(%arg0: i32, %arg1: i32) -> (i32, i32, i32) {
    %c0_i32 = arith.constant 0 : i32
    %c0_i32_0 = arith.constant 0 : i32
    %c0_i32_1 = arith.constant 0 : i32
    return %arg0, %c0_i32, %c0_i32_0 : i32, i32, i32
  }
  func.func @transform_1(%arg0: i32, %arg1: i32) -> (i32, i32) {
    %c0_i32 = arith.constant 0 : i32
    %c0_i32_0 = arith.constant 0 : i32
    return %arg0, %c0_i32 : i32, i32
  }
  func.func @transform_2(%arg0: i32, %arg1: i32) -> (i32, i32) {
    %c0_i32 = arith.constant 0 : i32
    %c0_i32_0 = arith.constant 0 : i32
    %c0_i32_1 = arith.constant 0 : i32
    return %c0_i32, %c0_i32_0 : i32, i32
  }
  func.func @transform_3(%arg0: i32, %arg1: i32) -> (i32, i32) {
    %c0_i32 = arith.constant 0 : i32
    %c0_i32_0 = arith.constant 0 : i32
    %c0_i32_1 = arith.constant 0 : i32
    return %c0_i32, %c0_i32_0 : i32, i32
  }
  func.func @transform_4(%arg0: i32, %arg1: i32) -> (i32, i32, i32) {
    %c0_i32 = arith.constant 0 : i32
    %c0_i32_0 = arith.constant 0 : i32
    %c0_i32_1 = arith.constant 0 : i32
    return %arg1, %c0_i32, %c0_i32_0 : i32, i32, i32
  }
  func.func @transform_5(%arg0: i32, %arg1: i32) -> (i32, i32, i32) {
    %c0_i32 = arith.constant 0 : i32
    %c0_i32_0 = arith.constant 0 : i32
    %c0_i32_1 = arith.constant 0 : i32
    return %arg1, %c0_i32, %c0_i32_0 : i32, i32, i32
  }
  func.func @transform_6(%arg0: i32, %arg1: i32) -> (i32, i32, i32) {
    %c0_i32 = arith.constant 0 : i32
    %c0_i32_0 = arith.constant 0 : i32
    %c0_i32_1 = arith.constant 0 : i32
    return %arg1, %c0_i32, %c0_i32_0 : i32, i32, i32
  }
  func.func @transform_7(%arg0: i32, %arg1: i32) -> (i32, i32) {
    %c0_i32 = arith.constant 0 : i32
    %c0_i32_0 = arith.constant 0 : i32
    %c0_i32_1 = arith.constant 0 : i32
    return %c0_i32, %c0_i32_0 : i32, i32
  }
  func.func @transform_8(%arg0: i32, %arg1: i32) -> (i32, i32, i32) {
    %c0_i32 = arith.constant 0 : i32
    %c0_i32_0 = arith.constant 0 : i32
    %c0_i32_1 = arith.constant 0 : i32
    return %arg0, %c0_i32, %c0_i32_0 : i32, i32, i32
  }
}

module attributes {stable_mosaic.version = 11 : i64} {
  func.func @attn_ff_head_kernel(%arg0: i32, %arg1: i32, %arg2: memref<8x8x32xf32, #tpu.memory_space<vmem>>, %arg3: memref<8x8xf32, #tpu.memory_space<vmem>>, %arg4: memref<1x32xf32, #tpu.memory_space<vmem>>, %arg5: memref<1x32xf32, #tpu.memory_space<vmem>>, %arg6: memref<1x32x48xbf16, #tpu.memory_space<vmem>>, %arg7: memref<1x1x48xf32, #tpu.memory_space<vmem>>, %arg8: memref<1x16x32xbf16, #tpu.memory_space<vmem>>, %arg9: memref<1x32xf32, #tpu.memory_space<vmem>>, %arg10: memref<1x32xf32, #tpu.memory_space<vmem>>, %arg11: memref<1x32xf32, #tpu.memory_space<vmem>>, %arg12: memref<32x64xbf16, #tpu.memory_space<vmem>>, %arg13: memref<1x64xf32, #tpu.memory_space<vmem>>, %arg14: memref<64x32xbf16, #tpu.memory_space<vmem>>, %arg15: memref<1x32xf32, #tpu.memory_space<vmem>>, %arg16: memref<1x32xf32, #tpu.memory_space<vmem>>, %arg17: memref<1x1xf32, #tpu.memory_space<vmem>>, %arg18: memref<8x8xf32, #tpu.memory_space<vmem>>, %arg19: memref<8x8x32xf32, #tpu.memory_space<vmem>>) attributes {dimension_semantics = [#tpu.dimension_semantics<parallel>, #tpu.dimension_semantics<arbitrary>], iteration_bounds = array<i64: 2, 2>, scalar_prefetch = 0 : i64, scratch_operands = 1 : i64, tpu.core_type = #tpu.core_type<tc>, window_params = [{transform_indices = @transform_0, window_bounds = array<i64: 8, 8, 32>}, {transform_indices = @transform_1, window_bounds = array<i64: 8, 8>}, {pipeline_mode = #tpu.pipeline_mode<synchronous>, transform_indices = @transform_2, window_bounds = array<i64: 1, 32>}, {pipeline_mode = #tpu.pipeline_mode<synchronous>, transform_indices = @transform_3, window_bounds = array<i64: 1, 32>}, {transform_indices = @transform_4, window_bounds = array<i64: 1, 32, 48>}, {transform_indices = @transform_5, window_bounds = array<i64: 1, 1, 48>}, {transform_indices = @transform_6, window_bounds = array<i64: 1, 16, 32>}, {pipeline_mode = #tpu.pipeline_mode<synchronous>, transform_indices = @transform_7, window_bounds = array<i64: 1, 32>}, {pipeline_mode = #tpu.pipeline_mode<synchronous>, transform_indices = @transform_8, window_bounds = array<i64: 1, 32>}, {pipeline_mode = #tpu.pipeline_mode<synchronous>, transform_indices = @transform_9, window_bounds = array<i64: 1, 32>}, {pipeline_mode = #tpu.pipeline_mode<synchronous>, transform_indices = @transform_10, window_bounds = array<i64: 32, 64>}, {pipeline_mode = #tpu.pipeline_mode<synchronous>, transform_indices = @transform_11, window_bounds = array<i64: 1, 64>}, {pipeline_mode = #tpu.pipeline_mode<synchronous>, transform_indices = @transform_12, window_bounds = array<i64: 64, 32>}, {pipeline_mode = #tpu.pipeline_mode<synchronous>, transform_indices = @transform_13, window_bounds = array<i64: 1, 32>}, {pipeline_mode = #tpu.pipeline_mode<synchronous>, transform_indices = @transform_14, window_bounds = array<i64: 1, 32>}, {pipeline_mode = #tpu.pipeline_mode<synchronous>, transform_indices = @transform_15, window_bounds = array<i64: 1, 1>}, {transform_indices = @transform_16, window_bounds = array<i64: 8, 8>}]} {
    %c0 = arith.constant 0 : index
    %c0_0 = arith.constant 0 : index
    %c0_1 = arith.constant 0 : index
    %0 = vector.load %arg2[%c0, %c0_0, %c0_1] : memref<8x8x32xf32, #tpu.memory_space<vmem>>, vector<8x8x32xf32>
    %c0_2 = arith.constant 0 : index
    %c0_3 = arith.constant 0 : index
    %1 = vector.load %arg3[%c0_2, %c0_3] : memref<8x8xf32, #tpu.memory_space<vmem>>, vector<8x8xf32>
    %c0_4 = arith.constant 0 : index
    %c0_5 = arith.constant 0 : index
    %2 = vector.load %arg4[%c0_4, %c0_5] : memref<1x32xf32, #tpu.memory_space<vmem>>, vector<1x32xf32>
    %c0_6 = arith.constant 0 : index
    %c0_7 = arith.constant 0 : index
    %3 = vector.load %arg5[%c0_6, %c0_7] : memref<1x32xf32, #tpu.memory_space<vmem>>, vector<1x32xf32>
    %c0_8 = arith.constant 0 : index
    %c0_9 = arith.constant 0 : index
    %c0_10 = arith.constant 0 : index
    %4 = vector.load %arg6[%c0_8, %c0_9, %c0_10] : memref<1x32x48xbf16, #tpu.memory_space<vmem>>, vector<1x32x48xbf16>
    %5 = vector.shape_cast %4 : vector<1x32x48xbf16> to vector<32x48xbf16>
    %c0_11 = arith.constant 0 : index
    %c0_12 = arith.constant 0 : index
    %c0_13 = arith.constant 0 : index
    %6 = vector.load %arg7[%c0_11, %c0_12, %c0_13] : memref<1x1x48xf32, #tpu.memory_space<vmem>>, vector<1x1x48xf32>
    %7 = vector.shape_cast %6 : vector<1x1x48xf32> to vector<1x48xf32>
    %c0_14 = arith.constant 0 : index
    %c0_15 = arith.constant 0 : index
    %c0_16 = arith.constant 0 : index
    %8 = vector.load %arg8[%c0_14, %c0_15, %c0_16] : memref<1x16x32xbf16, #tpu.memory_space<vmem>>, vector<1x16x32xbf16>
    %9 = vector.shape_cast %8 : vector<1x16x32xbf16> to vector<16x32xbf16>
    %cst = arith.constant dense<0.000000e+00> : vector<8x8xf32>
    %10 = vector.multi_reduction <add>, %0, %cst [2] : vector<8x8x32xf32> to vector<8x8xf32>
    %11 = vector.shape_cast %10 : vector<8x8xf32> to vector<8x8x1xf32>
    %cst_17 = arith.constant 3.200000e+01 : f32
    %12 = vector.broadcast %cst_17 : f32 to vector<8x8x1xf32>
    %13 = arith.divf %11, %12 : vector<8x8x1xf32>
    %14 = vector.broadcast %13 : vector<8x8x1xf32> to vector<8x8x32xf32>
    %15 = arith.subf %0, %14 : vector<8x8x32xf32>
    %16 = arith.mulf %15, %15 : vector<8x8x32xf32>
    %cst_18 = arith.constant dense<0.000000e+00> : vector<8x8xf32>
    %17 = vector.multi_reduction <add>, %16, %cst_18 [2] : vector<8x8x32xf32> to vector<8x8xf32>
    %18 = vector.shape_cast %17 : vector<8x8xf32> to vector<8x8x1xf32>
    %cst_19 = arith.constant 3.200000e+01 : f32
    %19 = vector.broadcast %cst_19 : f32 to vector<8x8x1xf32>
    %20 = arith.divf %18, %19 : vector<8x8x1xf32>
    %21 = vector.broadcast %13 : vector<8x8x1xf32> to vector<8x8x32xf32>
    %22 = arith.subf %0, %21 : vector<8x8x32xf32>
    %cst_20 = arith.constant 9.99999974E-6 : f32
    %23 = vector.broadcast %cst_20 : f32 to vector<8x8x1xf32>
    %24 = arith.addf %20, %23 : vector<8x8x1xf32>
    %25 = math.rsqrt %24 : vector<8x8x1xf32>
    %26 = vector.broadcast %25 : vector<8x8x1xf32> to vector<8x8x32xf32>
    %27 = arith.mulf %22, %26 : vector<8x8x32xf32>
    %28 = vector.shape_cast %2 : vector<1x32xf32> to vector<1x1x32xf32>
    %29 = vector.broadcast %28 : vector<1x1x32xf32> to vector<8x8x32xf32>
    %30 = arith.mulf %27, %29 : vector<8x8x32xf32>
    %31 = vector.shape_cast %3 : vector<1x32xf32> to vector<1x1x32xf32>
    %32 = vector.broadcast %31 : vector<1x1x32xf32> to vector<8x8x32xf32>
    %33 = arith.addf %30, %32 : vector<8x8x32xf32>
    %34 = arith.truncf %33 : vector<8x8x32xf32> to vector<8x8x32xbf16>
    "tpu.trace_start"() <{level = 10 : i32, message = "rnd,de->rne"}> : () -> ()
    %cst_21 = arith.constant dense<0.000000e+00> : vector<8x8x48xf32>
    %35 = tpu.matmul %34, %5, %cst_21 {dimension_numbers = #tpu.dot_dimension_numbers<[2], [0], [0, 1], [1], [0, 0, 0, 1, 1, 1], [], []>} : vector<8x8x32xbf16>, vector<32x48xbf16>, vector<8x8x48xf32> -> vector<8x8x48xf32>
    "tpu.trace_stop"() : () -> ()
    %36 = vector.shape_cast %7 : vector<1x48xf32> to vector<1x1x48xf32>
    %37 = vector.broadcast %36 : vector<1x1x48xf32> to vector<8x8x48xf32>
    %38 = arith.addf %35, %37 : vector<8x8x48xf32>
    %39 = vector.extract_strided_slice %38 {offsets = [0, 0, 0], sizes = [8, 8, 16], strides = [1, 1, 1]} : vector<8x8x48xf32> to vector<8x8x16xf32>
    %40 = arith.truncf %39 : vector<8x8x16xf32> to vector<8x8x16xbf16>
    %41 = vector.extract_strided_slice %38 {offsets = [0, 0, 16], sizes = [8, 8, 16], strides = [1, 1, 1]} : vector<8x8x48xf32> to vector<8x8x16xf32>
    %42 = arith.truncf %41 : vector<8x8x16xf32> to vector<8x8x16xbf16>
    %43 = vector.extract_strided_slice %38 {offsets = [0, 0, 32], sizes = [8, 8, 16], strides = [1, 1, 1]} : vector<8x8x48xf32> to vector<8x8x16xf32>
    %44 = arith.truncf %43 : vector<8x8x16xf32> to vector<8x8x16xbf16>
    "tpu.trace_start"() <{level = 10 : i32, message = "rqe,rke->rqk"}> : () -> ()
    %cst_22 = arith.constant dense<0.000000e+00> : vector<8x8x8xf32>
    %45 = tpu.matmul %40, %42, %cst_22 {dimension_numbers = #tpu.dot_dimension_numbers<[2], [2], [1], [1], [0, 0, 0, 1, 1, 1], [0], [0]>} : vector<8x8x16xbf16>, vector<8x8x16xbf16>, vector<8x8x8xf32> -> vector<8x8x8xf32>
    "tpu.trace_stop"() : () -> ()
    %cst_23 = arith.constant 2.500000e-01 : f32
    %46 = vector.broadcast %cst_23 : f32 to vector<8x8x8xf32>
    %47 = arith.mulf %45, %46 : vector<8x8x8xf32>
    %48 = vector.shape_cast %1 : vector<8x8xf32> to vector<8x1x8xf32>
    %49 = vector.broadcast %48 : vector<8x1x8xf32> to vector<8x8x8xf32>
    %50 = arith.addf %47, %49 : vector<8x8x8xf32>
    %cst_24 = arith.constant dense<0xFF800000> : vector<8x8xf32>
    %51 = vector.multi_reduction <maximumf>, %50, %cst_24 [2] : vector<8x8x8xf32> to vector<8x8xf32>
    %52 = vector.shape_cast %51 : vector<8x8xf32> to vector<8x8x1xf32>
    %53 = vector.broadcast %52 : vector<8x8x1xf32> to vector<8x8x8xf32>
    %54 = arith.subf %50, %53 : vector<8x8x8xf32>
    %55 = math.exp %54 : vector<8x8x8xf32>
    %cst_25 = arith.constant dense<0.000000e+00> : vector<8x8xf32>
    %56 = vector.multi_reduction <add>, %55, %cst_25 [2] : vector<8x8x8xf32> to vector<8x8xf32>
    %57 = vector.shape_cast %56 : vector<8x8xf32> to vector<8x8x1xf32>
    %58 = tpu.reciprocal %57 {approx = true} : vector<8x8x1xf32> -> vector<8x8x1xf32>
    %59 = vector.broadcast %58 : vector<8x8x1xf32> to vector<8x8x8xf32>
    %60 = arith.mulf %55, %59 : vector<8x8x8xf32>
    %61 = arith.truncf %60 : vector<8x8x8xf32> to vector<8x8x8xbf16>
    "tpu.trace_start"() <{level = 10 : i32, message = "rqk,rke->rqe"}> : () -> ()
    %cst_26 = arith.constant dense<0.000000e+00> : vector<8x8x16xf32>
    %62 = tpu.matmul %61, %44, %cst_26 {dimension_numbers = #tpu.dot_dimension_numbers<[2], [1], [1], [2], [0, 0, 0, 1, 1, 2], [0], [0]>} : vector<8x8x8xbf16>, vector<8x8x16xbf16>, vector<8x8x16xf32> -> vector<8x8x16xf32>
    "tpu.trace_stop"() : () -> ()
    %63 = arith.truncf %62 : vector<8x8x16xf32> to vector<8x8x16xbf16>
    "tpu.trace_start"() <{level = 10 : i32, message = "rne,ed->rnd"}> : () -> ()
    %cst_27 = arith.constant dense<0.000000e+00> : vector<8x8x32xf32>
    %64 = tpu.matmul %63, %9, %cst_27 {dimension_numbers = #tpu.dot_dimension_numbers<[2], [0], [0, 1], [1], [0, 0, 0, 1, 1, 1], [], []>} : vector<8x8x16xbf16>, vector<16x32xbf16>, vector<8x8x32xf32> -> vector<8x8x32xf32>
    %c0_i32 = arith.constant 0 : i32
    "tpu.trace_stop"() : () -> ()
    %65 = arith.cmpi eq, %arg1, %c0_i32 : i32
    %66 = arith.extui %65 : i1 to i32
    %c0_i32_28 = arith.constant 0 : i32
    %67 = arith.cmpi ne, %66, %c0_i32_28 : i32
    scf.if %67 {
      %c0_32 = arith.constant 0 : index
      %c0_33 = arith.constant 0 : index
      %74 = vector.load %arg9[%c0_32, %c0_33] : memref<1x32xf32, #tpu.memory_space<vmem>>, vector<1x32xf32>
      %75 = vector.shape_cast %74 : vector<1x32xf32> to vector<1x1x32xf32>
      %76 = vector.broadcast %75 : vector<1x1x32xf32> to vector<8x8x32xf32>
      %77 = arith.addf %0, %76 : vector<8x8x32xf32>
      %78 = arith.addf %77, %64 : vector<8x8x32xf32>
      %c0_34 = arith.constant 0 : index
      %c0_35 = arith.constant 0 : index
      %c0_36 = arith.constant 0 : index
      %79 = vector.load %arg19[%c0_34, %c0_35, %c0_36] : memref<8x8x32xf32, #tpu.memory_space<vmem>>, vector<8x8x32xf32>
      tpu.vector_store %arg19[%c0_34, %c0_35, %c0_36], %78 {strides = array<i32>} : memref<8x8x32xf32, #tpu.memory_space<vmem>>, vector<8x8x32xf32>,
    } else {
    }
    %c0_i32_29 = arith.constant 0 : i32
    %68 = arith.cmpi sgt, %arg1, %c0_i32_29 : i32
    %69 = arith.extui %68 : i1 to i32
    %c0_i32_30 = arith.constant 0 : i32
    %70 = arith.cmpi ne, %69, %c0_i32_30 : i32
    scf.if %70 {
      %c0_32 = arith.constant 0 : index
      %c0_33 = arith.constant 0 : index
      %c0_34 = arith.constant 0 : index
      %74 = vector.load %arg19[%c0_32, %c0_33, %c0_34] : memref<8x8x32xf32, #tpu.memory_space<vmem>>, vector<8x8x32xf32>
      %75 = arith.addf %74, %64 : vector<8x8x32xf32>
      %c0_35 = arith.constant 0 : index
      %c0_36 = arith.constant 0 : index
      %c0_37 = arith.constant 0 : index
      %76 = vector.load %arg19[%c0_35, %c0_36, %c0_37] : memref<8x8x32xf32, #tpu.memory_space<vmem>>, vector<8x8x32xf32>
      tpu.vector_store %arg19[%c0_35, %c0_36, %c0_37], %75 {strides = array<i32>} : memref<8x8x32xf32, #tpu.memory_space<vmem>>, vector<8x8x32xf32>,
    } else {
    }
    %c1_i32 = arith.constant 1 : i32
    %71 = arith.cmpi eq, %arg1, %c1_i32 : i32
    %72 = arith.extui %71 : i1 to i32
    %c0_i32_31 = arith.constant 0 : i32
    %73 = arith.cmpi ne, %72, %c0_i32_31 : i32
    scf.if %73 {
      %c0_32 = arith.constant 0 : index
      %c0_33 = arith.constant 0 : index
      %c0_34 = arith.constant 0 : index
      %74 = vector.load %arg19[%c0_32, %c0_33, %c0_34] : memref<8x8x32xf32, #tpu.memory_space<vmem>>, vector<8x8x32xf32>
      %c0_35 = arith.constant 0 : index
      %c0_36 = arith.constant 0 : index
      %75 = vector.load %arg10[%c0_35, %c0_36] : memref<1x32xf32, #tpu.memory_space<vmem>>, vector<1x32xf32>
      %c0_37 = arith.constant 0 : index
      %c0_38 = arith.constant 0 : index
      %76 = vector.load %arg11[%c0_37, %c0_38] : memref<1x32xf32, #tpu.memory_space<vmem>>, vector<1x32xf32>
      %c0_39 = arith.constant 0 : index
      %c0_40 = arith.constant 0 : index
      %77 = vector.load %arg12[%c0_39, %c0_40] : memref<32x64xbf16, #tpu.memory_space<vmem>>, vector<32x64xbf16>
      %c0_41 = arith.constant 0 : index
      %c0_42 = arith.constant 0 : index
      %78 = vector.load %arg13[%c0_41, %c0_42] : memref<1x64xf32, #tpu.memory_space<vmem>>, vector<1x64xf32>
      %c0_43 = arith.constant 0 : index
      %c0_44 = arith.constant 0 : index
      %79 = vector.load %arg14[%c0_43, %c0_44] : memref<64x32xbf16, #tpu.memory_space<vmem>>, vector<64x32xbf16>
      %c0_45 = arith.constant 0 : index
      %c0_46 = arith.constant 0 : index
      %80 = vector.load %arg15[%c0_45, %c0_46] : memref<1x32xf32, #tpu.memory_space<vmem>>, vector<1x32xf32>
      %cst_47 = arith.constant dense<0.000000e+00> : vector<8x8xf32>
      %81 = vector.multi_reduction <add>, %74, %cst_47 [2] : vector<8x8x32xf32> to vector<8x8xf32>
      %82 = vector.shape_cast %81 : vector<8x8xf32> to vector<8x8x1xf32>
      %cst_48 = arith.constant 3.200000e+01 : f32
      %83 = vector.broadcast %cst_48 : f32 to vector<8x8x1xf32>
      %84 = arith.divf %82, %83 : vector<8x8x1xf32>
      %85 = vector.broadcast %84 : vector<8x8x1xf32> to vector<8x8x32xf32>
      %86 = arith.subf %74, %85 : vector<8x8x32xf32>
      %87 = arith.mulf %86, %86 : vector<8x8x32xf32>
      %cst_49 = arith.constant dense<0.000000e+00> : vector<8x8xf32>
      %88 = vector.multi_reduction <add>, %87, %cst_49 [2] : vector<8x8x32xf32> to vector<8x8xf32>
      %89 = vector.shape_cast %88 : vector<8x8xf32> to vector<8x8x1xf32>
      %cst_50 = arith.constant 3.200000e+01 : f32
      %90 = vector.broadcast %cst_50 : f32 to vector<8x8x1xf32>
      %91 = arith.divf %89, %90 : vector<8x8x1xf32>
      %92 = vector.broadcast %84 : vector<8x8x1xf32> to vector<8x8x32xf32>
      %93 = arith.subf %74, %92 : vector<8x8x32xf32>
      %cst_51 = arith.constant 9.99999974E-6 : f32
      %94 = vector.broadcast %cst_51 : f32 to vector<8x8x1xf32>
      %95 = arith.addf %91, %94 : vector<8x8x1xf32>
      %96 = math.rsqrt %95 : vector<8x8x1xf32>
      %97 = vector.broadcast %96 : vector<8x8x1xf32> to vector<8x8x32xf32>
      %98 = arith.mulf %93, %97 : vector<8x8x32xf32>
      %99 = vector.shape_cast %75 : vector<1x32xf32> to vector<1x1x32xf32>
      %100 = vector.broadcast %99 : vector<1x1x32xf32> to vector<8x8x32xf32>
      %101 = arith.mulf %98, %100 : vector<8x8x32xf32>
      %102 = vector.shape_cast %76 : vector<1x32xf32> to vector<1x1x32xf32>
      %103 = vector.broadcast %102 : vector<1x1x32xf32> to vector<8x8x32xf32>
      %104 = arith.addf %101, %103 : vector<8x8x32xf32>
      %105 = arith.truncf %104 : vector<8x8x32xf32> to vector<8x8x32xbf16>
      "tpu.trace_start"() <{level = 10 : i32, message = "rnd,df->rnf"}> : () -> ()
      %cst_52 = arith.constant dense<0.000000e+00> : vector<8x8x64xf32>
      %106 = tpu.matmul %105, %77, %cst_52 {dimension_numbers = #tpu.dot_dimension_numbers<[2], [0], [0, 1], [1], [0, 0, 0, 1, 1, 1], [], []>} : vector<8x8x32xbf16>, vector<32x64xbf16>, vector<8x8x64xf32> -> vector<8x8x64xf32>
      "tpu.trace_stop"() : () -> ()
      %107 = vector.shape_cast %78 : vector<1x64xf32> to vector<1x1x64xf32>
      %108 = vector.broadcast %107 : vector<1x1x64xf32> to vector<8x8x64xf32>
      %109 = arith.addf %106, %108 : vector<8x8x64xf32>
      %110 = arith.mulf %109, %109 : vector<8x8x64xf32>
      %111 = arith.mulf %109, %110 : vector<8x8x64xf32>
      %cst_53 = arith.constant 4.471500e-02 : f32
      %112 = vector.broadcast %cst_53 : f32 to vector<8x8x64xf32>
      %113 = arith.mulf %112, %111 : vector<8x8x64xf32>
      %114 = arith.addf %109, %113 : vector<8x8x64xf32>
      %cst_54 = arith.constant 0.797884583 : f32
      %115 = vector.broadcast %cst_54 : f32 to vector<8x8x64xf32>
      %116 = arith.mulf %115, %114 : vector<8x8x64xf32>
      %117 = math.tanh %116 : vector<8x8x64xf32>
      %cst_55 = arith.constant 1.000000e+00 : f32
      %118 = vector.broadcast %cst_55 : f32 to vector<8x8x64xf32>
      %119 = arith.addf %118, %117 : vector<8x8x64xf32>
      %cst_56 = arith.constant 5.000000e-01 : f32
      %120 = vector.broadcast %cst_56 : f32 to vector<8x8x64xf32>
      %121 = arith.mulf %120, %119 : vector<8x8x64xf32>
      %122 = arith.mulf %109, %121 : vector<8x8x64xf32>
      %123 = arith.truncf %122 : vector<8x8x64xf32> to vector<8x8x64xbf16>
      "tpu.trace_start"() <{level = 10 : i32, message = "rnf,fd->rnd"}> : () -> ()
      %cst_57 = arith.constant dense<0.000000e+00> : vector<8x8x32xf32>
      %124 = tpu.matmul %123, %79, %cst_57 {dimension_numbers = #tpu.dot_dimension_numbers<[2], [0], [0, 1], [1], [0, 0, 0, 1, 1, 1], [], []>} : vector<8x8x64xbf16>, vector<64x32xbf16>, vector<8x8x32xf32> -> vector<8x8x32xf32>
      "tpu.trace_stop"() : () -> ()
      %125 = arith.addf %74, %124 : vector<8x8x32xf32>
      %126 = vector.shape_cast %80 : vector<1x32xf32> to vector<1x1x32xf32>
      %127 = vector.broadcast %126 : vector<1x1x32xf32> to vector<8x8x32xf32>
      %128 = arith.addf %125, %127 : vector<8x8x32xf32>
      %c0_58 = arith.constant 0 : index
      %c0_59 = arith.constant 0 : index
      %129 = vector.load %arg16[%c0_58, %c0_59] : memref<1x32xf32, #tpu.memory_space<vmem>>, vector<1x32xf32>
      %130 = vector.shape_cast %129 : vector<1x32xf32> to vector<1x1x32xf32>
      %131 = vector.broadcast %130 : vector<1x1x32xf32> to vector<8x8x32xf32>
      %132 = arith.mulf %128, %131 : vector<8x8x32xf32>
      %cst_60 = arith.constant dense<0.000000e+00> : vector<8x8xf32>
      %133 = vector.multi_reduction <add>, %132, %cst_60 [2] : vector<8x8x32xf32> to vector<8x8xf32>
      %c0_61 = arith.constant 0 : index
      %c0_62 = arith.constant 0 : index
      %134 = vector.load %arg17[%c0_61, %c0_62] : memref<1x1xf32, #tpu.memory_space<vmem>>, vector<1x1xf32>
      %135 = vector.broadcast %134 : vector<1x1xf32> to vector<8x8xf32>
      %136 = arith.addf %133, %135 : vector<8x8xf32>
      %c0_63 = arith.constant 0 : index
      %c0_64 = arith.constant 0 : index
      %137 = vector.load %arg18[%c0_63, %c0_64] : memref<8x8xf32, #tpu.memory_space<vmem>>, vector<8x8xf32>
      tpu.vector_store %arg18[%c0_63, %c0_64], %136 {strides = array<i32>} : memref<8x8xf32, #tpu.memory_space<vmem>>, vector<8x8xf32>,
    } else {
    }
    return
  }
  func.func @transform_0(%arg0: i32, %arg1: i32) -> (i32, i32, i32) {
    %c0_i32 = arith.constant 0 : i32
    %c0_i32_0 = arith.constant 0 : i32
    %c0_i32_1 = arith.constant 0 : i32
    return %arg0, %c0_i32, %c0_i32_0 : i32, i32, i32
  }
  func.func @transform_1(%arg0: i32, %arg1: i32) -> (i32, i32) {
    %c0_i32 = arith.constant 0 : i32
    %c0_i32_0 = arith.constant 0 : i32
    return %arg0, %c0_i32 : i32, i32
  }
  func.func @transform_2(%arg0: i32, %arg1: i32) -> (i32, i32) {
    %c0_i32 = arith.constant 0 : i32
    %c0_i32_0 = arith.constant 0 : i32
    %c0_i32_1 = arith.constant 0 : i32
    return %c0_i32, %c0_i32_0 : i32, i32
  }
  func.func @transform_3(%arg0: i32, %arg1: i32) -> (i32, i32) {
    %c0_i32 = arith.constant 0 : i32
    %c0_i32_0 = arith.constant 0 : i32
    %c0_i32_1 = arith.constant 0 : i32
    return %c0_i32, %c0_i32_0 : i32, i32
  }
  func.func @transform_4(%arg0: i32, %arg1: i32) -> (i32, i32, i32) {
    %c0_i32 = arith.constant 0 : i32
    %c0_i32_0 = arith.constant 0 : i32
    %c0_i32_1 = arith.constant 0 : i32
    return %arg1, %c0_i32, %c0_i32_0 : i32, i32, i32
  }
  func.func @transform_5(%arg0: i32, %arg1: i32) -> (i32, i32, i32) {
    %c0_i32 = arith.constant 0 : i32
    %c0_i32_0 = arith.constant 0 : i32
    %c0_i32_1 = arith.constant 0 : i32
    return %arg1, %c0_i32, %c0_i32_0 : i32, i32, i32
  }
  func.func @transform_6(%arg0: i32, %arg1: i32) -> (i32, i32, i32) {
    %c0_i32 = arith.constant 0 : i32
    %c0_i32_0 = arith.constant 0 : i32
    %c0_i32_1 = arith.constant 0 : i32
    return %arg1, %c0_i32, %c0_i32_0 : i32, i32, i32
  }
  func.func @transform_7(%arg0: i32, %arg1: i32) -> (i32, i32) {
    %c0_i32 = arith.constant 0 : i32
    %c0_i32_0 = arith.constant 0 : i32
    %c0_i32_1 = arith.constant 0 : i32
    return %c0_i32, %c0_i32_0 : i32, i32
  }
  func.func @transform_8(%arg0: i32, %arg1: i32) -> (i32, i32) {
    %c0_i32 = arith.constant 0 : i32
    %c0_i32_0 = arith.constant 0 : i32
    %c0_i32_1 = arith.constant 0 : i32
    return %c0_i32, %c0_i32_0 : i32, i32
  }
  func.func @transform_9(%arg0: i32, %arg1: i32) -> (i32, i32) {
    %c0_i32 = arith.constant 0 : i32
    %c0_i32_0 = arith.constant 0 : i32
    %c0_i32_1 = arith.constant 0 : i32
    return %c0_i32, %c0_i32_0 : i32, i32
  }
  func.func @transform_10(%arg0: i32, %arg1: i32) -> (i32, i32) {
    %c0_i32 = arith.constant 0 : i32
    %c0_i32_0 = arith.constant 0 : i32
    %c0_i32_1 = arith.constant 0 : i32
    return %c0_i32, %c0_i32_0 : i32, i32
  }
  func.func @transform_11(%arg0: i32, %arg1: i32) -> (i32, i32) {
    %c0_i32 = arith.constant 0 : i32
    %c0_i32_0 = arith.constant 0 : i32
    %c0_i32_1 = arith.constant 0 : i32
    return %c0_i32, %c0_i32_0 : i32, i32
  }
  func.func @transform_12(%arg0: i32, %arg1: i32) -> (i32, i32) {
    %c0_i32 = arith.constant 0 : i32
    %c0_i32_0 = arith.constant 0 : i32
    %c0_i32_1 = arith.constant 0 : i32
    return %c0_i32, %c0_i32_0 : i32, i32
  }
  func.func @transform_13(%arg0: i32, %arg1: i32) -> (i32, i32) {
    %c0_i32 = arith.constant 0 : i32
    %c0_i32_0 = arith.constant 0 : i32
    %c0_i32_1 = arith.constant 0 : i32
    return %c0_i32, %c0_i32_0 : i32, i32
  }
  func.func @transform_14(%arg0: i32, %arg1: i32) -> (i32, i32) {
    %c0_i32 = arith.constant 0 : i32
    %c0_i32_0 = arith.constant 0 : i32
    %c0_i32_1 = arith.constant 0 : i32
    return %c0_i32, %c0_i32_0 : i32, i32
  }
  func.func @transform_15(%arg0: i32, %arg1: i32) -> (i32, i32) {
    %c0_i32 = arith.constant 0 : i32
    %c0_i32_0 = arith.constant 0 : i32
    %c0_i32_1 = arith.constant 0 : i32
    return %c0_i32, %c0_i32_0 : i32, i32
  }
  func.func @transform_16(%arg0: i32, %arg1: i32) -> (i32, i32) {
    %c0_i32 = arith.constant 0 : i32
    %c0_i32_0 = arith.constant 0 : i32
    return %arg0, %c0_i32 : i32, i32
  }
}

module attributes {stable_mosaic.version = 11 : i64} {
  func.func @attn_ff_kernel(%arg0: i32, %arg1: i32, %arg2: memref<8x8x32xf32, #tpu.memory_space<vmem>>, %arg3: memref<8x8xf32, #tpu.memory_space<vmem>>, %arg4: memref<1x32xf32, #tpu.memory_space<vmem>>, %arg5: memref<1x32xf32, #tpu.memory_space<vmem>>, %arg6: memref<1x32x48xbf16, #tpu.memory_space<vmem>>, %arg7: memref<1x1x48xf32, #tpu.memory_space<vmem>>, %arg8: memref<1x16x32xbf16, #tpu.memory_space<vmem>>, %arg9: memref<1x32xf32, #tpu.memory_space<vmem>>, %arg10: memref<1x32xf32, #tpu.memory_space<vmem>>, %arg11: memref<1x32xf32, #tpu.memory_space<vmem>>, %arg12: memref<32x64xbf16, #tpu.memory_space<vmem>>, %arg13: memref<1x64xf32, #tpu.memory_space<vmem>>, %arg14: memref<64x32xbf16, #tpu.memory_space<vmem>>, %arg15: memref<1x32xf32, #tpu.memory_space<vmem>>, %arg16: memref<8x8x32xf32, #tpu.memory_space<vmem>>, %arg17: memref<8x8x32xf32, #tpu.memory_space<vmem>>) attributes {dimension_semantics = [#tpu.dimension_semantics<parallel>, #tpu.dimension_semantics<arbitrary>], iteration_bounds = array<i64: 2, 2>, scalar_prefetch = 0 : i64, scratch_operands = 1 : i64, tpu.core_type = #tpu.core_type<tc>, window_params = [{transform_indices = @transform_0, window_bounds = array<i64: 8, 8, 32>}, {transform_indices = @transform_1, window_bounds = array<i64: 8, 8>}, {pipeline_mode = #tpu.pipeline_mode<synchronous>, transform_indices = @transform_2, window_bounds = array<i64: 1, 32>}, {pipeline_mode = #tpu.pipeline_mode<synchronous>, transform_indices = @transform_3, window_bounds = array<i64: 1, 32>}, {transform_indices = @transform_4, window_bounds = array<i64: 1, 32, 48>}, {transform_indices = @transform_5, window_bounds = array<i64: 1, 1, 48>}, {transform_indices = @transform_6, window_bounds = array<i64: 1, 16, 32>}, {pipeline_mode = #tpu.pipeline_mode<synchronous>, transform_indices = @transform_7, window_bounds = array<i64: 1, 32>}, {pipeline_mode = #tpu.pipeline_mode<synchronous>, transform_indices = @transform_8, window_bounds = array<i64: 1, 32>}, {pipeline_mode = #tpu.pipeline_mode<synchronous>, transform_indices = @transform_9, window_bounds = array<i64: 1, 32>}, {pipeline_mode = #tpu.pipeline_mode<synchronous>, transform_indices = @transform_10, window_bounds = array<i64: 32, 64>}, {pipeline_mode = #tpu.pipeline_mode<synchronous>, transform_indices = @transform_11, window_bounds = array<i64: 1, 64>}, {pipeline_mode = #tpu.pipeline_mode<synchronous>, transform_indices = @transform_12, window_bounds = array<i64: 64, 32>}, {pipeline_mode = #tpu.pipeline_mode<synchronous>, transform_indices = @transform_13, window_bounds = array<i64: 1, 32>}, {transform_indices = @transform_14, window_bounds = array<i64: 8, 8, 32>}]} {
    %c0 = arith.constant 0 : index
    %c0_0 = arith.constant 0 : index
    %c0_1 = arith.constant 0 : index
    %0 = vector.load %arg2[%c0, %c0_0, %c0_1] : memref<8x8x32xf32, #tpu.memory_space<vmem>>, vector<8x8x32xf32>
    %c0_2 = arith.constant 0 : index
    %c0_3 = arith.constant 0 : index
    %1 = vector.load %arg3[%c0_2, %c0_3] : memref<8x8xf32, #tpu.memory_space<vmem>>, vector<8x8xf32>
    %c0_4 = arith.constant 0 : index
    %c0_5 = arith.constant 0 : index
    %2 = vector.load %arg4[%c0_4, %c0_5] : memref<1x32xf32, #tpu.memory_space<vmem>>, vector<1x32xf32>
    %c0_6 = arith.constant 0 : index
    %c0_7 = arith.constant 0 : index
    %3 = vector.load %arg5[%c0_6, %c0_7] : memref<1x32xf32, #tpu.memory_space<vmem>>, vector<1x32xf32>
    %c0_8 = arith.constant 0 : index
    %c0_9 = arith.constant 0 : index
    %c0_10 = arith.constant 0 : index
    %4 = vector.load %arg6[%c0_8, %c0_9, %c0_10] : memref<1x32x48xbf16, #tpu.memory_space<vmem>>, vector<1x32x48xbf16>
    %5 = vector.shape_cast %4 : vector<1x32x48xbf16> to vector<32x48xbf16>
    %c0_11 = arith.constant 0 : index
    %c0_12 = arith.constant 0 : index
    %c0_13 = arith.constant 0 : index
    %6 = vector.load %arg7[%c0_11, %c0_12, %c0_13] : memref<1x1x48xf32, #tpu.memory_space<vmem>>, vector<1x1x48xf32>
    %7 = vector.shape_cast %6 : vector<1x1x48xf32> to vector<1x48xf32>
    %c0_14 = arith.constant 0 : index
    %c0_15 = arith.constant 0 : index
    %c0_16 = arith.constant 0 : index
    %8 = vector.load %arg8[%c0_14, %c0_15, %c0_16] : memref<1x16x32xbf16, #tpu.memory_space<vmem>>, vector<1x16x32xbf16>
    %9 = vector.shape_cast %8 : vector<1x16x32xbf16> to vector<16x32xbf16>
    %cst = arith.constant dense<0.000000e+00> : vector<8x8xf32>
    %10 = vector.multi_reduction <add>, %0, %cst [2] : vector<8x8x32xf32> to vector<8x8xf32>
    %11 = vector.shape_cast %10 : vector<8x8xf32> to vector<8x8x1xf32>
    %cst_17 = arith.constant 3.200000e+01 : f32
    %12 = vector.broadcast %cst_17 : f32 to vector<8x8x1xf32>
    %13 = arith.divf %11, %12 : vector<8x8x1xf32>
    %14 = vector.broadcast %13 : vector<8x8x1xf32> to vector<8x8x32xf32>
    %15 = arith.subf %0, %14 : vector<8x8x32xf32>
    %16 = arith.mulf %15, %15 : vector<8x8x32xf32>
    %cst_18 = arith.constant dense<0.000000e+00> : vector<8x8xf32>
    %17 = vector.multi_reduction <add>, %16, %cst_18 [2] : vector<8x8x32xf32> to vector<8x8xf32>
    %18 = vector.shape_cast %17 : vector<8x8xf32> to vector<8x8x1xf32>
    %cst_19 = arith.constant 3.200000e+01 : f32
    %19 = vector.broadcast %cst_19 : f32 to vector<8x8x1xf32>
    %20 = arith.divf %18, %19 : vector<8x8x1xf32>
    %21 = vector.broadcast %13 : vector<8x8x1xf32> to vector<8x8x32xf32>
    %22 = arith.subf %0, %21 : vector<8x8x32xf32>
    %cst_20 = arith.constant 9.99999974E-6 : f32
    %23 = vector.broadcast %cst_20 : f32 to vector<8x8x1xf32>
    %24 = arith.addf %20, %23 : vector<8x8x1xf32>
    %25 = math.rsqrt %24 : vector<8x8x1xf32>
    %26 = vector.broadcast %25 : vector<8x8x1xf32> to vector<8x8x32xf32>
    %27 = arith.mulf %22, %26 : vector<8x8x32xf32>
    %28 = vector.shape_cast %2 : vector<1x32xf32> to vector<1x1x32xf32>
    %29 = vector.broadcast %28 : vector<1x1x32xf32> to vector<8x8x32xf32>
    %30 = arith.mulf %27, %29 : vector<8x8x32xf32>
    %31 = vector.shape_cast %3 : vector<1x32xf32> to vector<1x1x32xf32>
    %32 = vector.broadcast %31 : vector<1x1x32xf32> to vector<8x8x32xf32>
    %33 = arith.addf %30, %32 : vector<8x8x32xf32>
    %34 = arith.truncf %33 : vector<8x8x32xf32> to vector<8x8x32xbf16>
    "tpu.trace_start"() <{level = 10 : i32, message = "rnd,de->rne"}> : () -> ()
    %cst_21 = arith.constant dense<0.000000e+00> : vector<8x8x48xf32>
    %35 = tpu.matmul %34, %5, %cst_21 {dimension_numbers = #tpu.dot_dimension_numbers<[2], [0], [0, 1], [1], [0, 0, 0, 1, 1, 1], [], []>} : vector<8x8x32xbf16>, vector<32x48xbf16>, vector<8x8x48xf32> -> vector<8x8x48xf32>
    "tpu.trace_stop"() : () -> ()
    %36 = vector.shape_cast %7 : vector<1x48xf32> to vector<1x1x48xf32>
    %37 = vector.broadcast %36 : vector<1x1x48xf32> to vector<8x8x48xf32>
    %38 = arith.addf %35, %37 : vector<8x8x48xf32>
    %39 = vector.extract_strided_slice %38 {offsets = [0, 0, 0], sizes = [8, 8, 16], strides = [1, 1, 1]} : vector<8x8x48xf32> to vector<8x8x16xf32>
    %40 = arith.truncf %39 : vector<8x8x16xf32> to vector<8x8x16xbf16>
    %41 = vector.extract_strided_slice %38 {offsets = [0, 0, 16], sizes = [8, 8, 16], strides = [1, 1, 1]} : vector<8x8x48xf32> to vector<8x8x16xf32>
    %42 = arith.truncf %41 : vector<8x8x16xf32> to vector<8x8x16xbf16>
    %43 = vector.extract_strided_slice %38 {offsets = [0, 0, 32], sizes = [8, 8, 16], strides = [1, 1, 1]} : vector<8x8x48xf32> to vector<8x8x16xf32>
    %44 = arith.truncf %43 : vector<8x8x16xf32> to vector<8x8x16xbf16>
    "tpu.trace_start"() <{level = 10 : i32, message = "rqe,rke->rqk"}> : () -> ()
    %cst_22 = arith.constant dense<0.000000e+00> : vector<8x8x8xf32>
    %45 = tpu.matmul %40, %42, %cst_22 {dimension_numbers = #tpu.dot_dimension_numbers<[2], [2], [1], [1], [0, 0, 0, 1, 1, 1], [0], [0]>} : vector<8x8x16xbf16>, vector<8x8x16xbf16>, vector<8x8x8xf32> -> vector<8x8x8xf32>
    "tpu.trace_stop"() : () -> ()
    %cst_23 = arith.constant 2.500000e-01 : f32
    %46 = vector.broadcast %cst_23 : f32 to vector<8x8x8xf32>
    %47 = arith.mulf %45, %46 : vector<8x8x8xf32>
    %48 = vector.shape_cast %1 : vector<8x8xf32> to vector<8x1x8xf32>
    %49 = vector.broadcast %48 : vector<8x1x8xf32> to vector<8x8x8xf32>
    %50 = arith.addf %47, %49 : vector<8x8x8xf32>
    %cst_24 = arith.constant dense<0xFF800000> : vector<8x8xf32>
    %51 = vector.multi_reduction <maximumf>, %50, %cst_24 [2] : vector<8x8x8xf32> to vector<8x8xf32>
    %52 = vector.shape_cast %51 : vector<8x8xf32> to vector<8x8x1xf32>
    %53 = vector.broadcast %52 : vector<8x8x1xf32> to vector<8x8x8xf32>
    %54 = arith.subf %50, %53 : vector<8x8x8xf32>
    %55 = math.exp %54 : vector<8x8x8xf32>
    %cst_25 = arith.constant dense<0.000000e+00> : vector<8x8xf32>
    %56 = vector.multi_reduction <add>, %55, %cst_25 [2] : vector<8x8x8xf32> to vector<8x8xf32>
    %57 = vector.shape_cast %56 : vector<8x8xf32> to vector<8x8x1xf32>
    %58 = tpu.reciprocal %57 {approx = true} : vector<8x8x1xf32> -> vector<8x8x1xf32>
    %59 = vector.broadcast %58 : vector<8x8x1xf32> to vector<8x8x8xf32>
    %60 = arith.mulf %55, %59 : vector<8x8x8xf32>
    %61 = arith.truncf %60 : vector<8x8x8xf32> to vector<8x8x8xbf16>
    "tpu.trace_start"() <{level = 10 : i32, message = "rqk,rke->rqe"}> : () -> ()
    %cst_26 = arith.constant dense<0.000000e+00> : vector<8x8x16xf32>
    %62 = tpu.matmul %61, %44, %cst_26 {dimension_numbers = #tpu.dot_dimension_numbers<[2], [1], [1], [2], [0, 0, 0, 1, 1, 2], [0], [0]>} : vector<8x8x8xbf16>, vector<8x8x16xbf16>, vector<8x8x16xf32> -> vector<8x8x16xf32>
    "tpu.trace_stop"() : () -> ()
    %63 = arith.truncf %62 : vector<8x8x16xf32> to vector<8x8x16xbf16>
    "tpu.trace_start"() <{level = 10 : i32, message = "rne,ed->rnd"}> : () -> ()
    %cst_27 = arith.constant dense<0.000000e+00> : vector<8x8x32xf32>
    %64 = tpu.matmul %63, %9, %cst_27 {dimension_numbers = #tpu.dot_dimension_numbers<[2], [0], [0, 1], [1], [0, 0, 0, 1, 1, 1], [], []>} : vector<8x8x16xbf16>, vector<16x32xbf16>, vector<8x8x32xf32> -> vector<8x8x32xf32>
    %c0_i32 = arith.constant 0 : i32
    "tpu.trace_stop"() : () -> ()
    %65 = arith.cmpi eq, %arg1, %c0_i32 : i32
    %66 = arith.extui %65 : i1 to i32
    %c0_i32_28 = arith.constant 0 : i32
    %67 = arith.cmpi ne, %66, %c0_i32_28 : i32
    scf.if %67 {
      %c0_32 = arith.constant 0 : index
      %c0_33 = arith.constant 0 : index
      %74 = vector.load %arg9[%c0_32, %c0_33] : memref<1x32xf32, #tpu.memory_space<vmem>>, vector<1x32xf32>
      %75 = vector.shape_cast %74 : vector<1x32xf32> to vector<1x1x32xf32>
      %76 = vector.broadcast %75 : vector<1x1x32xf32> to vector<8x8x32xf32>
      %77 = arith.addf %0, %76 : vector<8x8x32xf32>
      %78 = arith.addf %77, %64 : vector<8x8x32xf32>
      %c0_34 = arith.constant 0 : index
      %c0_35 = arith.constant 0 : index
      %c0_36 = arith.constant 0 : index
      %79 = vector.load %arg17[%c0_34, %c0_35, %c0_36] : memref<8x8x32xf32, #tpu.memory_space<vmem>>, vector<8x8x32xf32>
      tpu.vector_store %arg17[%c0_34, %c0_35, %c0_36], %78 {strides = array<i32>} : memref<8x8x32xf32, #tpu.memory_space<vmem>>, vector<8x8x32xf32>,
    } else {
    }
    %c0_i32_29 = arith.constant 0 : i32
    %68 = arith.cmpi sgt, %arg1, %c0_i32_29 : i32
    %69 = arith.extui %68 : i1 to i32
    %c0_i32_30 = arith.constant 0 : i32
    %70 = arith.cmpi ne, %69, %c0_i32_30 : i32
    scf.if %70 {
      %c0_32 = arith.constant 0 : index
      %c0_33 = arith.constant 0 : index
      %c0_34 = arith.constant 0 : index
      %74 = vector.load %arg17[%c0_32, %c0_33, %c0_34] : memref<8x8x32xf32, #tpu.memory_space<vmem>>, vector<8x8x32xf32>
      %75 = arith.addf %74, %64 : vector<8x8x32xf32>
      %c0_35 = arith.constant 0 : index
      %c0_36 = arith.constant 0 : index
      %c0_37 = arith.constant 0 : index
      %76 = vector.load %arg17[%c0_35, %c0_36, %c0_37] : memref<8x8x32xf32, #tpu.memory_space<vmem>>, vector<8x8x32xf32>
      tpu.vector_store %arg17[%c0_35, %c0_36, %c0_37], %75 {strides = array<i32>} : memref<8x8x32xf32, #tpu.memory_space<vmem>>, vector<8x8x32xf32>,
    } else {
    }
    %c1_i32 = arith.constant 1 : i32
    %71 = arith.cmpi eq, %arg1, %c1_i32 : i32
    %72 = arith.extui %71 : i1 to i32
    %c0_i32_31 = arith.constant 0 : i32
    %73 = arith.cmpi ne, %72, %c0_i32_31 : i32
    scf.if %73 {
      %c0_32 = arith.constant 0 : index
      %c0_33 = arith.constant 0 : index
      %c0_34 = arith.constant 0 : index
      %74 = vector.load %arg17[%c0_32, %c0_33, %c0_34] : memref<8x8x32xf32, #tpu.memory_space<vmem>>, vector<8x8x32xf32>
      %c0_35 = arith.constant 0 : index
      %c0_36 = arith.constant 0 : index
      %75 = vector.load %arg10[%c0_35, %c0_36] : memref<1x32xf32, #tpu.memory_space<vmem>>, vector<1x32xf32>
      %c0_37 = arith.constant 0 : index
      %c0_38 = arith.constant 0 : index
      %76 = vector.load %arg11[%c0_37, %c0_38] : memref<1x32xf32, #tpu.memory_space<vmem>>, vector<1x32xf32>
      %c0_39 = arith.constant 0 : index
      %c0_40 = arith.constant 0 : index
      %77 = vector.load %arg12[%c0_39, %c0_40] : memref<32x64xbf16, #tpu.memory_space<vmem>>, vector<32x64xbf16>
      %c0_41 = arith.constant 0 : index
      %c0_42 = arith.constant 0 : index
      %78 = vector.load %arg13[%c0_41, %c0_42] : memref<1x64xf32, #tpu.memory_space<vmem>>, vector<1x64xf32>
      %c0_43 = arith.constant 0 : index
      %c0_44 = arith.constant 0 : index
      %79 = vector.load %arg14[%c0_43, %c0_44] : memref<64x32xbf16, #tpu.memory_space<vmem>>, vector<64x32xbf16>
      %c0_45 = arith.constant 0 : index
      %c0_46 = arith.constant 0 : index
      %80 = vector.load %arg15[%c0_45, %c0_46] : memref<1x32xf32, #tpu.memory_space<vmem>>, vector<1x32xf32>
      %cst_47 = arith.constant dense<0.000000e+00> : vector<8x8xf32>
      %81 = vector.multi_reduction <add>, %74, %cst_47 [2] : vector<8x8x32xf32> to vector<8x8xf32>
      %82 = vector.shape_cast %81 : vector<8x8xf32> to vector<8x8x1xf32>
      %cst_48 = arith.constant 3.200000e+01 : f32
      %83 = vector.broadcast %cst_48 : f32 to vector<8x8x1xf32>
      %84 = arith.divf %82, %83 : vector<8x8x1xf32>
      %85 = vector.broadcast %84 : vector<8x8x1xf32> to vector<8x8x32xf32>
      %86 = arith.subf %74, %85 : vector<8x8x32xf32>
      %87 = arith.mulf %86, %86 : vector<8x8x32xf32>
      %cst_49 = arith.constant dense<0.000000e+00> : vector<8x8xf32>
      %88 = vector.multi_reduction <add>, %87, %cst_49 [2] : vector<8x8x32xf32> to vector<8x8xf32>
      %89 = vector.shape_cast %88 : vector<8x8xf32> to vector<8x8x1xf32>
      %cst_50 = arith.constant 3.200000e+01 : f32
      %90 = vector.broadcast %cst_50 : f32 to vector<8x8x1xf32>
      %91 = arith.divf %89, %90 : vector<8x8x1xf32>
      %92 = vector.broadcast %84 : vector<8x8x1xf32> to vector<8x8x32xf32>
      %93 = arith.subf %74, %92 : vector<8x8x32xf32>
      %cst_51 = arith.constant 9.99999974E-6 : f32
      %94 = vector.broadcast %cst_51 : f32 to vector<8x8x1xf32>
      %95 = arith.addf %91, %94 : vector<8x8x1xf32>
      %96 = math.rsqrt %95 : vector<8x8x1xf32>
      %97 = vector.broadcast %96 : vector<8x8x1xf32> to vector<8x8x32xf32>
      %98 = arith.mulf %93, %97 : vector<8x8x32xf32>
      %99 = vector.shape_cast %75 : vector<1x32xf32> to vector<1x1x32xf32>
      %100 = vector.broadcast %99 : vector<1x1x32xf32> to vector<8x8x32xf32>
      %101 = arith.mulf %98, %100 : vector<8x8x32xf32>
      %102 = vector.shape_cast %76 : vector<1x32xf32> to vector<1x1x32xf32>
      %103 = vector.broadcast %102 : vector<1x1x32xf32> to vector<8x8x32xf32>
      %104 = arith.addf %101, %103 : vector<8x8x32xf32>
      %105 = arith.truncf %104 : vector<8x8x32xf32> to vector<8x8x32xbf16>
      "tpu.trace_start"() <{level = 10 : i32, message = "rnd,df->rnf"}> : () -> ()
      %cst_52 = arith.constant dense<0.000000e+00> : vector<8x8x64xf32>
      %106 = tpu.matmul %105, %77, %cst_52 {dimension_numbers = #tpu.dot_dimension_numbers<[2], [0], [0, 1], [1], [0, 0, 0, 1, 1, 1], [], []>} : vector<8x8x32xbf16>, vector<32x64xbf16>, vector<8x8x64xf32> -> vector<8x8x64xf32>
      "tpu.trace_stop"() : () -> ()
      %107 = vector.shape_cast %78 : vector<1x64xf32> to vector<1x1x64xf32>
      %108 = vector.broadcast %107 : vector<1x1x64xf32> to vector<8x8x64xf32>
      %109 = arith.addf %106, %108 : vector<8x8x64xf32>
      %110 = arith.mulf %109, %109 : vector<8x8x64xf32>
      %111 = arith.mulf %109, %110 : vector<8x8x64xf32>
      %cst_53 = arith.constant 4.471500e-02 : f32
      %112 = vector.broadcast %cst_53 : f32 to vector<8x8x64xf32>
      %113 = arith.mulf %112, %111 : vector<8x8x64xf32>
      %114 = arith.addf %109, %113 : vector<8x8x64xf32>
      %cst_54 = arith.constant 0.797884583 : f32
      %115 = vector.broadcast %cst_54 : f32 to vector<8x8x64xf32>
      %116 = arith.mulf %115, %114 : vector<8x8x64xf32>
      %117 = math.tanh %116 : vector<8x8x64xf32>
      %cst_55 = arith.constant 1.000000e+00 : f32
      %118 = vector.broadcast %cst_55 : f32 to vector<8x8x64xf32>
      %119 = arith.addf %118, %117 : vector<8x8x64xf32>
      %cst_56 = arith.constant 5.000000e-01 : f32
      %120 = vector.broadcast %cst_56 : f32 to vector<8x8x64xf32>
      %121 = arith.mulf %120, %119 : vector<8x8x64xf32>
      %122 = arith.mulf %109, %121 : vector<8x8x64xf32>
      %123 = arith.truncf %122 : vector<8x8x64xf32> to vector<8x8x64xbf16>
      "tpu.trace_start"() <{level = 10 : i32, message = "rnf,fd->rnd"}> : () -> ()
      %cst_57 = arith.constant dense<0.000000e+00> : vector<8x8x32xf32>
      %124 = tpu.matmul %123, %79, %cst_57 {dimension_numbers = #tpu.dot_dimension_numbers<[2], [0], [0, 1], [1], [0, 0, 0, 1, 1, 1], [], []>} : vector<8x8x64xbf16>, vector<64x32xbf16>, vector<8x8x32xf32> -> vector<8x8x32xf32>
      "tpu.trace_stop"() : () -> ()
      %125 = arith.addf %74, %124 : vector<8x8x32xf32>
      %126 = vector.shape_cast %80 : vector<1x32xf32> to vector<1x1x32xf32>
      %127 = vector.broadcast %126 : vector<1x1x32xf32> to vector<8x8x32xf32>
      %128 = arith.addf %125, %127 : vector<8x8x32xf32>
      %c0_58 = arith.constant 0 : index
      %c0_59 = arith.constant 0 : index
      %c0_60 = arith.constant 0 : index
      %129 = vector.load %arg16[%c0_58, %c0_59, %c0_60] : memref<8x8x32xf32, #tpu.memory_space<vmem>>, vector<8x8x32xf32>
      tpu.vector_store %arg16[%c0_58, %c0_59, %c0_60], %128 {strides = array<i32>} : memref<8x8x32xf32, #tpu.memory_space<vmem>>, vector<8x8x32xf32>,
    } else {
    }
    return
  }
  func.func @transform_0(%arg0: i32, %arg1: i32) -> (i32, i32, i32) {
    %c0_i32 = arith.constant 0 : i32
    %c0_i32_0 = arith.constant 0 : i32
    %c0_i32_1 = arith.constant 0 : i32
    return %arg0, %c0_i32, %c0_i32_0 : i32, i32, i32
  }
  func.func @transform_1(%arg0: i32, %arg1: i32) -> (i32, i32) {
    %c0_i32 = arith.constant 0 : i32
    %c0_i32_0 = arith.constant 0 : i32
    return %arg0, %c0_i32 : i32, i32
  }
  func.func @transform_2(%arg0: i32, %arg1: i32) -> (i32, i32) {
    %c0_i32 = arith.constant 0 : i32
    %c0_i32_0 = arith.constant 0 : i32
    %c0_i32_1 = arith.constant 0 : i32
    return %c0_i32, %c0_i32_0 : i32, i32
  }
  func.func @transform_3(%arg0: i32, %arg1: i32) -> (i32, i32) {
    %c0_i32 = arith.constant 0 : i32
    %c0_i32_0 = arith.constant 0 : i32
    %c0_i32_1 = arith.constant 0 : i32
    return %c0_i32, %c0_i32_0 : i32, i32
  }
  func.func @transform_4(%arg0: i32, %arg1: i32) -> (i32, i32, i32) {
    %c0_i32 = arith.constant 0 : i32
    %c0_i32_0 = arith.constant 0 : i32
    %c0_i32_1 = arith.constant 0 : i32
    return %arg1, %c0_i32, %c0_i32_0 : i32, i32, i32
  }
  func.func @transform_5(%arg0: i32, %arg1: i32) -> (i32, i32, i32) {
    %c0_i32 = arith.constant 0 : i32
    %c0_i32_0 = arith.constant 0 : i32
    %c0_i32_1 = arith.constant 0 : i32
    return %arg1, %c0_i32, %c0_i32_0 : i32, i32, i32
  }
  func.func @transform_6(%arg0: i32, %arg1: i32) -> (i32, i32, i32) {
    %c0_i32 = arith.constant 0 : i32
    %c0_i32_0 = arith.constant 0 : i32
    %c0_i32_1 = arith.constant 0 : i32
    return %arg1, %c0_i32, %c0_i32_0 : i32, i32, i32
  }
  func.func @transform_7(%arg0: i32, %arg1: i32) -> (i32, i32) {
    %c0_i32 = arith.constant 0 : i32
    %c0_i32_0 = arith.constant 0 : i32
    %c0_i32_1 = arith.constant 0 : i32
    return %c0_i32, %c0_i32_0 : i32, i32
  }
  func.func @transform_8(%arg0: i32, %arg1: i32) -> (i32, i32) {
    %c0_i32 = arith.constant 0 : i32
    %c0_i32_0 = arith.constant 0 : i32
    %c0_i32_1 = arith.constant 0 : i32
    return %c0_i32, %c0_i32_0 : i32, i32
  }
  func.func @transform_9(%arg0: i32, %arg1: i32) -> (i32, i32) {
    %c0_i32 = arith.constant 0 : i32
    %c0_i32_0 = arith.constant 0 : i32
    %c0_i32_1 = arith.constant 0 : i32
    return %c0_i32, %c0_i32_0 : i32, i32
  }
  func.func @transform_10(%arg0: i32, %arg1: i32) -> (i32, i32) {
    %c0_i32 = arith.constant 0 : i32
    %c0_i32_0 = arith.constant 0 : i32
    %c0_i32_1 = arith.constant 0 : i32
    return %c0_i32, %c0_i32_0 : i32, i32
  }
  func.func @transform_11(%arg0: i32, %arg1: i32) -> (i32, i32) {
    %c0_i32 = arith.constant 0 : i32
    %c0_i32_0 = arith.constant 0 : i32
    %c0_i32_1 = arith.constant 0 : i32
    return %c0_i32, %c0_i32_0 : i32, i32
  }
  func.func @transform_12(%arg0: i32, %arg1: i32) -> (i32, i32) {
    %c0_i32 = arith.constant 0 : i32
    %c0_i32_0 = arith.constant 0 : i32
    %c0_i32_1 = arith.constant 0 : i32
    return %c0_i32, %c0_i32_0 : i32, i32
  }
  func.func @transform_13(%arg0: i32, %arg1: i32) -> (i32, i32) {
    %c0_i32 = arith.constant 0 : i32
    %c0_i32_0 = arith.constant 0 : i32
    %c0_i32_1 = arith.constant 0 : i32
    return %c0_i32, %c0_i32_0 : i32, i32
  }
  func.func @transform_14(%arg0: i32, %arg1: i32) -> (i32, i32, i32) {
    %c0_i32 = arith.constant 0 : i32
    %c0_i32_0 = arith.constant 0 : i32
    %c0_i32_1 = arith.constant 0 : i32
    return %arg0, %c0_i32, %c0_i32_0 : i32, i32, i32
  }
}

</mosaic_0001>

<bundles_post_ra>
// kernel: lt.8
= control target key start
LH: loop header
LB: loop body
LE: loop exit
PB: predicated region body
PF: predicated region fallthrough
CT: control target
= control target key end

     0   :  { %v16_v2 = vmov 0   ;;  %s41_s0 = inlined_call_operand.vmem [shape: s32[16], index: 0, kind: input, shape index: {}]   ;;  %s42_s1 = inlined_call_operand.vmem [shape: s32[16], index: 1, kind: input, shape index: {}]   ;;  %s43_s2 = inlined_call_operand.vmem [shape: pred[16], index: 2, kind: output, shape index: {}]  }
   0x1   :  { %v3_v0 = vld [vmem:[%s41_s0] sm:$0x1] }
   0x2   :  { %v4_v1 = vld [vmem:[%s42_s1] sm:$0x1] }
   0x3   :  { %vm7_vm0 = vcmp.lt.s32.totalorder %v3_v0, %v4_v1 }
   0x4   :  { %v8_v3 = vsel %vm7_vm0, 1, %v16_v2 }
   0x5   :  { %v10_v4 = vpack.c.b16 %v16_v2, %v8_v3 }
   0x7   :  { %v11_v5 = vpack.c.b8 %v16_v2, %v10_v4 }
   0x9   :  { %14 = vst [vmem:[%s43_s2] sm:$0x1] %v11_v5 }

// kernel: _lambda_.5
= control target key start
LH: loop header
LB: loop body
LE: loop exit
PB: predicated region body
PF: predicated region fallthrough
CT: control target
= control target key end

     0   :  { %s3185_s29 = smov 0   ;;  %s3187_s30 = smov 0   ;;  %s3806_s0 = inlined_call_operand.vmem [shape: f32[16,8,32], index: 0, kind: input, shape index: {}]   ;;  %s3807_s1 = inlined_call_operand.vmem [shape: f32[16,8], index: 1, kind: input, shape index: {}]   ;;  %s3808_s2 = inlined_call_operand.vmem [shape: f32[1,32], index: 2, kind: input, shape index: {}]   ;;  %s3809_s3 = inlined_call_operand.vmem [shape: f32[1,32], index: 3, kind: input, shape index: {}]   ;;  %s3810_s4 = inlined_call_operand.vmem [shape: bf16[2,32,48], index: 4, kind: input, shape index: {}]   ;;  %s3811_s5 = inlined_call_operand.vmem [shape: f32[2,1,48], index: 5, kind: input, shape index: {}]   ;;  %s3812_s6 = inlined_call_operand.vmem [shape: bf16[2,16,32], index: 6, kind: input, shape index: {}]   ;;  %s3813_s7 = inlined_call_operand.vmem [shape: f32[1,32], index: 7, kind: input, shape index: {}]   ;;  %s3814_s8 = inlined_call_operand.vmem [shape: f32[1,32], index: 8, kind: input, shape index: {}]   ;;  %s3815_s9 = inlined_call_operand.vmem [shape: f32[1,32], index: 9, kind: input, shape index: {}]   ;;  %s3816_s10 = inlined_call_operand.vmem [shape: bf16[32,64], index: 10, kind: input, shape index: {}]   ;;  %s3817_s11 = inlined_call_operand.vmem [shape: f32[1,64], index: 11, kind: input, shape index: {}]   ;;  %s3818_s12 = inlined_call_operand.vmem [shape: bf16[64,32], index: 12, kind: input, shape index: {}]   ;;  %s3819_s13 = inlined_call_operand.vmem [shape: f32[1,32], index: 13, kind: input, shape index: {}]   ;;  %s3820_s14 = inlined_call_operand.vmem [shape: f32[16,8,32], index: 14, kind: output, shape index: {}]  }
   0x1   :  { %s3189_s15 = smov 0   ;;  %s3191_s16 = smov 0  }
   0x2   :  { %s3193_s17 = smov 0  }
   0x3 LB: > { %s33_s18 = sadd.s32 1, %s3095_s15  ;;  %s36_s19 = sadd.s32 1, %s3099_s16  ;;  %s3103_s17 = sphi %s3193_s17, %s24_s17   ;;  %s3099_s16 = sphi %s3191_s16, %s3824_s16   ;;  %s3095_s15 = sphi %s3189_s15, %s3823_s15   ;;  %s3091_s30 = sphi %s3187_s30, %s3822_s30   ;;  %s3087_s29 = sphi %s3185_s29, %s3821_s29  }
   0x4   : > { %p34_p0 = scmp.ge.s32.totalorder %s33_s18, 2  ;;  %p2625_p1 = scmp.ge.s32.totalorder %s3103_s17, 1 }
   0x5   : > { %p462_p2 = scmp.lt.s32.totalorder %s3103_s17, 5 }
   0x6   : > { %s3826_s18 = smov (%p34_p0, %s33_s18), 0  ;;  %s3828_s19 = smov (!%p34_p0, %s36_s19), %s3099_s16 }
   0x7   : > { %p463_p3 = pnand %p2625_p1, %p462_p2  ;;  %p38_p4 = scmp.ge.s32.totalorder %s3828_s19, 2 }
   0x8   : > { %s2626_s20 = sshll.u32 (!%p463_p3), %s3091_s30, 3  ;;  %p535_p6 = scmp.lt.s32.totalorder (!%p463_p3), %s3087_s29, 1 }
   0x9   : > { %s3830_s19 = smov (%p38_p4, %s3828_s19), 0  ;;  %466 = sbr.rel (%p463_p3) target bundleno = 2435 (0x983), region = 76 }
   0xa   : > { %p526_p5 = scmp.lt.s32.totalorder (!%p463_p3), %s2626_s20, 15  ;;  %p531_p7 = scmp.lt.s32.totalorder (!%p463_p3), %s3091_s30, 1 }
   0xb   : > { %p2673_p8 = scmp.ne.s32.totalorder (!%p463_p3), %s3087_s29, 0 }
   0xe   : > { %s3832_s20 = smov (!%p526_p5, %s2626_s20), 15  ;;  %vm573_vm0 = vcmask 261120   ;;  %vm3106_vm1 = vmmov 0   ;;  %vm841_vm2 = vcmask 130048   ;;  %s3834_s30 = smov (!%p531_p7, %s3091_s30), 1  ;;  %vm1337_vm3 = vcmask 64512  }
   0xf   : > { %s2627_s21 = sshll.u32 %s3832_s20, 3  ;;  %s2628_s25 = sshll.u32 %s3834_s30, 3  ;;  %vm1439_vm4 = vcmask 1043456  }
  0x10   : > { %s529_s24 = scalar_lea.vmem %s3806_s0, %s2627_s21  ;;  %s3226_s27 = scalar_lea.vmem %s3820_s14, %s2627_s21 }
  0x11   : > { %v3228_v0 = vld [vmem:[%s529_s24] sm:$0xff]  ;;  %v3230_v1 = vld [vmem:[%s529_s24 + $0x10] sm:$0xff]  ;;  %v3232_v2 = vld [vmem:[%s529_s24 + $0x8] sm:$0xff]  ;;  %s3310_s28 = scalar_select %p535_p6, %s3087_s29, 1 }
  0x12   : > { %v574_v3 = vsel %vm573_vm0, %v3228_v0, 0.0  ;;  %v580_v4 = vsel %vm573_vm0, %v3230_v1, 0.0  ;;  %v3238_v5 = vld [vmem:[%s529_s24 + $0x18] sm:$0xff]  ;;  %v577_v6 = vsel %vm573_vm0, %v3232_v2, 0.0  ;;  %v3244_v8 = vld [vmem:[%s529_s24 + $0x20] sm:$0xff]  ;;  %v3246_v9 = vld [vmem:[%s529_s24 + $0x28] sm:$0xff]  ;;  %s534_s21 = scalar_lea.vmem %s3807_s1, %s2628_s25 }
  0x13   : > { %575 = vadd.xlane.f32.xlu0 %v574_v3  ;;  %581 = vadd.xlane.f32.xlu1 %v580_v4  ;;  %v583_v7 = vsel %vm573_vm0, %v3238_v5, 0.0  ;;  %v586_v10 = vsel %vm573_vm0, %v3244_v8, 0.0  ;;  %v589_v11 = vsel %vm573_vm0, %v3246_v9, 0.0  ;;  %v3252_v12 = vld [vmem:[%s529_s24 + $0x30] sm:$0xff]  ;;  %v3254_v13 = vld [vmem:[%s529_s24 + $0x38] sm:$0xff]  ;;  %s2705_s20 = sshll.u32 %s3310_s28, 4 }
  0x14   : > { %v592_v14 = vsel %vm573_vm0, %v3252_v12, 0.0  ;;  %v595_v15 = vsel %vm573_vm0, %v3254_v13, 0.0  ;;  %s539_s23 = scalar_lea.vmem %s3810_s4, %s2705_s20  ;;  %s3107_s24 = smov 112  }
  0x15   : > { %v2975_v56 = vld [vmem:[%s539_s23 + $0x8] sm:$0xff]   ;;  %v2976_v57 = vld [vmem:[%s539_s23] sm:$0xff]   ;;  %s542_s23 = scalar_lea.vmem %s3811_s5, %s3310_s28  ;;  %s3109_s30 = smov 96  }
  0x16   : > { %2780 = vmatprep.subr.bf16.mxu0 %v2975_v56  ;;  %2926 = vmatprep.subr.bf16.mxu1 %v2975_v56  ;;  %s2706_s22 = sshll.u32 %s3310_s28, 3 }
  0x17   : > { %578 = vadd.xlane.f32.xlu0 %v577_v6  ;;  %584 = vadd.xlane.f32.xlu1 %v583_v7  ;;  %s547_s25 = scalar_lea.vmem %s3812_s6, %s2706_s22 }
  0x18   : > { %2781 = vmatpush3.bf16.msra.mxu0 %v2975_v56  ;;  %2928 = vmatpush3.bf16.msra.mxu1 %v2975_v56 }
  0x19   : > { %2782 = vmatprep.subr.bf16.mxu0 %v2976_v57  ;;  %2927 = vmatprep.subr.bf16.mxu1 %v2976_v57 }
  0x1b   : > { %587 = vadd.xlane.f32.xlu0 %v586_v10  ;;  %590 = vadd.xlane.f32.xlu1 %v589_v11 }
  0x1c   : > { %2783 = vmatpush3.bf16.msra.mxu0 %v2976_v57  ;;  %2929 = vmatpush3.bf16.msra.mxu1 %v2976_v57 }
  0x1f   : > { %593 = vadd.xlane.f32.xlu0 %v592_v14  ;;  %596 = vadd.xlane.f32.xlu1 %v595_v15 }
  0x9c   : > { %v576_v16 = vpop.xlane.xlu0 %575  ;;  %v582_v17 = vpop.xlane.xlu1 %581 }
  0x9d   : > { %v599_v18 = vmul.f32 0.03125, %v576_v16  ;;  %v601_v19 = vmul.f32 0.03125, %v582_v17 }
  0x9f   : > { %v3261_v20 = vsub.f32 %v3228_v0, %v599_v18  ;;  %v3264_v21 = vsub.f32 %v3230_v1, %v601_v19 }
  0xa0   : > { %v579_v22 = vpop.xlane.xlu0 %578  ;;  %v585_v23 = vpop.xlane.xlu1 %584 }
  0xa1   : > { %v600_v24 = vmul.f32 0.03125, %v579_v22  ;;  %v602_v25 = vmul.f32 0.03125, %v585_v23  ;;  %v615_v26 = vmul.f32 %v3261_v20, %v3261_v20  ;;  %v617_v27 = vmul.f32 %v3264_v21, %v3264_v21 }
  0xa3   : > { %v3271_v28 = vsub.f32 %v3232_v2, %v600_v24  ;;  %v3274_v29 = vsub.f32 %v3238_v5, %v602_v25  ;;  %v623_v30 = vsel %vm573_vm0, %v615_v26, 0.0  ;;  %v629_v33 = vsel %vm573_vm0, %v617_v27, 0.0 }
  0xa4   : > { %624 = vadd.xlane.f32.xlu0 %v623_v30  ;;  %v588_v31 = vpop.xlane.xlu0 %587  ;;  %v591_v32 = vpop.xlane.xlu1 %590 }
  0xa5   : > { %v603_v34 = vmul.f32 0.03125, %v588_v31  ;;  %v604_v35 = vmul.f32 0.03125, %v591_v32  ;;  %v616_v36 = vmul.f32 %v3271_v28, %v3271_v28  ;;  %v618_v37 = vmul.f32 %v3274_v29, %v3274_v29  ;;  %v2635_v32 = vld [vmem:[%s3808_s2] ss:$0 sm:$0xff] }
  0xa7   : > { %v3283_v38 = vsub.f32 %v3244_v8, %v603_v34  ;;  %v3286_v39 = vsub.f32 %v3246_v9, %v604_v35  ;;  %v626_v40 = vsel %vm573_vm0, %v616_v36, 0.0  ;;  %v632_v43 = vsel %vm573_vm0, %v618_v37, 0.0  ;;  %v2636_v37 = vld [vmem:[%s3809_s3] ss:$0 sm:$0xff] }
  0xa8   : > { %630 = vadd.xlane.f32.xlu0 %v629_v33  ;;  %627 = vadd.xlane.f32.xlu1 %v626_v40  ;;  %v594_v41 = vpop.xlane.xlu0 %593  ;;  %v597_v42 = vpop.xlane.xlu1 %596 }
  0xa9   : > { %v605_v44 = vmul.f32 0.03125, %v594_v41  ;;  %v606_v45 = vmul.f32 0.03125, %v597_v42  ;;  %v619_v46 = vmul.f32 %v3283_v38, %v3283_v38  ;;  %v620_v47 = vmul.f32 %v3286_v39, %v3286_v39 }
  0xab   : > { %v3295_v48 = vsub.f32 %v3252_v12, %v605_v44  ;;  %v3298_v49 = vsub.f32 %v3254_v13, %v606_v45  ;;  %v635_v50 = vsel %vm573_vm0, %v619_v46, 0.0  ;;  %v638_v51 = vsel %vm573_vm0, %v620_v47, 0.0 }
  0xac   : > { %633 = vadd.xlane.f32.xlu1 %v632_v43  ;;  %636 = vadd.xlane.f32.xlu0 %v635_v50 }
  0xad   : > { %v621_v52 = vmul.f32 %v3295_v48, %v3295_v48  ;;  %v622_v53 = vmul.f32 %v3298_v49, %v3298_v49 }
  0xaf   : > { %v641_v54 = vsel %vm573_vm0, %v621_v52, 0.0  ;;  %v644_v55 = vsel %vm573_vm0, %v622_v53, 0.0 }
  0xb0   : > { %639 = vadd.xlane.f32.xlu1 %v638_v51  ;;  %642 = vadd.xlane.f32.xlu0 %v641_v54 }
  0xb4   : > { %645 = vadd.xlane.f32.xlu1 %v644_v55 }
 0x12d   : > { %v625_v58 = vpop.xlane.xlu0 %624 }
 0x12e   : > { %v647_v59 = vmul.f32 0.03125, %v625_v58 }
 0x130   : > { %v655_v60 = vadd.f32 1e-05, %v647_v59 }
 0x131   : > { %v628_v61 = vpop.xlane.xlu1 %627  ;;  %v631_v62 = vpop.xlane.xlu0 %630 }
 0x132   : > { %2979 = vrsqrt.f32 %v655_v60  ;;  %v648_v63 = vmul.f32 0.03125, %v628_v61  ;;  %v649_v3 = vmul.f32 0.03125, %v631_v62 }
 0x134   : > { %v656_v4 = vadd.f32 1e-05, %v648_v63  ;;  %v657_v6 = vadd.f32 1e-05, %v649_v3 }
 0x135   : > { %v634_v7 = vpop.xlane.xlu1 %633  ;;  %v637_v10 = vpop.xlane.xlu0 %636 }
 0x136   : > { %2981 = vrsqrt.f32 %v656_v4  ;;  %v650_v11 = vmul.f32 0.03125, %v634_v7  ;;  %v651_v14 = vmul.f32 0.03125, %v637_v10 }
 0x137   : > { %2983 = vrsqrt.f32 %v657_v6  ;;  %v2637_v6 = vld [vmem:[%s542_s23] ss:$0 sm:$0xff] }
 0x138   : > { %v658_v15 = vadd.f32 1e-05, %v650_v11  ;;  %v659_v16 = vadd.f32 1e-05, %v651_v14 }
 0x139   : > { %v640_v17 = vpop.xlane.xlu1 %639  ;;  %v643_v18 = vpop.xlane.xlu0 %642 }
 0x13a   : > { %2985 = vrsqrt.f32 %v658_v15  ;;  %v652_v19 = vmul.f32 0.03125, %v640_v17  ;;  %v653_v22 = vmul.f32 0.03125, %v643_v18 }
 0x13b   : > { %2987 = vrsqrt.f32 %v659_v16 }
 0x13c   : > { %v660_v23 = vadd.f32 1e-05, %v652_v19  ;;  %v661_v24 = vadd.f32 1e-05, %v653_v22 }
 0x13d   : > { %v646_v25 = vpop.xlane.xlu1 %645 }
 0x13e   : > { %2989 = vrsqrt.f32 %v660_v23  ;;  %v654_v26 = vmul.f32 0.03125, %v646_v25 }
 0x13f   : > { %v2980_v27 = vpop.eup %2979  ;;  %2991 = vrsqrt.f32 %v661_v24 }
 0x140   : > { %v662_v30 = vadd.f32 1e-05, %v654_v26  ;;  %v671_v31 = vmul.f32 %v2980_v27, %v3261_v20 }
 0x142   : > { %2993 = vrsqrt.f32 %v662_v30  ;;  %v685_v36 = vmul.f32 %v2635_v32, %v671_v31 }
 0x143   : > { %v2982_v33 = vpop.eup %2981 }
 0x144   : > { %v2984_v34 = vpop.eup %2983  ;;  %v672_v35 = vmul.f32 %v2982_v33, %v3271_v28  ;;  %v699_v20 = vadd.f32 %v2636_v37, %v685_v36 }
 0x145   : > { %v673_v40 = vmul.f32 %v2984_v34, %v3264_v21 }
 0x146   : > { %v686_v41 = vmul.f32 %v2635_v32, %v672_v35 }
 0x147   : > { %v2986_v42 = vpop.eup %2985  ;;  %v687_v46 = vmul.f32 %v2635_v32, %v673_v40 }
 0x148   : > { %v2988_v43 = vpop.eup %2987  ;;  %v700_v44 = vadd.f32 %v2636_v37, %v686_v41  ;;  %v674_v45 = vmul.f32 %v2986_v42, %v3274_v29 }
 0x149   : > { %v675_v47 = vmul.f32 %v2988_v43, %v3283_v38  ;;  %v701_v53 = vadd.f32 %v2636_v37, %v687_v46 }
 0x14a   : > { %v2707_v50 = vpack.c.bf16 %v700_v44, %v699_v20  ;;  %v688_v51 = vmul.f32 %v2635_v32, %v674_v45 }
 0x14b   : > { %v2990_v28 = vpop.eup %2989  ;;  %v689_v55 = vmul.f32 %v2635_v32, %v675_v47 }
 0x14c   : > { %v2992_v52 = vpop.eup %2991  ;;  %2784 = vmatprep.mubr.msk.bf16.mxu0 %vm573_vm0, %v2707_v50  ;;  %v702_v54 = vadd.f32 %v2636_v37, %v688_v51  ;;  %v676_v21 = vmul.f32 %v2990_v28, %v3286_v39 }
 0x14d   : > { %v677_v56 = vmul.f32 %v2992_v52, %v3295_v48  ;;  %v703_v29 = vadd.f32 %v2636_v37, %v689_v55  ;;  %v3105_v48 = vmov 0.0   ;;  %v3108_v55 = vmov 1966171168  }
 0x14e   : > { %v2708_v57 = vpack.c.bf16 %v702_v54, %v701_v53  ;;  %v690_v58 = vmul.f32 %v2635_v32, %v676_v21  ;;  %2792 = vmatprep.subr.bf16.mxu1 %v3105_v48  ;;  %2804 = vmatprep.subr.bf16.mxu0 %v3105_v48 }
 0x14f   : > { %v2994_v59 = vpop.eup %2993  ;;  %v691_v61 = vmul.f32 %v2635_v32, %v677_v56  ;;  %v1242_v56 = vunpack.c.l.s4 %v3108_v55 }
 0x150   : > { %2785 = vmatmul.mubr.msk.bf16.vlgmr.msra.gmra.mxu0 %vm573_vm0, %v2708_v57  ;;  %v704_v38 = vadd.f32 %v2636_v37, %v690_v58  ;;  %v678_v60 = vmul.f32 %v2994_v59, %v3298_v49  ;;  %v1244_v57 = vlaneseq }
 0x151   : > { %v705_v3 = vadd.f32 %v2636_v37, %v691_v61  ;;  %2806 = vmatprep.mubr.msk.bf16.mxu0 %vm3106_vm1, %v3105_v48  ;;  %v1243_v58 = vunpack.c.0.s8 %v1242_v56 }
 0x152   : > { %v2709_v62 = vpack.c.bf16 %v704_v38, %v703_v29  ;;  %v692_v63 = vmul.f32 %v2635_v32, %v678_v60  ;;  %v1245_v59 = vshrl.u32 %v1244_v57, 7  ;;  %v563_v38 = vld [vmem:[%s534_s21] sm:$0xff] }
 0x154   : > { %2788 = vmatprep.mubr.msk.bf16.mxu1 %vm573_vm0, %v2709_v62  ;;  %v706_v39 = vadd.f32 %v2636_v37, %v692_v63  ;;  %v3421_v29 = vsub.s32 %v1243_v58, %v1245_v59 }
 0x156   : > { %v2710_v4 = vpack.c.bf16 %v706_v39, %v705_v3  ;;  %v1247_v60 = vrot.slane %v563_v38, %v3421_v29 }
 0x158   : > { %2789 = vmatmul.mubr.msk.bf16.vlgmr.msra.gmra.mxu1 %vm573_vm0, %v2710_v4  ;;  %v1255_v61 = vcombine.high %v1247_v60, %v1247_v60  ;;  %v1263_v63 = vrot.slane %v1247_v60, %v3421_v29 }
 0x159   : > { %2794 = vmatprep.mubr.msk.bf16.mxu1 %vm3106_vm1, %v3105_v48 }
 0x15a   : > { %v1285_v39 = vcombine.high %v1263_v63, %v1263_v63  ;;  %v1277_v4 = vrot.slane %v1255_v61, %v3421_v29 }
 0x210   : > { %v2786_v49 = vpop.f32.mrf.mxu0 }
 0x211   : > { %v808_v18 = vadd.f32 %v2786_v49, %v2637_v6  ;;  %v1240_v49 = vcombine.high %v563_v38, %v563_v38 }
 0x212   : > { %v799_v7 = vpop.f32.mrf.mxu0 }
 0x213   : > { %v800_v10 = vadd.f32 %v2637_v6, %v799_v7  ;;  %v3350_v25 = vpack.c.bf16 %v808_v18, %v808_v18  ;;  %v3426_v7 = vsub.s32 0, %v1245_v59  ;;  %v1287_v59 = vcombine.high %v1277_v4, %v1277_v4 }
 0x214   : > { %v2787_v11 = vpop.f32.mrf.mxu0 }
 0x215   : > { %v3344_v14 = vpack.c.bf16 %v800_v10, %v800_v10  ;;  %v811_v26 = vadd.f32 %v2787_v11, %v2637_v6  ;;  %v1300_v11 = vrot.slane %v1285_v39, %v3426_v7 }
 0x216   : > { %v802_v15 = vpop.f32.mrf.mxu0 }
 0x217   : > { %v803_v16 = vadd.f32 %v2637_v6, %v802_v15  ;;  %839 = vrot.lane.b32.xlu0 %v3344_v14, %s3107_s24  ;;  %v3356_v32 = vpack.c.bf16 %v811_v26, %v811_v26  ;;  %v1296_v15 = vrot.slane %v1277_v4, %v3426_v7  ;;  %v1292_v26 = vrot.slane %v1263_v63, %v3426_v7 }
 0x218   : > { %v2790_v17 = vpop.f32.mrf.mxu1 }
 0x219   : > { %v3347_v19 = vpack.c.bf16 %v803_v16, %v803_v16  ;;  %v824_v27 = vadd.f32 %v2790_v17, %v2637_v6  ;;  %v3431_v16 = vrot.slane %v1240_v49, %v3421_v29  ;;  %v1304_v49 = vrot.slane %v1287_v59, %v3426_v7 }
 0x21a   : > { %v815_v22 = vpop.f32.mrf.mxu1 }
 0x21b   : > { %v816_v23 = vadd.f32 %v2637_v6, %v815_v22  ;;  %889 = vrot.lane.b32.xlu1 %v3347_v19, %s3107_s24  ;;  %v3358_v33 = vpack.c.bf16 %v824_v27, %v824_v27 }
 0x21c   : > { %v2791_v24 = vpop.f32.mrf.mxu1 }
 0x21d   : > { %v3352_v30 = vpack.c.bf16 %v816_v23, %v816_v23  ;;  %v827_v35 = vadd.f32 %v2791_v24, %v2637_v6 }
 0x21e   : > { %v818_v31 = vpop.f32.mrf.mxu1 }
 0x21f   : > { %938 = vrot.lane.b32.xlu1 %v3350_v25, %s3107_s24  ;;  %1036 = vrot.lane.b32.xlu0 %v3352_v30, %s3107_s24  ;;  %v819_v34 = vadd.f32 %v2637_v6, %v818_v31  ;;  %v3365_v37 = vpack.c.bf16 %v827_v35, %v827_v35 }
 0x221   : > { %v3362_v36 = vpack.c.bf16 %v819_v34, %v819_v34 }
 0x223   : > { %987 = vrot.lane.b32.xlu1 %v3356_v32, %s3107_s24  ;;  %1134 = vrot.lane.b32.xlu0 %v3358_v33, %s3107_s24 }
 0x227   : > { %1085 = vrot.lane.b32.xlu1 %v3362_v36, %s3107_s24 }
 0x22b   : > { %1183 = vrot.lane.b32.xlu1 %v3365_v37, %s3107_s24 }
 0x289   : > { %v840_v40 = vpop.permute.xlu0 %839 }
 0x28a   : > { %v846_v41 = vsel %vm841_vm2, %v840_v40, 0  ;;  %v1270_v40 = vrot.slane %v3431_v16, %v3421_v29 }
 0x28b   : > { %2793 = vmatpush3.bf16.xpose.msra.mxu1 %v846_v41 }
 0x28c   : > { %2798 = vmatprep.subr.bf16.mxu1 %v3105_v48  ;;  %v1286_v55 = vcombine.high %v1270_v40, %v1270_v40 }
 0x28d   : > { %v890_v42 = vpop.permute.xlu1 %889 }
 0x28e   : > { %v895_v20 = vsel %vm841_vm2, %v890_v42, 0  ;;  %v1316_v61 = vrot.slane %v1286_v55, %v3426_v7 }
 0x291   : > { %v939_v43 = vpop.permute.xlu1 %938  ;;  %v1037_v45 = vpop.permute.xlu0 %1036 }
 0x292   : > { %v944_v44 = vsel %vm841_vm2, %v939_v43, 0  ;;  %2795 = vmatmul.mubr.msk.bf16.vlgmr.msra.gmra.mxu1 %vm841_vm2, %v3344_v14  ;;  %v1042_v47 = vsel %vm841_vm2, %v1037_v45, 0 }
 0x293   : > { %2799 = vmatpush3.bf16.xpose.msra.mxu1 %v895_v20  ;;  %2805 = vmatpush3.bf16.xpose.msra.mxu0 %v944_v44 }
 0x294   : > { %2800 = vmatprep.mubr.msk.bf16.mxu1 %vm3106_vm1, %v3105_v48  ;;  %2810 = vmatprep.subr.bf16.mxu1 %v3105_v48 }
 0x295   : > { %2816 = vmatprep.subr.bf16.mxu0 %v3105_v48  ;;  %v988_v46 = vpop.permute.xlu1 %987  ;;  %v1135_v51 = vpop.permute.xlu0 %1134 }
 0x296   : > { %v993_v50 = vsel %vm841_vm2, %v988_v46, 0  ;;  %v1140_v52 = vsel %vm841_vm2, %v1135_v51, 0 }
 0x299   : > { %v1086_v28 = vpop.permute.xlu1 %1085 }
 0x29a   : > { %2801 = vmatmul.mubr.msk.bf16.vlgmr.msra.gmra.mxu1 %vm841_vm2, %v3347_v19  ;;  %2807 = vmatmul.mubr.msk.bf16.vlgmr.msra.gmra.mxu0 %vm841_vm2, %v3350_v25  ;;  %v1091_v53 = vsel %vm841_vm2, %v1086_v28, 0 }
 0x29b   : > { %2811 = vmatpush3.bf16.xpose.msra.mxu1 %v993_v50  ;;  %2817 = vmatpush3.bf16.xpose.msra.mxu0 %v1042_v47  ;;  %v1308_v47 = vrot.slane %v1270_v40, %v3426_v7 }
 0x29c   : > { %2812 = vmatprep.mubr.msk.bf16.mxu1 %vm3106_vm1, %v3105_v48  ;;  %2818 = vmatprep.mubr.msk.bf16.mxu0 %vm3106_vm1, %v3105_v48 }
 0x29d   : > { %2822 = vmatprep.subr.bf16.mxu1 %v3105_v48  ;;  %2828 = vmatprep.subr.bf16.mxu0 %v3105_v48  ;;  %v1184_v54 = vpop.permute.xlu1 %1183 }
 0x29e   : > { %v1189_v21 = vsel %vm841_vm2, %v1184_v54, 0 }
 0x2a2   : > { %2813 = vmatmul.mubr.msk.bf16.vlgmr.msra.gmra.mxu1 %vm841_vm2, %v3356_v32  ;;  %2819 = vmatmul.mubr.msk.bf16.vlgmr.msra.gmra.mxu0 %vm841_vm2, %v3352_v30 }
 0x2a3   : > { %2823 = vmatpush3.bf16.xpose.msra.mxu1 %v1091_v53  ;;  %2829 = vmatpush3.bf16.xpose.msra.mxu0 %v1140_v52 }
 0x2a4   : > { %2824 = vmatprep.mubr.msk.bf16.mxu1 %vm3106_vm1, %v3105_v48  ;;  %2830 = vmatprep.mubr.msk.bf16.mxu0 %vm3106_vm1, %v3105_v48 }
 0x2a5   : > { %2834 = vmatprep.subr.bf16.mxu1 %v3105_v48  ;;  %2840 = vmatprep.subr.bf16.mxu0 %v3105_v48 }
 0x2aa   : > { %2825 = vmatmul.mubr.msk.bf16.vlgmr.msra.gmra.mxu1 %vm841_vm2, %v3362_v36  ;;  %2831 = vmatmul.mubr.msk.bf16.vlgmr.msra.gmra.mxu0 %vm841_vm2, %v3358_v33 }
 0x2ab   : > { %2835 = vmatpush3.bf16.xpose.msra.mxu1 %v1189_v21  ;;  %2836 = vmatprep.mubr.msk.bf16.mxu1 %vm3106_vm1, %v3105_v48 }
 0x2ac   : > { %2846 = vmatprep.subr.bf16.mxu1 %v3105_v48  ;;  %2842 = vmatprep.mubr.msk.bf16.mxu0 %vm3106_vm1, %v3105_v48 }
 0x2b2   : > { %2837 = vmatmul.mubr.msk.bf16.vlgmr.msra.gmra.mxu1 %vm841_vm2, %v3365_v37 }
 0x2b3   : > { %2848 = vmatprep.mubr.msk.bf16.mxu1 %vm3106_vm1, %v3105_v48 }
 0x352   : > { %v882_v62 = vpop.f32.mrf.mxu1 }
 0x353   : > { %v1231_v22 = vmul.f32 0.25, %v882_v62 }
 0x354   : > { %v2796_v3 = vpop.f32.mrf.mxu1 }
 0x355   : > { %v3444_v44 = vadd.f32 %v1292_v26, %v1231_v22 }
 0x356   : > { %v885_v6 = vpop.f32.mrf.mxu1 }
 0x357   : > { %v1338_v52 = vsel %vm1337_vm3, %v3444_v44, -inf }
 0x358   : > { %v2797_v10 = vpop.f32.mrf.mxu1 }
 0x35a   : > { %v931_v17 = vpop.f32.mrf.mxu1  ;;  %v980_v18 = vpop.f32.mrf.mxu0 }
 0x35b   : > { %v1232_v23 = vmul.f32 0.25, %v931_v17  ;;  %v1233_v24 = vmul.f32 0.25, %v980_v18 }
 0x35c   : > { %v2802_v27 = vpop.f32.mrf.mxu1  ;;  %v2808_v31 = vpop.f32.mrf.mxu0 }
 0x35d   : > { %v3434_v34 = vadd.f32 %v1300_v11, %v1233_v24  ;;  %v3436_v35 = vadd.f32 %v1296_v15, %v1232_v23 }
 0x35e   : > { %v934_v41 = vpop.f32.mrf.mxu1  ;;  %v983_v42 = vpop.f32.mrf.mxu0 }
 0x35f   : > { %v1344_v43 = vsel %vm1337_vm3, %v3434_v34, -inf  ;;  %v1341_v20 = vsel %vm1337_vm3, %v3436_v35, -inf  ;;  %v1256_v41 = vcombine.high %v3431_v16, %v3431_v16 }
 0x360   : > { %v2809_v45 = vpop.f32.mrf.mxu0  ;;  %1345 = vmax.xlane.f32.xlu0 %v1344_v43  ;;  %1342 = vmax.xlane.f32.xlu1 %v1341_v20  ;;  %v2803_v46 = vpop.f32.mrf.mxu1 }
 0x361   : > { %v1284_v42 = vrot.slane %v1256_v41, %v3421_v29 }
 0x362   : > { %v1029_v50 = vpop.f32.mrf.mxu1  ;;  %v1078_v51 = vpop.f32.mrf.mxu0 }
 0x363   : > { %v1235_v28 = vmul.f32 0.25, %v1078_v51  ;;  %v1234_v3 = vmul.f32 0.25, %v1029_v50  ;;  %v1312_v43 = vrot.slane %v1284_v42, %v3426_v7  ;;  %v1288_v20 = vcombine.high %v1284_v42, %v1284_v42 }
 0x364   : > { %1339 = vmax.xlane.f32.xlu0 %v1338_v52  ;;  %v2814_v53 = vpop.f32.mrf.mxu1  ;;  %v2820_v54 = vpop.f32.mrf.mxu0 }
 0x365   : > { %v3449_v21 = vadd.f32 %v1308_v47, %v1235_v28  ;;  %v3459_v18 = vadd.f32 %v1304_v49, %v1234_v3  ;;  %v1320_v47 = vrot.slane %v1288_v20, %v3426_v7 }
 0x366   : > { %v1032_v56 = vpop.f32.mrf.mxu1  ;;  %v1081_v57 = vpop.f32.mrf.mxu0 }
 0x367   : > { %v1350_v58 = vsel %vm1337_vm3, %v3449_v21, -inf  ;;  %v1347_v26 = vsel %vm1337_vm3, %v3459_v18, -inf }
 0x368   : > { %v2815_v38 = vpop.f32.mrf.mxu1  ;;  %1351 = vmax.xlane.f32.xlu0 %v1350_v58  ;;  %v2821_v60 = vpop.f32.mrf.mxu0 }
 0x36a   : > { %v1127_v62 = vpop.f32.mrf.mxu1  ;;  %v1176_v63 = vpop.f32.mrf.mxu0 }
 0x36b   : > { %v1237_v39 = vmul.f32 0.25, %v1176_v63 }
 0x36c   : > { %v2826_v6 = vpop.f32.mrf.mxu1  ;;  %v2832_v10 = vpop.f32.mrf.mxu0 }
 0x36d   : > { %v3455_v11 = vadd.f32 %v1316_v61, %v1237_v39 }
 0x36e   : > { %v1130_v15 = vpop.f32.mrf.mxu1  ;;  %v1179_v17 = vpop.f32.mrf.mxu0 }
 0x36f   : > { %v1356_v4 = vsel %vm1337_vm3, %v3455_v11, -inf }
 0x370   : > { %v2827_v22 = vpop.f32.mrf.mxu1  ;;  %1357 = vmax.xlane.f32.xlu0 %v1356_v4  ;;  %v2833_v23 = vpop.f32.mrf.mxu0 }
 0x371   : > { %1483 = vrot.lane.b32.xlu1 %v3347_v19, %s3109_s30  ;;  %v1236_v19 = vmul.f32 0.25, %v1127_v62 }
 0x372   : > { %v1225_v24 = vpop.f32.mrf.mxu1 }
 0x373   : > { %v1238_v45 = vmul.f32 0.25, %v1225_v24  ;;  %v1334_v46 = vadd.f32 %v1312_v43, %v1236_v19 }
 0x374   : > { %v2838_v27 = vpop.f32.mrf.mxu1  ;;  %1348 = vmax.xlane.f32.xlu0 %v1347_v26 }
 0x375   : > { %1531 = vrot.lane.b32.xlu1 %v3350_v25, %s3109_s30  ;;  %v1353_v25 = vsel %vm1337_vm3, %v1334_v46, -inf  ;;  %v1336_v50 = vadd.f32 %v1320_v47, %v1238_v45 }
 0x376   : > { %v1228_v31 = vpop.f32.mrf.mxu1 }
 0x377   : > { %v1359_v51 = vsel %vm1337_vm3, %v1336_v50, -inf }
 0x378   : > { %v2839_v40 = vpop.f32.mrf.mxu1 }
 0x38a   : > { %1434 = vrot.lane.b32.xlu0 %v3344_v14, %s3109_s30 }
 0x399   : > { %1354 = vmax.xlane.f32.xlu1 %v1353_v25 }
 0x39d   : > { %1360 = vmax.xlane.f32.xlu1 %v1359_v51 }
 0x3ae   : > { %1579 = vrot.lane.b32.xlu1 %v3356_v32, %s3109_s30 }
 0x3e9   : > { %v1343_v14 = vpop.xlane.xlu1 %1342  ;;  %v1346_v29 = vpop.xlane.xlu0 %1345 }
 0x3ea   : > { %v1363_v16 = vsub.f32 %v3436_v35, %v1343_v14  ;;  %v1364_v28 = vsub.f32 %v3434_v34, %v1346_v29 }
 0x3ec   : > { %v1372_v52 = vmul.f32 1.442695, %v1363_v16  ;;  %v1374_v53 = vmul.f32 1.442695, %v1364_v28 }
 0x3ed   : > { %v1484_v7 = vpop.permute.xlu1 %1483  ;;  %v1340_v54 = vpop.xlane.xlu0 %1339 }
 0x3ee   : > { %2995 = vpow2.f32 %v1372_v52  ;;  %v1489_v55 = vsel %vm1439_vm4, %v1484_v7, 0  ;;  %v1362_v56 = vsub.f32 %v3444_v44, %v1340_v54 }
 0x3ef   : > { %2997 = vpow2.f32 %v1374_v53  ;;  %2847 = vmatpush3.bf16.msra.mxu1 %v1489_v55 }
 0x3f0   : > { %v1370_v57 = vmul.f32 1.442695, %v1362_v56  ;;  %2858 = vmatprep.subr.bf16.mxu1 %v3105_v48 }
 0x3f1   : > { %v1352_v32 = vpop.xlane.xlu0 %1351  ;;  %v1532_v49 = vpop.permute.xlu1 %1531 }
 0x3f2   : > { %2999 = vpow2.f32 %v1370_v57  ;;  %v1366_v6 = vsub.f32 %v3449_v21, %v1352_v32  ;;  %v1537_v16 = vsel %vm1439_vm4, %v1532_v49, 0 }
 0x3f4   : > { %v1378_v10 = vmul.f32 1.442695, %v1366_v6 }
 0x3f9   : > { %v1358_v35 = vpop.xlane.xlu0 %1357 }
 0x3fa   : > { %v1368_v15 = vsub.f32 %v3455_v11, %v1358_v35 }
 0x3fb   : > { %v2996_v58 = vpop.eup %2995 }
 0x3fc   : > { %v3483_v34 = vpop.eup %2997  ;;  %v1389_v59 = vsel %vm1337_vm3, %v2996_v58, 0.0  ;;  %v1382_v23 = vmul.f32 1.442695, %v1368_v15 }
 0x3fd   : > { %1390 = vadd.xlane.f32.xlu1 %v1389_v59  ;;  %v1392_v38 = vsel %vm1337_vm3, %v3483_v34, 0.0  ;;  %v1349_v60 = vpop.xlane.xlu0 %1348 }
 0x3fe   : > { %1393 = vadd.xlane.f32.xlu0 %v1392_v38  ;;  %v1365_v3 = vsub.f32 %v3459_v18, %v1349_v60 }
 0x3ff   : > { %v3000_v44 = vpop.eup %2999 }
 0x400   : > { %v1386_v61 = vsel %vm1337_vm3, %v3000_v44, 0.0  ;;  %v1376_v39 = vmul.f32 1.442695, %v1365_v3 }
 0x401   : > { %v1435_v62 = vpop.permute.xlu0 %1434 }
 0x402   : > { %1387 = vadd.xlane.f32.xlu0 %v1386_v61  ;;  %v1441_v63 = vsel %vm1439_vm4, %v1435_v62, 0  ;;  %3001 = vpow2.f32 %v1376_v39 }
 0x403   : > { %2841 = vmatpush3.bf16.msra.mxu0 %v1441_v63  ;;  %3003 = vpow2.f32 %v1378_v10 }
 0x404   : > { %2852 = vmatprep.subr.bf16.mxu0 %v3105_v48 }
 0x40e   : > { %1675 = vrot.lane.b32.xlu1 %v3362_v36, %s3109_s30 }
 0x418   : > { %1627 = vrot.lane.b32.xlu0 %v3352_v30, %s3109_s30  ;;  %v3002_v30 = vpop.eup %3001 }
 0x419   : > { %v1395_v18 = vsel %vm1337_vm3, %v3002_v30, 0.0  ;;  %v3499_v21 = vpop.eup %3003 }
 0x41a   : > { %v1398_v31 = vsel %vm1337_vm3, %v3499_v21, 0.0 }
 0x422   : > { %v1355_v17 = vpop.xlane.xlu1 %1354 }
 0x423   : > { %v1367_v4 = vsub.f32 %v1334_v46, %v1355_v17 }
 0x425   : > { %v1380_v22 = vmul.f32 1.442695, %v1367_v4 }
 0x426   : > { %v1361_v24 = vpop.xlane.xlu1 %1360 }
 0x427   : > { %3005 = vpow2.f32 %v1380_v22  ;;  %v1369_v36 = vsub.f32 %v1336_v50, %v1361_v24 }
 0x428   : > { %3007 = vpow2.f32 %v1382_v23 }
 0x429   : > { %v1384_v26 = vmul.f32 1.442695, %v1369_v36  ;;  %v2978_v36 = vld [vmem:[%s547_s25] sm:$0xff]  }
 0x42a   : > { %v1580_v43 = vpop.permute.xlu1 %1579 }
 0x42b   : > { %3009 = vpow2.f32 %v1384_v26  ;;  %v1585_v14 = vsel %vm1439_vm4, %v1580_v43, 0 }
 0x432   : > { %1396 = vadd.xlane.f32.xlu1 %v1395_v18 }
 0x434   : > { %v3501_v27 = vpop.eup %3005 }
 0x435   : > { %v1401_v11 = vsel %vm1337_vm3, %v3501_v27, 0.0  ;;  %v3507_v40 = vpop.eup %3007 }
 0x436   : > { %1402 = vadd.xlane.f32.xlu1 %v1401_v11  ;;  %v1404_v19 = vsel %vm1337_vm3, %v3507_v40, 0.0 }
 0x437   : > { %1399 = vadd.xlane.f32.xlu0 %v1398_v31 }
 0x438   : > { %v3509_v41 = vpop.eup %3009 }
 0x439   : > { %v1407_v42 = vsel %vm1337_vm3, %v3509_v41, 0.0 }
 0x43a   : > { %1408 = vadd.xlane.f32.xlu1 %v1407_v42 }
 0x43b   : > { %1405 = vadd.xlane.f32.xlu0 %v1404_v19 }
 0x44b   : > { %1771 = vrot.lane.b32.xlu1 %v3365_v37, %s3109_s30 }
 0x451   : > { %1723 = vrot.lane.b32.xlu0 %v3358_v33, %s3109_s30 }
 0x486   : > { %v1391_v20 = vpop.xlane.xlu1 %1390 }
 0x487   : > { %3011 = vrcp.f32 %v1391_v20  ;;  %v1394_v45 = vpop.xlane.xlu0 %1393 }
 0x48a   : > { %v1676_v54 = vpop.permute.xlu1 %1675 }
 0x48b   : > { %v1388_v46 = vpop.xlane.xlu0 %1387 }
 0x48c   : > { %3013 = vrcp.f32 %v1388_v46 }
 0x48d   : > { %3015 = vrcp.f32 %v1394_v45 }
 0x48f   : > { %v1628_v52 = vpop.permute.xlu0 %1627 }
 0x490   : > { %v1633_v7 = vsel %vm1439_vm4, %v1628_v52, 0 }
 0x494   : > { %v3012_v47 = vpop.eup %3011 }
 0x495   : > { %v1419_v25 = vmul.f32 %v3012_v47, %v2996_v58 }
 0x497   : > { %v1427_v50 = vpack.c.bf16 %v1419_v25, %v1419_v25 }
 0x499   : > { %v3014_v51 = vpop.eup %3013  ;;  %2849 = vmatmul.mubr.msk.bf16.vlgmr.msra.gmra.mxu1 %vm1337_vm3, %v1427_v50 }
 0x49a   : > { %2859 = vmatpush3.bf16.msra.mxu1 %v1585_v14  ;;  %v1418_v37 = vmul.f32 %v3014_v51, %v3000_v44  ;;  %2860 = vmatprep.mubr.msk.bf16.mxu1 %vm3106_vm1, %v3105_v48  ;;  %v3016_v29 = vpop.eup %3015  ;;  %v1681_v44 = vsel %vm1439_vm4, %v1676_v54, 0 }
 0x49b   : > { %2870 = vmatprep.subr.bf16.mxu1 %v3105_v48  ;;  %v1420_v28 = vmul.f32 %v3016_v29, %v3483_v34 }
 0x49c   : > { %v1426_v33 = vpack.c.bf16 %v1418_v37, %v1418_v37 }
 0x49d   : > { %v1428_v53 = vpack.c.bf16 %v1420_v28, %v1420_v28 }
 0x49e   : > { %2843 = vmatmul.mubr.msk.bf16.vlgmr.msra.gmra.mxu0 %vm1337_vm3, %v1426_v33 }
 0x49f   : > { %2853 = vmatpush3.bf16.msra.mxu0 %v1537_v16  ;;  %2854 = vmatprep.mubr.msk.bf16.mxu0 %vm3106_vm1, %v3105_v48 }
 0x4a0   : > { %2864 = vmatprep.subr.bf16.mxu0 %v3105_v48 }
 0x4a6   : > { %2855 = vmatmul.mubr.msk.bf16.vlgmr.msra.gmra.mxu0 %vm1337_vm3, %v1428_v53 }
 0x4a7   : > { %2865 = vmatpush3.bf16.msra.mxu0 %v1633_v7  ;;  %2866 = vmatprep.mubr.msk.bf16.mxu0 %vm3106_vm1, %v3105_v48 }
 0x4a8   : > { %2876 = vmatprep.subr.bf16.mxu0 %v3105_v48 }
 0x4bb   : > { %v1397_v55 = vpop.xlane.xlu1 %1396 }
 0x4bc   : > { %3017 = vrcp.f32 %v1397_v55 }
 0x4bf   : > { %v1403_v56 = vpop.xlane.xlu1 %1402 }
 0x4c0   : > { %3019 = vrcp.f32 %v1403_v56  ;;  %v1400_v57 = vpop.xlane.xlu0 %1399 }
 0x4c1   : > { %3021 = vrcp.f32 %v1400_v57 }
 0x4c3   : > { %v1409_v35 = vpop.xlane.xlu1 %1408 }
 0x4c4   : > { %v1406_v32 = vpop.xlane.xlu0 %1405 }
 0x4c5   : > { %3023 = vrcp.f32 %v1406_v32 }
 0x4c6   : > { %3025 = vrcp.f32 %v1409_v35 }
 0x4c7   : > { %v1772_v49 = vpop.permute.xlu1 %1771 }
 0x4c8   : > { %v1724_v62 = vpop.permute.xlu0 %1723  ;;  %v1777_v4 = vsel %vm1439_vm4, %v1772_v49, 0 }
 0x4c9   : > { %v3018_v58 = vpop.eup %3017  ;;  %v1729_v6 = vsel %vm1439_vm4, %v1724_v62, 0 }
 0x4ca   : > { %v1421_v34 = vmul.f32 %v3018_v58, %v3002_v30 }
 0x4cc   : > { %v1429_v59 = vpack.c.bf16 %v1421_v34, %v1421_v34 }
 0x4cd   : > { %v3020_v38 = vpop.eup %3019 }
 0x4ce   : > { %v3022_v60 = vpop.eup %3021  ;;  %2861 = vmatmul.mubr.msk.bf16.vlgmr.msra.gmra.mxu1 %vm1337_vm3, %v1429_v59  ;;  %v1423_v63 = vmul.f32 %v3020_v38, %v3501_v27 }
 0x4cf   : > { %2871 = vmatpush3.bf16.msra.mxu1 %v1681_v44  ;;  %v1422_v61 = vmul.f32 %v3022_v60, %v3499_v21  ;;  %2872 = vmatprep.mubr.msk.bf16.mxu1 %vm3106_vm1, %v3105_v48 }
 0x4d0   : > { %2882 = vmatprep.subr.bf16.mxu1 %v3105_v48  ;;  %v1431_v10 = vpack.c.bf16 %v1423_v63, %v1423_v63 }
 0x4d1   : > { %v1430_v3 = vpack.c.bf16 %v1422_v61, %v1422_v61 }
 0x4d2   : > { %v3024_v39 = vpop.eup %3023 }
 0x4d3   : > { %2867 = vmatmul.mubr.msk.bf16.vlgmr.msra.gmra.mxu0 %vm1337_vm3, %v1430_v3  ;;  %v3026_v15 = vpop.eup %3025  ;;  %v1424_v17 = vmul.f32 %v3024_v39, %v3507_v40 }
 0x4d4   : > { %2877 = vmatpush3.bf16.msra.mxu0 %v1729_v6  ;;  %2878 = vmatprep.mubr.msk.bf16.mxu0 %vm3106_vm1, %v3105_v48  ;;  %v1425_v22 = vmul.f32 %v3026_v15, %v3509_v41 }
 0x4d5   : > { %v1432_v23 = vpack.c.bf16 %v1424_v17, %v1424_v17  ;;  %2888 = vmatprep.subr.bf16.mxu0 %v2978_v36 }
 0x4d6   : > { %2873 = vmatmul.mubr.msk.bf16.vlgmr.msra.gmra.mxu1 %vm1337_vm3, %v1431_v10  ;;  %v1433_v24 = vpack.c.bf16 %v1425_v22, %v1425_v22 }
 0x4d7   : > { %2883 = vmatpush3.bf16.msra.mxu1 %v1777_v4  ;;  %2884 = vmatprep.mubr.msk.bf16.mxu1 %vm3106_vm1, %v3105_v48 }
 0x4db   : > { %2879 = vmatmul.mubr.msk.bf16.vlgmr.msra.gmra.mxu0 %vm1337_vm3, %v1432_v23 }
 0x4dc   : > { %2889 = vmatpush3.bf16.msra.mxu0 %v2978_v36 }
 0x4de   : > { %2885 = vmatmul.mubr.msk.bf16.vlgmr.msra.gmra.mxu1 %vm1337_vm3, %v1433_v24 }
 0x559   : > { %v1525_v26 = vpop.f32.mrf.mxu1 }
 0x55b   : > { %v2850_v30 = vpop.f32.mrf.mxu1 }
 0x55d   : > { %v1528_v18 = vpop.f32.mrf.mxu1 }
 0x55e   : > { %v1477_v48 = vpop.f32.mrf.mxu0 }
 0x55f   : > { %v2711_v21 = vpack.c.bf16 %v1525_v26, %v1477_v48  ;;  %v2851_v27 = vpop.f32.mrf.mxu1 }
 0x560   : > { %v2844_v11 = vpop.f32.mrf.mxu0 }
 0x561   : > { %2890 = vmatprep.mubr.msk.bf16.mxu0 %vm841_vm2, %v2711_v21 }
 0x562   : > { %v1480_v31 = vpop.f32.mrf.mxu0 }
 0x564   : > { %v2845_v40 = vpop.f32.mrf.mxu0 }
 0x566   : > { %v1573_v41 = vpop.f32.mrf.mxu0 }
 0x568   : > { %v2856_v42 = vpop.f32.mrf.mxu0 }
 0x56a   : > { %v1576_v19 = vpop.f32.mrf.mxu0 }
 0x56c   : > { %v2857_v43 = vpop.f32.mrf.mxu0 }
 0x58e   : > { %v1621_v20 = vpop.f32.mrf.mxu1 }
 0x58f   : > { %v2712_v45 = vpack.c.bf16 %v1621_v20, %v1573_v41 }
 0x590   : > { %v2862_v46 = vpop.f32.mrf.mxu1 }
 0x591   : > { %2891 = vmatmul.mubr.msk.bf16.vlgmr.msra.gmra.mxu0 %vm841_vm2, %v2712_v45 }
 0x592   : > { %v1624_v47 = vpop.f32.mrf.mxu1 }
 0x593   : > { %v1669_v25 = vpop.f32.mrf.mxu0 }
 0x594   : > { %v2863_v50 = vpop.f32.mrf.mxu1 }
 0x595   : > { %v2868_v51 = vpop.f32.mrf.mxu0 }
 0x596   : > { %v1717_v14 = vpop.f32.mrf.mxu1 }
 0x597   : > { %v1672_v37 = vpop.f32.mrf.mxu0  ;;  %v2713_v33 = vpack.c.bf16 %v1717_v14, %v1669_v25 }
 0x598   : > { %v2874_v29 = vpop.f32.mrf.mxu1 }
 0x599   : > { %v2869_v16 = vpop.f32.mrf.mxu0  ;;  %2894 = vmatprep.mubr.msk.bf16.mxu0 %vm841_vm2, %v2713_v33 }
 0x59a   : > { %v1720_v28 = vpop.f32.mrf.mxu1 }
 0x59b   : > { %v1765_v52 = vpop.f32.mrf.mxu0 }
 0x59c   : > { %v2875_v53 = vpop.f32.mrf.mxu1 }
 0x59d   : > { %v2880_v7 = vpop.f32.mrf.mxu0 }
 0x59e   : > { %v1813_v54 = vpop.f32.mrf.mxu1 }
 0x59f   : > { %v1768_v55 = vpop.f32.mrf.mxu0  ;;  %v2714_v56 = vpack.c.bf16 %v1813_v54, %v1765_v52 }
 0x5a0   : > { %v2886_v57 = vpop.f32.mrf.mxu1 }
 0x5a1   : > { %v2881_v32 = vpop.f32.mrf.mxu0  ;;  %2895 = vmatmul.mubr.msk.bf16.gmra.mxu0 %vm841_vm2, %v2714_v56 }
 0x5a2   : > { %v1816_v35 = vpop.f32.mrf.mxu1 }
 0x5a4   : > { %v2887_v58 = vpop.f32.mrf.mxu1 }
 0x651   : > { %v2892_v34 = vpop.f32.mrf.mxu0 }
 0x653   : > { %v1899_v59 = vpop.f32.mrf.mxu0 }
 0x655   : > { %v2893_v38 = vpop.f32.mrf.mxu0 }
 0x657   : > { %v1902_v60 = vpop.f32.mrf.mxu0 }
 0x661   : > { %v2896_v44 = vpop.f32.mrf.mxu0 }
 0x663   : > { %v1915_v61 = vpop.f32.mrf.mxu0  ;;  %1933 = sbr.rel (%p2673_p8) target bundleno = 1649 (0x671), region = 80 }
 0x665   : > { %v2897_v62 = vpop.f32.mrf.mxu0 }
 0x667   : > { %v1918_v63 = vpop.f32.mrf.mxu0 }
 0x668   : > { %v2674_v3 = vld [vmem:[%s3813_s7] ss:$0 sm:$0xff] }
 0x669   : > { %v1941_v39 = vadd.f32 %v2674_v3, %v3228_v0  ;;  %v1942_v49 = vadd.f32 %v2674_v3, %v3232_v2  ;;  %v1943_v6 = vadd.f32 %v2674_v3, %v3230_v1  ;;  %v1944_v10 = vadd.f32 %v2674_v3, %v3238_v5 }
 0x66a   : > { %v1945_v15 = vadd.f32 %v2674_v3, %v3244_v8  ;;  %v1946_v17 = vadd.f32 %v2674_v3, %v3246_v9  ;;  %v1947_v4 = vadd.f32 %v2674_v3, %v3252_v12  ;;  %v1948_v22 = vadd.f32 %v2674_v3, %v3254_v13 }
 0x66b   : > { %v1949_v23 = vadd.f32 %v1941_v39, %v1899_v59  ;;  %v1950_v24 = vadd.f32 %v1942_v49, %v1902_v60  ;;  %v1951_v36 = vadd.f32 %v2892_v34, %v1943_v6  ;;  %v1952_v26 = vadd.f32 %v2893_v38, %v1944_v10 }
 0x66c   : > { %v1953_v30 = vadd.f32 %v1945_v15, %v1915_v61  ;;  %v1954_v0 = vadd.f32 %v1946_v17, %v1918_v63  ;;  %v1955_v18 = vadd.f32 %v2896_v44, %v1947_v4  ;;  %v1956_v2 = vadd.f32 %v2897_v62, %v1948_v22 }
 0x66d   : > { %1957 = vst.msk [vmem:[#allocation2] sm:$0xff] %vm573_vm0, %v1949_v23  ;;  %1958 = vst.msk [vmem:[#allocation2 + $0x8] sm:$0xff] %vm573_vm0, %v1950_v24 }
 0x66e   : > { %1959 = vst.msk [vmem:[#allocation2 + $0x10] sm:$0xff] %vm573_vm0, %v1951_v36  ;;  %1960 = vst.msk [vmem:[#allocation2 + $0x18] sm:$0xff] %vm573_vm0, %v1952_v26 }
 0x66f   : > { %1961 = vst.msk [vmem:[#allocation2 + $0x20] sm:$0xff] %vm573_vm0, %v1953_v30  ;;  %1962 = vst.msk [vmem:[#allocation2 + $0x28] sm:$0xff] %vm573_vm0, %v1954_v0 }
 0x670   : > { %1963 = vst.msk [vmem:[#allocation2 + $0x30] sm:$0xff] %vm573_vm0, %v1955_v18  ;;  %1964 = vst.msk [vmem:[#allocation2 + $0x38] sm:$0xff] %vm573_vm0, %v1956_v2 }
 0x671 PF: > { %p2675_p9 = scmp.le.s32.totalorder %s3087_s29, 0 }
 0x673   : > { %1968 = sbr.rel (%p2675_p9) target bundleno = 1663 (0x67f), region = 84 }
 0x678   : > { %v1969_v1 = vld [vmem:[#allocation2] sm:$0xff]  ;;  %v1970_v5 = vld [vmem:[#allocation2 + $0x8] sm:$0xff]  ;;  %v1971_v8 = vld [vmem:[#allocation2 + $0x10] sm:$0xff] }
 0x679   : > { %v1977_v9 = vadd.f32 %v1969_v1, %v1899_v59  ;;  %v1978_v12 = vadd.f32 %v1970_v5, %v1902_v60  ;;  %v1979_v13 = vadd.f32 %v2892_v34, %v1971_v8  ;;  %v1972_v48 = vld [vmem:[#allocation2 + $0x18] sm:$0xff]  ;;  %v1973_v21 = vld [vmem:[#allocation2 + $0x20] sm:$0xff]  ;;  %v1974_v27 = vld [vmem:[#allocation2 + $0x28] sm:$0xff] }
 0x67a   : > { %v1980_v11 = vadd.f32 %v2893_v38, %v1972_v48  ;;  %v1981_v31 = vadd.f32 %v1973_v21, %v1915_v61  ;;  %v1982_v40 = vadd.f32 %v1974_v27, %v1918_v63  ;;  %v1975_v41 = vld [vmem:[#allocation2 + $0x30] sm:$0xff]  ;;  %v1976_v42 = vld [vmem:[#allocation2 + $0x38] sm:$0xff] }
 0x67b   : > { %1985 = vst.msk [vmem:[#allocation2] sm:$0xff] %vm573_vm0, %v1977_v9  ;;  %1986 = vst.msk [vmem:[#allocation2 + $0x8] sm:$0xff] %vm573_vm0, %v1978_v12  ;;  %v1983_v19 = vadd.f32 %v2896_v44, %v1975_v41  ;;  %v1984_v43 = vadd.f32 %v2897_v62, %v1976_v42 }
 0x67c   : > { %1987 = vst.msk [vmem:[#allocation2 + $0x10] sm:$0xff] %vm573_vm0, %v1979_v13  ;;  %1988 = vst.msk [vmem:[#allocation2 + $0x18] sm:$0xff] %vm573_vm0, %v1980_v11 }
 0x67d   : > { %1989 = vst.msk [vmem:[#allocation2 + $0x20] sm:$0xff] %vm573_vm0, %v1981_v31  ;;  %1990 = vst.msk [vmem:[#allocation2 + $0x28] sm:$0xff] %vm573_vm0, %v1982_v40 }
 0x67e   : > { %1991 = vst.msk [vmem:[#allocation2 + $0x30] sm:$0xff] %vm573_vm0, %v1983_v19  ;;  %1992 = vst.msk [vmem:[#allocation2 + $0x38] sm:$0xff] %vm573_vm0, %v1984_v43 }
 0x67f PF: > { %p2676_p10 = scmp.ne.s32.totalorder %s3087_s29, 1 }
 0x681   : > { %1996 = sbr.rel (%p2676_p10) target bundleno = 2435 (0x983), region = 88 }
 0x686   : > { %v3592_v20 = vld [vmem:[#allocation2] sm:$0xff]  ;;  %v3594_v45 = vld [vmem:[#allocation2 + $0x10] sm:$0xff]  ;;  %v3596_v46 = vld [vmem:[#allocation2 + $0x8] sm:$0xff]  ;;  %vm2400_vm5 = vcmask 523264  }
 0x687   : > { %v2021_v47 = vsel %vm573_vm0, %v3592_v20, 0.0  ;;  %v2027_v25 = vsel %vm573_vm0, %v3594_v45, 0.0  ;;  %v3602_v50 = vld [vmem:[#allocation2 + $0x18] sm:$0xff]  ;;  %v2024_v51 = vsel %vm573_vm0, %v3596_v46, 0.0  ;;  %v3606_v14 = vld [vmem:[#allocation2 + $0x20] sm:$0xff]  ;;  %v3610_v33 = vld [vmem:[#allocation2 + $0x28] sm:$0xff] }
 0x688   : > { %2022 = vadd.xlane.f32.xlu0 %v2021_v47  ;;  %2028 = vadd.xlane.f32.xlu1 %v2027_v25  ;;  %v2030_v37 = vsel %vm573_vm0, %v3602_v50, 0.0  ;;  %v2033_v29 = vsel %vm573_vm0, %v3606_v14, 0.0  ;;  %v2036_v16 = vsel %vm573_vm0, %v3610_v33, 0.0  ;;  %v3616_v28 = vld [vmem:[#allocation2 + $0x30] sm:$0xff]  ;;  %v3618_v52 = vld [vmem:[#allocation2 + $0x38] sm:$0xff]  ;;  %v3027_v27 = vld [vmem:[%s3816_s10 + $0x8] sm:$0xff]  }
 0x689   : > { %v2039_v53 = vsel %vm573_vm0, %v3616_v28, 0.0  ;;  %v2042_v7 = vsel %vm573_vm0, %v3618_v52, 0.0  ;;  %v3028_v11 = vld [vmem:[%s3816_s10] sm:$0xff]   ;;  %2898 = vmatprep.subr.bf16.mxu0 %v3027_v27 }
 0x68a   : > { %2899 = vmatpush3.bf16.msra.mxu0 %v3027_v27 }
 0x68b   : > { %2900 = vmatprep.subr.bf16.mxu0 %v3028_v11 }
 0x68c   : > { %2025 = vadd.xlane.f32.xlu0 %v2024_v51  ;;  %2031 = vadd.xlane.f32.xlu1 %v2030_v37 }
 0x68e   : > { %2901 = vmatpush3.bf16.msra.mxu0 %v3028_v11 }
 0x690   : > { %2034 = vadd.xlane.f32.xlu0 %v2033_v29  ;;  %2037 = vadd.xlane.f32.xlu1 %v2036_v16 }
 0x694   : > { %2040 = vadd.xlane.f32.xlu0 %v2039_v53  ;;  %2043 = vadd.xlane.f32.xlu1 %v2042_v7 }
 0x711   : > { %v2023_v54 = vpop.xlane.xlu0 %2022  ;;  %v2029_v55 = vpop.xlane.xlu1 %2028 }
 0x712   : > { %v2045_v56 = vmul.f32 0.03125, %v2023_v54  ;;  %v2047_v57 = vmul.f32 0.03125, %v2029_v55 }
 0x714   : > { %v3625_v32 = vsub.f32 %v3592_v20, %v2045_v56  ;;  %v3628_v35 = vsub.f32 %v3594_v45, %v2047_v57 }
 0x715   : > { %v2026_v58 = vpop.xlane.xlu0 %2025  ;;  %v2032_v34 = vpop.xlane.xlu1 %2031 }
 0x716   : > { %v2046_v59 = vmul.f32 0.03125, %v2026_v58  ;;  %v2048_v38 = vmul.f32 0.03125, %v2032_v34  ;;  %v2061_v60 = vmul.f32 %v3625_v32, %v3625_v32  ;;  %v2063_v44 = vmul.f32 %v3628_v35, %v3628_v35 }
 0x718   : > { %v3635_v61 = vsub.f32 %v3596_v46, %v2046_v59  ;;  %v3638_v62 = vsub.f32 %v3602_v50, %v2048_v38  ;;  %v2069_v63 = vsel %vm573_vm0, %v2061_v60, 0.0  ;;  %v2075_v49 = vsel %vm573_vm0, %v2063_v44, 0.0 }
 0x719   : > { %2070 = vadd.xlane.f32.xlu0 %v2069_v63  ;;  %v2035_v3 = vpop.xlane.xlu0 %2034  ;;  %v2038_v39 = vpop.xlane.xlu1 %2037 }
 0x71a   : > { %v2049_v6 = vmul.f32 0.03125, %v2035_v3  ;;  %v2050_v10 = vmul.f32 0.03125, %v2038_v39  ;;  %v2062_v15 = vmul.f32 %v3635_v61, %v3635_v61  ;;  %v2064_v17 = vmul.f32 %v3638_v62, %v3638_v62  ;;  %v2677_v39 = vld [vmem:[%s3814_s8] ss:$0 sm:$0xff] }
 0x71c   : > { %v3647_v4 = vsub.f32 %v3606_v14, %v2049_v6  ;;  %v3650_v22 = vsub.f32 %v3610_v33, %v2050_v10  ;;  %v2072_v23 = vsel %vm573_vm0, %v2062_v15, 0.0  ;;  %v2078_v26 = vsel %vm573_vm0, %v2064_v17, 0.0  ;;  %v2678_v17 = vld [vmem:[%s3815_s9] ss:$0 sm:$0xff] }
 0x71d   : > { %2076 = vadd.xlane.f32.xlu0 %v2075_v49  ;;  %2073 = vadd.xlane.f32.xlu1 %v2072_v23  ;;  %v2041_v24 = vpop.xlane.xlu0 %2040  ;;  %v2044_v36 = vpop.xlane.xlu1 %2043 }
 0x71e   : > { %v2051_v30 = vmul.f32 0.03125, %v2041_v24  ;;  %v2052_v0 = vmul.f32 0.03125, %v2044_v36  ;;  %v2065_v18 = vmul.f32 %v3647_v4, %v3647_v4  ;;  %v2066_v2 = vmul.f32 %v3650_v22, %v3650_v22 }
 0x720   : > { %v3659_v1 = vsub.f32 %v3616_v28, %v2051_v30  ;;  %v3662_v5 = vsub.f32 %v3618_v52, %v2052_v0  ;;  %v2081_v8 = vsel %vm573_vm0, %v2065_v18, 0.0  ;;  %v2084_v9 = vsel %vm573_vm0, %v2066_v2, 0.0 }
 0x721   : > { %2079 = vadd.xlane.f32.xlu1 %v2078_v26  ;;  %2082 = vadd.xlane.f32.xlu0 %v2081_v8 }
 0x722   : > { %v2067_v12 = vmul.f32 %v3659_v1, %v3659_v1  ;;  %v2068_v13 = vmul.f32 %v3662_v5, %v3662_v5 }
 0x724   : > { %v2087_v48 = vsel %vm573_vm0, %v2067_v12, 0.0  ;;  %v2090_v21 = vsel %vm573_vm0, %v2068_v13, 0.0 }
 0x725   : > { %2085 = vadd.xlane.f32.xlu1 %v2084_v9  ;;  %2088 = vadd.xlane.f32.xlu0 %v2087_v48 }
 0x729   : > { %2091 = vadd.xlane.f32.xlu1 %v2090_v21 }
 0x7a2   : > { %v2071_v31 = vpop.xlane.xlu0 %2070 }
 0x7a3   : > { %v2093_v40 = vmul.f32 0.03125, %v2071_v31 }
 0x7a5   : > { %v2101_v41 = vadd.f32 1e-05, %v2093_v40 }
 0x7a6   : > { %v2074_v42 = vpop.xlane.xlu1 %2073  ;;  %v2077_v19 = vpop.xlane.xlu0 %2076 }
 0x7a7   : > { %3033 = vrsqrt.f32 %v2101_v41  ;;  %v2094_v43 = vmul.f32 0.03125, %v2074_v42  ;;  %v2095_v47 = vmul.f32 0.03125, %v2077_v19 }
 0x7a9   : > { %v2102_v25 = vadd.f32 1e-05, %v2094_v43  ;;  %v2103_v51 = vadd.f32 1e-05, %v2095_v47 }
 0x7aa   : > { %v2080_v37 = vpop.xlane.xlu1 %2079  ;;  %v2083_v29 = vpop.xlane.xlu0 %2082 }
 0x7ab   : > { %3035 = vrsqrt.f32 %v2102_v25  ;;  %v2096_v16 = vmul.f32 0.03125, %v2080_v37  ;;  %v2097_v53 = vmul.f32 0.03125, %v2083_v29  ;;  %v3032_v37 = vld [vmem:[%s3818_s12] sm:$0xff]  }
 0x7ac   : > { %3037 = vrsqrt.f32 %v2103_v51  ;;  %v3031_v51 = vld [vmem:[%s3818_s12 + $0x8] sm:$0xff]   ;;  %v2679_v29 = vld [vmem:[%s3817_s11] ss:$0 sm:$0xff] }
 0x7ad   : > { %v2104_v7 = vadd.f32 1e-05, %v2096_v16  ;;  %v2105_v54 = vadd.f32 1e-05, %v2097_v53 }
 0x7ae   : > { %v2086_v55 = vpop.xlane.xlu1 %2085  ;;  %v2089_v56 = vpop.xlane.xlu0 %2088 }
 0x7af   : > { %3039 = vrsqrt.f32 %v2104_v7  ;;  %v2098_v57 = vmul.f32 0.03125, %v2086_v55  ;;  %v2099_v58 = vmul.f32 0.03125, %v2089_v56 }
 0x7b0   : > { %3041 = vrsqrt.f32 %v2105_v54 }
 0x7b1   : > { %v2106_v34 = vadd.f32 1e-05, %v2098_v57  ;;  %v2107_v59 = vadd.f32 1e-05, %v2099_v58 }
 0x7b2   : > { %v2092_v38 = vpop.xlane.xlu1 %2091 }
 0x7b3   : > { %3043 = vrsqrt.f32 %v2106_v34  ;;  %v2100_v60 = vmul.f32 0.03125, %v2092_v38 }
 0x7b4   : > { %v3034_v44 = vpop.eup %3033  ;;  %3045 = vrsqrt.f32 %v2107_v59 }
 0x7b5   : > { %v2108_v63 = vadd.f32 1e-05, %v2100_v60  ;;  %v2117_v3 = vmul.f32 %v3034_v44, %v3625_v32 }
 0x7b7   : > { %3047 = vrsqrt.f32 %v2108_v63  ;;  %v2131_v15 = vmul.f32 %v2677_v39, %v2117_v3 }
 0x7b8   : > { %v3036_v49 = vpop.eup %3035 }
 0x7b9   : > { %v3038_v6 = vpop.eup %3037  ;;  %v2118_v10 = vmul.f32 %v3036_v49, %v3635_v61  ;;  %v2145_v32 = vadd.f32 %v2678_v17, %v2131_v15 }
 0x7ba   : > { %v2119_v23 = vmul.f32 %v3038_v6, %v3628_v35 }
 0x7bb   : > { %v2132_v24 = vmul.f32 %v2677_v39, %v2118_v10 }
 0x7bc   : > { %v3040_v36 = vpop.eup %3039  ;;  %v2133_v18 = vmul.f32 %v2677_v39, %v2119_v23 }
 0x7bd   : > { %v3042_v26 = vpop.eup %3041  ;;  %v2146_v30 = vadd.f32 %v2678_v17, %v2132_v24  ;;  %v2120_v0 = vmul.f32 %v3040_v36, %v3638_v62 }
 0x7be   : > { %v2121_v2 = vmul.f32 %v3042_v26, %v3647_v4  ;;  %v2147_v13 = vadd.f32 %v2678_v17, %v2133_v18 }
 0x7bf   : > { %v2715_v8 = vpack.c.bf16 %v2146_v30, %v2145_v32  ;;  %v2134_v9 = vmul.f32 %v2677_v39, %v2120_v0 }
 0x7c0   : > { %v3044_v61 = vpop.eup %3043  ;;  %v2135_v21 = vmul.f32 %v2677_v39, %v2121_v2 }
 0x7c1   : > { %v3046_v12 = vpop.eup %3045  ;;  %2902 = vmatprep.mubr.msk.bf16.mxu0 %vm573_vm0, %v2715_v8  ;;  %v2148_v48 = vadd.f32 %v2678_v17, %v2134_v9  ;;  %v2122_v35 = vmul.f32 %v3044_v61, %v3650_v22 }
 0x7c2   : > { %v2123_v27 = vmul.f32 %v3046_v12, %v3659_v1  ;;  %v2149_v62 = vadd.f32 %v2678_v17, %v2135_v21  ;;  %v3029_v1 = vld [vmem:[%s3818_s12 + $0x18] sm:$0xff]  }
 0x7c3   : > { %v2716_v11 = vpack.c.bf16 %v2148_v48, %v2147_v13  ;;  %v2136_v31 = vmul.f32 %v2677_v39, %v2122_v35  ;;  %2910 = vmatprep.subr.bf16.mxu1 %v3029_v1 }
 0x7c4   : > { %v3048_v40 = vpop.eup %3047  ;;  %v2137_v42 = vmul.f32 %v2677_v39, %v2123_v27  ;;  %2911 = vmatpush3.bf16.msra.mxu1 %v3029_v1 }
 0x7c5   : > { %2903 = vmatmul.mubr.msk.bf16.vlgmr.msra.gmra.mxu0 %vm573_vm0, %v2716_v11  ;;  %v2150_v4 = vadd.f32 %v2678_v17, %v2136_v31  ;;  %v2124_v41 = vmul.f32 %v3048_v40, %v3662_v5  ;;  %v3030_v5 = vld [vmem:[%s3818_s12 + $0x10] sm:$0xff]  }
 0x7c6   : > { %v2151_v47 = vadd.f32 %v2678_v17, %v2137_v42  ;;  %2912 = vmatprep.subr.bf16.mxu1 %v3030_v5 }
 0x7c7   : > { %v2717_v19 = vpack.c.bf16 %v2150_v4, %v2149_v62  ;;  %v2138_v43 = vmul.f32 %v2677_v39, %v2124_v41 }
 0x7c8   : > { %2913 = vmatpush3.bf16.msra.mxu1 %v3030_v5 }
 0x7c9   : > { %2906 = vmatprep.mubr.msk.bf16.mxu0 %vm573_vm0, %v2717_v19  ;;  %v2152_v25 = vadd.f32 %v2678_v17, %v2138_v43  ;;  %2914 = vmatprep.subr.bf16.mxu1 %v3031_v51 }
 0x7cb   : > { %v2718_v22 = vpack.c.bf16 %v2152_v25, %v2151_v47 }
 0x7cc   : > { %2915 = vmatpush3.bf16.msra.mxu1 %v3031_v51 }
 0x7cd   : > { %2907 = vmatmul.mubr.msk.bf16.gmra.mxu0 %vm573_vm0, %v2718_v22  ;;  %2916 = vmatprep.subr.bf16.mxu1 %v3032_v37 }
 0x7d0   : > { %2917 = vmatpush3.bf16.msra.mxu1 %v3032_v37 }
 0x885   : > { %v2904_v16 = vpop.f32.mrf.mxu0 }
 0x886   : > { %v3711_v53 = vadd.f32 %v2904_v16, %v2679_v29 }
 0x887   : > { %v2245_v7 = vpop.f32.mrf.mxu0 }
 0x888   : > { %v2278_v54 = vmul.f32 %v3711_v53, %v3711_v53  ;;  %v3715_v55 = vadd.f32 %v2679_v29, %v2245_v7 }
 0x889   : > { %v2905_v56 = vpop.f32.mrf.mxu0 }
 0x88a   : > { %v2286_v57 = vmul.f32 %v2278_v54, %v3711_v53  ;;  %v2276_v58 = vmul.f32 %v3715_v55, %v3715_v55  ;;  %v3720_v34 = vadd.f32 %v2905_v56, %v2679_v29 }
 0x88b   : > { %v2248_v59 = vpop.f32.mrf.mxu0 }
 0x88c   : > { %v2294_v38 = vmul.f32 0.044715, %v2286_v57  ;;  %v2284_v60 = vmul.f32 %v2276_v58, %v3715_v55  ;;  %v2279_v44 = vmul.f32 %v3720_v34, %v3720_v34  ;;  %v3725_v63 = vadd.f32 %v2679_v29, %v2248_v59 }
 0x88d   : > { %v2908_v3 = vpop.f32.mrf.mxu0 }
 0x88e   : > { %v2302_v39 = vadd.f32 %v2294_v38, %v3711_v53  ;;  %v2292_v49 = vmul.f32 0.044715, %v2284_v60  ;;  %v2287_v6 = vmul.f32 %v2279_v44, %v3720_v34  ;;  %v2277_v10 = vmul.f32 %v3725_v63, %v3725_v63 }
 0x88f   : > { %v3731_v15 = vadd.f32 %v2908_v3, %v2679_v29  ;;  %v2261_v17 = vpop.f32.mrf.mxu0 }
 0x890   : > { %v2310_v23 = vmul.f32 0.7978846, %v2302_v39  ;;  %v2300_v24 = vadd.f32 %v2292_v49, %v3715_v55  ;;  %v2295_v36 = vmul.f32 0.044715, %v2287_v6  ;;  %v2285_v26 = vmul.f32 %v2277_v10, %v3725_v63 }
 0x891   : > { %v2282_v32 = vmul.f32 %v3731_v15, %v3731_v15  ;;  %v3737_v30 = vadd.f32 %v2679_v29, %v2261_v17  ;;  %v2909_v0 = vpop.f32.mrf.mxu0 }
 0x892   : > { %v2308_v18 = vmul.f32 0.7978846, %v2300_v24  ;;  %v2303_v2 = vadd.f32 %v2295_v36, %v3720_v34  ;;  %v2293_v8 = vmul.f32 0.044715, %v2285_v26  ;;  %3049 = vtanh.f32 %v2310_v23 }
 0x893   : > { %v2290_v9 = vmul.f32 %v2282_v32, %v3731_v15  ;;  %v2280_v61 = vmul.f32 %v3737_v30, %v3737_v30  ;;  %v3743_v12 = vadd.f32 %v2909_v0, %v2679_v29  ;;  %v2264_v13 = vpop.f32.mrf.mxu0 }
 0x894   : > { %v2311_v48 = vmul.f32 0.7978846, %v2303_v2  ;;  %v2301_v35 = vadd.f32 %v2293_v8, %v3725_v63  ;;  %v2265_v21 = vadd.f32 %v2679_v29, %v2264_v13  ;;  %3051 = vtanh.f32 %v2308_v18 }
 0x895   : > { %v2298_v27 = vmul.f32 0.044715, %v2290_v9  ;;  %v2288_v11 = vmul.f32 %v2280_v61, %v3737_v30  ;;  %v2283_v31 = vmul.f32 %v3743_v12, %v3743_v12 }
 0x896   : > { %3053 = vtanh.f32 %v2311_v48  ;;  %v2309_v40 = vmul.f32 0.7978846, %v2301_v35  ;;  %v2281_v62 = vmul.f32 %v2265_v21, %v2265_v21 }
 0x897   : > { %v2306_v4 = vadd.f32 %v2298_v27, %v3731_v15  ;;  %v2296_v41 = vmul.f32 0.044715, %v2288_v11  ;;  %v2291_v42 = vmul.f32 %v2283_v31, %v3743_v12  ;;  %v2702_v31 = vld [vmem:[%s3819_s13] ss:$0 sm:$0xff] }
 0x898   : > { %v2289_v19 = vmul.f32 %v2281_v62, %v2265_v21  ;;  %3055 = vtanh.f32 %v2309_v40 }
 0x899   : > { %v2314_v43 = vmul.f32 0.7978846, %v2306_v4  ;;  %v2304_v47 = vadd.f32 %v2296_v41, %v3737_v30  ;;  %v2299_v25 = vmul.f32 0.044715, %v2291_v42 }
 0x89a   : > { %v2297_v22 = vmul.f32 0.044715, %v2289_v19 }
 0x89b   : > { %3057 = vtanh.f32 %v2314_v43  ;;  %v2312_v1 = vmul.f32 0.7978846, %v2304_v47  ;;  %v2307_v5 = vadd.f32 %v2299_v25, %v3743_v12 }
 0x89c   : > { %v2305_v51 = vadd.f32 %v2297_v22, %v2265_v21 }
 0x89d   : > { %3059 = vtanh.f32 %v2312_v1  ;;  %v2315_v37 = vmul.f32 0.7978846, %v2307_v5 }
 0x89e   : > { %v2313_v29 = vmul.f32 0.7978846, %v2305_v51 }
 0x89f   : > { %3061 = vtanh.f32 %v2315_v37  ;;  %v3050_v16 = vpop.eup %3049 }
 0x8a0   : > { %3063 = vtanh.f32 %v2313_v29  ;;  %v2326_v57 = vadd.f32 1.0, %v3050_v16 }
 0x8a1   : > { %v3052_v7 = vpop.eup %3051 }
 0x8a2   : > { %v2324_v54 = vadd.f32 1.0, %v3052_v7  ;;  %v2334_v3 = vmul.f32 0.5, %v2326_v57 }
 0x8a3   : > { %v3054_v56 = vpop.eup %3053 }
 0x8a4   : > { %v2327_v58 = vadd.f32 1.0, %v3054_v56  ;;  %v2332_v44 = vmul.f32 0.5, %v2324_v54  ;;  %v2342_v24 = vmul.f32 %v2334_v3, %v3711_v53 }
 0x8a5   : > { %v3056_v59 = vpop.eup %3055 }
 0x8a6   : > { %v2335_v38 = vmul.f32 0.5, %v2327_v58  ;;  %v2325_v60 = vadd.f32 1.0, %v3056_v59  ;;  %v2340_v17 = vmul.f32 %v2332_v44, %v3715_v55 }
 0x8a8   : > { %v3058_v39 = vpop.eup %3057  ;;  %v2333_v49 = vmul.f32 0.5, %v2325_v60  ;;  %v2343_v6 = vmul.f32 %v2335_v38, %v3720_v34 }
 0x8a9   : > { %v2330_v36 = vadd.f32 1.0, %v3058_v39 }
 0x8aa   : > { %v3060_v10 = vpop.eup %3059  ;;  %v2341_v23 = vmul.f32 %v2333_v49, %v3725_v63  ;;  %v2720_v8 = vpack.c.bf16 %v2343_v6, %v2342_v24 }
 0x8ab   : > { %v2328_v26 = vadd.f32 1.0, %v3060_v10  ;;  %v2338_v34 = vmul.f32 0.5, %v2330_v36 }
 0x8ac   : > { %v3062_v32 = vpop.eup %3061  ;;  %v2719_v0 = vpack.c.bf16 %v2341_v23, %v2340_v17 }
 0x8ad   : > { %v3064_v18 = vpop.eup %3063  ;;  %v2331_v2 = vadd.f32 1.0, %v3062_v32  ;;  %v2336_v9 = vmul.f32 0.5, %v2328_v26  ;;  %v2346_v35 = vmul.f32 %v2338_v34, %v3731_v15 }
 0x8ae   : > { %v2329_v61 = vadd.f32 1.0, %v3064_v18  ;;  %2918 = vmatprep.mubr.msk.bf16.mxu1 %vm2400_vm5, %v2719_v0 }
 0x8af   : > { %v2339_v13 = vmul.f32 0.5, %v2331_v2  ;;  %2919 = vmatmul.mubr.msk.bf16.vlgmr.msra.gmra.mxu1 %vm2400_vm5, %v2720_v8  ;;  %v2344_v63 = vmul.f32 %v2336_v9, %v3737_v30 }
 0x8b0   : > { %v2337_v55 = vmul.f32 0.5, %v2329_v61 }
 0x8b1   : > { %v2347_v53 = vmul.f32 %v2339_v13, %v3743_v12 }
 0x8b2   : > { %v2345_v48 = vmul.f32 %v2337_v55, %v2265_v21 }
 0x8b3   : > { %v2722_v11 = vpack.c.bf16 %v2347_v53, %v2346_v35 }
 0x8b4   : > { %v2721_v27 = vpack.c.bf16 %v2345_v48, %v2344_v63 }
 0x8b6   : > { %2922 = vmatprep.mubr.msk.bf16.mxu1 %vm2400_vm5, %v2721_v27 }
 0x8b7   : > { %2923 = vmatmul.mubr.msk.bf16.gmra.mxu1 %vm2400_vm5, %v2722_v11 }
 0x96f   : > { %v2920_v40 = vpop.f32.mrf.mxu1 }
 0x970   : > { %v2480_v12 = vadd.f32 %v2920_v40, %v3594_v45 }
 0x971   : > { %v2447_v62 = vpop.f32.mrf.mxu1 }
 0x972   : > { %v2494_v30 = vadd.f32 %v2702_v31, %v2480_v12  ;;  %v2478_v15 = vadd.f32 %v2447_v62, %v3592_v20 }
 0x973   : > { %v2921_v21 = vpop.f32.mrf.mxu1 }
 0x974   : > { %2502 = vst.msk [vmem:[%s3226_s27 + $0x10] sm:$0xff] %vm573_vm0, %v2494_v30  ;;  %v2492_v4 = vadd.f32 %v2702_v31, %v2478_v15  ;;  %v2481_v41 = vadd.f32 %v2921_v21, %v3602_v50 }
 0x975   : > { %v2450_v42 = vpop.f32.mrf.mxu1 }
 0x976   : > { %2500 = vst.msk [vmem:[%s3226_s27] sm:$0xff] %vm573_vm0, %v2492_v4  ;;  %v2495_v19 = vadd.f32 %v2702_v31, %v2481_v41  ;;  %v2479_v43 = vadd.f32 %v2450_v42, %v3596_v46 }
 0x977   : > { %v2924_v45 = vpop.f32.mrf.mxu1 }
 0x978   : > { %2503 = vst.msk [vmem:[%s3226_s27 + $0x18] sm:$0xff] %vm573_vm0, %v2495_v19  ;;  %v2493_v47 = vadd.f32 %v2702_v31, %v2479_v43  ;;  %v2484_v20 = vadd.f32 %v2924_v45, %v3616_v28 }
 0x979   : > { %v2463_v25 = vpop.f32.mrf.mxu1 }
 0x97a   : > { %2501 = vst.msk [vmem:[%s3226_s27 + $0x8] sm:$0xff] %vm573_vm0, %v2493_v47  ;;  %v2498_v22 = vadd.f32 %v2702_v31, %v2484_v20  ;;  %v2482_v50 = vadd.f32 %v2463_v25, %v3606_v14 }
 0x97b   : > { %v2925_v1 = vpop.f32.mrf.mxu1 }
 0x97c   : > { %2506 = vst.msk [vmem:[%s3226_s27 + $0x30] sm:$0xff] %vm573_vm0, %v2498_v22  ;;  %v2496_v5 = vadd.f32 %v2702_v31, %v2482_v50  ;;  %v2485_v46 = vadd.f32 %v2925_v1, %v3618_v52 }
 0x97d   : > { %v2466_v51 = vpop.f32.mrf.mxu1 }
 0x97e   : > { %2504 = vst.msk [vmem:[%s3226_s27 + $0x20] sm:$0xff] %vm573_vm0, %v2496_v5  ;;  %v2499_v37 = vadd.f32 %v2702_v31, %v2485_v46  ;;  %v2483_v29 = vadd.f32 %v2466_v51, %v3610_v33 }
 0x980   : > { %2507 = vst.msk [vmem:[%s3226_s27 + $0x38] sm:$0xff] %vm573_vm0, %v2499_v37  ;;  %v2497_v28 = vadd.f32 %v2702_v31, %v2483_v29 }
 0x982   : > { %2505 = vst.msk [vmem:[%s3226_s27 + $0x28] sm:$0xff] %vm573_vm0, %v2497_v28 }
 0x983 PF: > { %s24_s17 = sadd.s32 1, %s3103_s17   ;;  %s3821_s29 = smov %s3095_s15 }
 0x984   : > { %p21_p11 = scmp.ge.s32.totalorder %s24_s17, 6   ;;  %s3822_s30 = smov %s3099_s16 }
 0x985   : > { %s3823_s15 = smov %s3826_s18  ;;  %s3824_s16 = smov %s3830_s19 }
 0x986   :  { %23 = sbr.rel (!%p21_p11) target bundleno = 3 (0x3), region = 130 }

// kernel: _lambda_.4
= control target key start
LH: loop header
LB: loop body
LE: loop exit
PB: predicated region body
PF: predicated region fallthrough
CT: control target
= control target key end

     0   :  { %s2384_s27 = smov 0   ;;  %s2386_s28 = smov 0   ;;  %s2822_s0 = inlined_call_operand.vmem [shape: f32[16,8,32], index: 0, kind: input, shape index: {}]   ;;  %s2823_s1 = inlined_call_operand.vmem [shape: f32[16,8], index: 1, kind: input, shape index: {}]   ;;  %s2824_s2 = inlined_call_operand.vmem [shape: f32[1,32], index: 2, kind: input, shape index: {}]   ;;  %s2825_s3 = inlined_call_operand.vmem [shape: f32[1,32], index: 3, kind: input, shape index: {}]   ;;  %s2826_s4 = inlined_call_operand.vmem [shape: bf16[2,32,48], index: 4, kind: input, shape index: {}]   ;;  %s2827_s5 = inlined_call_operand.vmem [shape: f32[2,1,48], index: 5, kind: input, shape index: {}]   ;;  %s2828_s6 = inlined_call_operand.vmem [shape: bf16[2,16,32], index: 6, kind: input, shape index: {}]   ;;  %s2829_s7 = inlined_call_operand.vmem [shape: f32[1,32], index: 7, kind: input, shape index: {}]   ;;  %s2830_s8 = inlined_call_operand.vmem [shape: f32[16,8,32], index: 8, kind: output, shape index: {}]  }
   0x1   :  { %s2388_s29 = smov 0   ;;  %s2390_s30 = smov 0  }
   0x2   :  { %s2392_s9 = smov 0  }
   0x3 LB: > { %s27_s10 = sadd.s32 1, %s2324_s29  ;;  %s30_s11 = sadd.s32 1, %s2328_s30  ;;  %s2332_s9 = sphi %s2392_s9, %s18_s9   ;;  %s2328_s30 = sphi %s2390_s30, %s2834_s30   ;;  %s2324_s29 = sphi %s2388_s29, %s2833_s29   ;;  %s2320_s28 = sphi %s2386_s28, %s2832_s28   ;;  %s2316_s27 = sphi %s2384_s27, %s2831_s27  }
   0x4   : > { %p28_p0 = scmp.ge.s32.totalorder %s27_s10, 2  ;;  %p1968_p1 = scmp.ge.s32.totalorder %s2332_s9, 1 }
   0x5   : > { %p312_p2 = scmp.lt.s32.totalorder %s2332_s9, 5 }
   0x6   : > { %s2836_s10 = smov (%p28_p0, %s27_s10), 0  ;;  %s2838_s11 = smov (!%p28_p0, %s30_s11), %s2328_s30 }
   0x7   : > { %p313_p3 = pnand %p1968_p1, %p312_p2  ;;  %p32_p4 = scmp.ge.s32.totalorder %s2838_s11, 2 }
   0x8   : > { %s1969_s12 = sshll.u32 (!%p313_p3), %s2320_s28, 3  ;;  %p373_p6 = scmp.lt.s32.totalorder (!%p313_p3), %s2316_s27, 1 }
   0x9   : > { %s2840_s11 = smov (%p32_p4, %s2838_s11), 0  ;;  %316 = sbr.rel (%p313_p3) target bundleno = 1675 (0x68b), region = 52 }
   0xa   : > { %p364_p5 = scmp.lt.s32.totalorder (!%p313_p3), %s1969_s12, 15  ;;  %s2336_s17 = smov (!%p313_p3), 112  }
   0xb   : > { %p369_p7 = scmp.lt.s32.totalorder (!%p313_p3), %s2320_s28, 1  ;;  %p2016_p8 = scmp.ne.s32.totalorder (!%p313_p3), %s2316_s27, 0 }
   0xe   : > { %s2842_s12 = smov (!%p364_p5, %s1969_s12), 15  ;;  %vm411_vm0 = vcmask 261120   ;;  %vm2335_vm1 = vmmov 0   ;;  %vm679_vm2 = vcmask 130048   ;;  %s2844_s28 = smov (!%p369_p7, %s2320_s28), 1  ;;  %vm1175_vm3 = vcmask 64512  }
   0xf   : > { %s1970_s13 = sshll.u32 %s2842_s12, 3  ;;  %s1971_s18 = sshll.u32 %s2844_s28, 3  ;;  %vm1277_vm4 = vcmask 1043456  }
  0x10   : > { %s367_s16 = scalar_lea.vmem %s2822_s0, %s1970_s13  ;;  %s2425_s19 = scalar_lea.vmem %s2830_s8, %s1970_s13 }
  0x11   : > { %v2427_v0 = vld [vmem:[%s367_s16] sm:$0xff]  ;;  %v2429_v1 = vld [vmem:[%s367_s16 + $0x10] sm:$0xff]  ;;  %v2431_v2 = vld [vmem:[%s367_s16 + $0x8] sm:$0xff]  ;;  %s2509_s20 = scalar_select %p373_p6, %s2316_s27, 1 }
  0x12   : > { %v412_v3 = vsel %vm411_vm0, %v2427_v0, 0.0  ;;  %v418_v4 = vsel %vm411_vm0, %v2429_v1, 0.0  ;;  %v2437_v5 = vld [vmem:[%s367_s16 + $0x18] sm:$0xff]  ;;  %v415_v6 = vsel %vm411_vm0, %v2431_v2, 0.0  ;;  %v2443_v8 = vld [vmem:[%s367_s16 + $0x20] sm:$0xff]  ;;  %v2445_v9 = vld [vmem:[%s367_s16 + $0x28] sm:$0xff]  ;;  %s372_s23 = scalar_lea.vmem %s2823_s1, %s1971_s18 }
  0x13   : > { %413 = vadd.xlane.f32.xlu0 %v412_v3  ;;  %419 = vadd.xlane.f32.xlu1 %v418_v4  ;;  %v421_v7 = vsel %vm411_vm0, %v2437_v5, 0.0  ;;  %v424_v10 = vsel %vm411_vm0, %v2443_v8, 0.0  ;;  %v427_v11 = vsel %vm411_vm0, %v2445_v9, 0.0  ;;  %v2451_v12 = vld [vmem:[%s367_s16 + $0x30] sm:$0xff]  ;;  %v2453_v13 = vld [vmem:[%s367_s16 + $0x38] sm:$0xff]  ;;  %s2022_s21 = sshll.u32 %s2509_s20, 4  ;;  %s380_s16 = scalar_lea.vmem %s2827_s5, %s2509_s20 }
  0x14   : > { %v430_v14 = vsel %vm411_vm0, %v2451_v12, 0.0  ;;  %v433_v15 = vsel %vm411_vm0, %v2453_v13, 0.0  ;;  %s377_s24 = scalar_lea.vmem %s2826_s4, %s2022_s21  ;;  %s2338_s28 = smov 96  }
  0x15   : > { %v2242_v56 = vld [vmem:[%s377_s24 + $0x8] sm:$0xff]   ;;  %v2243_v57 = vld [vmem:[%s377_s24] sm:$0xff]   ;;  %s2023_s24 = sshll.u32 %s2509_s20, 3 }
  0x16   : > { %2075 = vmatprep.subr.bf16.mxu0 %v2242_v56  ;;  %2193 = vmatprep.subr.bf16.mxu1 %v2242_v56  ;;  %s385_s12 = scalar_lea.vmem %s2828_s6, %s2023_s24 }
  0x17   : > { %416 = vadd.xlane.f32.xlu0 %v415_v6  ;;  %422 = vadd.xlane.f32.xlu1 %v421_v7 }
  0x18   : > { %2076 = vmatpush3.bf16.msra.mxu0 %v2242_v56  ;;  %2195 = vmatpush3.bf16.msra.mxu1 %v2242_v56 }
  0x19   : > { %2077 = vmatprep.subr.bf16.mxu0 %v2243_v57  ;;  %2194 = vmatprep.subr.bf16.mxu1 %v2243_v57 }
  0x1b   : > { %425 = vadd.xlane.f32.xlu0 %v424_v10  ;;  %428 = vadd.xlane.f32.xlu1 %v427_v11 }
  0x1c   : > { %2078 = vmatpush3.bf16.msra.mxu0 %v2243_v57  ;;  %2196 = vmatpush3.bf16.msra.mxu1 %v2243_v57 }
  0x1f   : > { %431 = vadd.xlane.f32.xlu0 %v430_v14  ;;  %434 = vadd.xlane.f32.xlu1 %v433_v15 }
  0x9c   : > { %v414_v16 = vpop.xlane.xlu0 %413  ;;  %v420_v17 = vpop.xlane.xlu1 %419 }
  0x9d   : > { %v437_v18 = vmul.f32 0.03125, %v414_v16  ;;  %v439_v19 = vmul.f32 0.03125, %v420_v17 }
  0x9f   : > { %v2460_v20 = vsub.f32 %v2427_v0, %v437_v18  ;;  %v2463_v21 = vsub.f32 %v2429_v1, %v439_v19 }
  0xa0   : > { %v417_v22 = vpop.xlane.xlu0 %416  ;;  %v423_v23 = vpop.xlane.xlu1 %422 }
  0xa1   : > { %v438_v24 = vmul.f32 0.03125, %v417_v22  ;;  %v440_v25 = vmul.f32 0.03125, %v423_v23  ;;  %v453_v26 = vmul.f32 %v2460_v20, %v2460_v20  ;;  %v455_v27 = vmul.f32 %v2463_v21, %v2463_v21 }
  0xa3   : > { %v2470_v28 = vsub.f32 %v2431_v2, %v438_v24  ;;  %v2473_v29 = vsub.f32 %v2437_v5, %v440_v25  ;;  %v461_v30 = vsel %vm411_vm0, %v453_v26, 0.0  ;;  %v467_v33 = vsel %vm411_vm0, %v455_v27, 0.0 }
  0xa4   : > { %462 = vadd.xlane.f32.xlu0 %v461_v30  ;;  %v426_v31 = vpop.xlane.xlu0 %425  ;;  %v429_v32 = vpop.xlane.xlu1 %428 }
  0xa5   : > { %v441_v34 = vmul.f32 0.03125, %v426_v31  ;;  %v442_v35 = vmul.f32 0.03125, %v429_v32  ;;  %v454_v36 = vmul.f32 %v2470_v28, %v2470_v28  ;;  %v456_v37 = vmul.f32 %v2473_v29, %v2473_v29  ;;  %v1978_v32 = vld [vmem:[%s2824_s2] ss:$0 sm:$0xff] }
  0xa7   : > { %v2482_v38 = vsub.f32 %v2443_v8, %v441_v34  ;;  %v2485_v39 = vsub.f32 %v2445_v9, %v442_v35  ;;  %v464_v40 = vsel %vm411_vm0, %v454_v36, 0.0  ;;  %v470_v43 = vsel %vm411_vm0, %v456_v37, 0.0  ;;  %v1979_v37 = vld [vmem:[%s2825_s3] ss:$0 sm:$0xff] }
  0xa8   : > { %468 = vadd.xlane.f32.xlu0 %v467_v33  ;;  %465 = vadd.xlane.f32.xlu1 %v464_v40  ;;  %v432_v41 = vpop.xlane.xlu0 %431  ;;  %v435_v42 = vpop.xlane.xlu1 %434 }
  0xa9   : > { %v443_v44 = vmul.f32 0.03125, %v432_v41  ;;  %v444_v45 = vmul.f32 0.03125, %v435_v42  ;;  %v457_v46 = vmul.f32 %v2482_v38, %v2482_v38  ;;  %v458_v47 = vmul.f32 %v2485_v39, %v2485_v39 }
  0xab   : > { %v2494_v48 = vsub.f32 %v2451_v12, %v443_v44  ;;  %v2497_v49 = vsub.f32 %v2453_v13, %v444_v45  ;;  %v473_v50 = vsel %vm411_vm0, %v457_v46, 0.0  ;;  %v476_v51 = vsel %vm411_vm0, %v458_v47, 0.0 }
  0xac   : > { %471 = vadd.xlane.f32.xlu1 %v470_v43  ;;  %474 = vadd.xlane.f32.xlu0 %v473_v50 }
  0xad   : > { %v459_v52 = vmul.f32 %v2494_v48, %v2494_v48  ;;  %v460_v53 = vmul.f32 %v2497_v49, %v2497_v49 }
  0xaf   : > { %v479_v54 = vsel %vm411_vm0, %v459_v52, 0.0  ;;  %v482_v55 = vsel %vm411_vm0, %v460_v53, 0.0 }
  0xb0   : > { %477 = vadd.xlane.f32.xlu1 %v476_v51  ;;  %480 = vadd.xlane.f32.xlu0 %v479_v54 }
  0xb4   : > { %483 = vadd.xlane.f32.xlu1 %v482_v55 }
 0x12d   : > { %v463_v58 = vpop.xlane.xlu0 %462 }
 0x12e   : > { %v485_v59 = vmul.f32 0.03125, %v463_v58 }
 0x130   : > { %v493_v60 = vadd.f32 1e-05, %v485_v59 }
 0x131   : > { %v466_v61 = vpop.xlane.xlu1 %465  ;;  %v469_v62 = vpop.xlane.xlu0 %468 }
 0x132   : > { %2246 = vrsqrt.f32 %v493_v60  ;;  %v486_v63 = vmul.f32 0.03125, %v466_v61  ;;  %v487_v3 = vmul.f32 0.03125, %v469_v62 }
 0x134   : > { %v494_v4 = vadd.f32 1e-05, %v486_v63  ;;  %v495_v6 = vadd.f32 1e-05, %v487_v3 }
 0x135   : > { %v472_v7 = vpop.xlane.xlu1 %471  ;;  %v475_v10 = vpop.xlane.xlu0 %474 }
 0x136   : > { %2248 = vrsqrt.f32 %v494_v4  ;;  %v488_v11 = vmul.f32 0.03125, %v472_v7  ;;  %v489_v14 = vmul.f32 0.03125, %v475_v10 }
 0x137   : > { %2250 = vrsqrt.f32 %v495_v6  ;;  %v1980_v6 = vld [vmem:[%s380_s16] ss:$0 sm:$0xff] }
 0x138   : > { %v496_v15 = vadd.f32 1e-05, %v488_v11  ;;  %v497_v16 = vadd.f32 1e-05, %v489_v14 }
 0x139   : > { %v478_v17 = vpop.xlane.xlu1 %477  ;;  %v481_v18 = vpop.xlane.xlu0 %480 }
 0x13a   : > { %2252 = vrsqrt.f32 %v496_v15  ;;  %v490_v19 = vmul.f32 0.03125, %v478_v17  ;;  %v491_v22 = vmul.f32 0.03125, %v481_v18 }
 0x13b   : > { %2254 = vrsqrt.f32 %v497_v16 }
 0x13c   : > { %v498_v23 = vadd.f32 1e-05, %v490_v19  ;;  %v499_v24 = vadd.f32 1e-05, %v491_v22 }
 0x13d   : > { %v484_v25 = vpop.xlane.xlu1 %483 }
 0x13e   : > { %2256 = vrsqrt.f32 %v498_v23  ;;  %v492_v26 = vmul.f32 0.03125, %v484_v25 }
 0x13f   : > { %v2247_v27 = vpop.eup %2246  ;;  %2258 = vrsqrt.f32 %v499_v24 }
 0x140   : > { %v500_v30 = vadd.f32 1e-05, %v492_v26  ;;  %v509_v31 = vmul.f32 %v2247_v27, %v2460_v20 }
 0x142   : > { %2260 = vrsqrt.f32 %v500_v30  ;;  %v523_v36 = vmul.f32 %v1978_v32, %v509_v31 }
 0x143   : > { %v2249_v33 = vpop.eup %2248 }
 0x144   : > { %v2251_v34 = vpop.eup %2250  ;;  %v510_v35 = vmul.f32 %v2249_v33, %v2470_v28  ;;  %v537_v20 = vadd.f32 %v1979_v37, %v523_v36 }
 0x145   : > { %v511_v40 = vmul.f32 %v2251_v34, %v2463_v21 }
 0x146   : > { %v524_v41 = vmul.f32 %v1978_v32, %v510_v35 }
 0x147   : > { %v2253_v42 = vpop.eup %2252  ;;  %v525_v46 = vmul.f32 %v1978_v32, %v511_v40 }
 0x148   : > { %v2255_v43 = vpop.eup %2254  ;;  %v538_v44 = vadd.f32 %v1979_v37, %v524_v41  ;;  %v512_v45 = vmul.f32 %v2253_v42, %v2473_v29 }
 0x149   : > { %v513_v47 = vmul.f32 %v2255_v43, %v2482_v38  ;;  %v539_v53 = vadd.f32 %v1979_v37, %v525_v46 }
 0x14a   : > { %v2024_v50 = vpack.c.bf16 %v538_v44, %v537_v20  ;;  %v526_v51 = vmul.f32 %v1978_v32, %v512_v45 }
 0x14b   : > { %v2257_v28 = vpop.eup %2256  ;;  %v527_v55 = vmul.f32 %v1978_v32, %v513_v47 }
 0x14c   : > { %v2259_v52 = vpop.eup %2258  ;;  %2079 = vmatprep.mubr.msk.bf16.mxu0 %vm411_vm0, %v2024_v50  ;;  %v540_v54 = vadd.f32 %v1979_v37, %v526_v51  ;;  %v514_v21 = vmul.f32 %v2257_v28, %v2485_v39 }
 0x14d   : > { %v515_v56 = vmul.f32 %v2259_v52, %v2494_v48  ;;  %v541_v29 = vadd.f32 %v1979_v37, %v527_v55  ;;  %v2334_v48 = vmov 0.0   ;;  %v2337_v55 = vmov 1966171168  }
 0x14e   : > { %v2025_v57 = vpack.c.bf16 %v540_v54, %v539_v53  ;;  %v528_v58 = vmul.f32 %v1978_v32, %v514_v21  ;;  %2087 = vmatprep.subr.bf16.mxu1 %v2334_v48  ;;  %2099 = vmatprep.subr.bf16.mxu0 %v2334_v48 }
 0x14f   : > { %v2261_v59 = vpop.eup %2260  ;;  %v529_v61 = vmul.f32 %v1978_v32, %v515_v56  ;;  %v1080_v56 = vunpack.c.l.s4 %v2337_v55 }
 0x150   : > { %2080 = vmatmul.mubr.msk.bf16.vlgmr.msra.gmra.mxu0 %vm411_vm0, %v2025_v57  ;;  %v542_v38 = vadd.f32 %v1979_v37, %v528_v58  ;;  %v516_v60 = vmul.f32 %v2261_v59, %v2497_v49  ;;  %v1082_v57 = vlaneseq }
 0x151   : > { %v543_v3 = vadd.f32 %v1979_v37, %v529_v61  ;;  %2101 = vmatprep.mubr.msk.bf16.mxu0 %vm2335_vm1, %v2334_v48  ;;  %v1081_v58 = vunpack.c.0.s8 %v1080_v56 }
 0x152   : > { %v2026_v62 = vpack.c.bf16 %v542_v38, %v541_v29  ;;  %v530_v63 = vmul.f32 %v1978_v32, %v516_v60  ;;  %v1083_v59 = vshrl.u32 %v1082_v57, 7  ;;  %v401_v38 = vld [vmem:[%s372_s23] sm:$0xff] }
 0x154   : > { %2083 = vmatprep.mubr.msk.bf16.mxu1 %vm411_vm0, %v2026_v62  ;;  %v544_v39 = vadd.f32 %v1979_v37, %v530_v63  ;;  %v2620_v29 = vsub.s32 %v1081_v58, %v1083_v59 }
 0x156   : > { %v2027_v4 = vpack.c.bf16 %v544_v39, %v543_v3  ;;  %v1085_v60 = vrot.slane %v401_v38, %v2620_v29 }
 0x158   : > { %2084 = vmatmul.mubr.msk.bf16.vlgmr.msra.gmra.mxu1 %vm411_vm0, %v2027_v4  ;;  %v1093_v61 = vcombine.high %v1085_v60, %v1085_v60  ;;  %v1101_v63 = vrot.slane %v1085_v60, %v2620_v29 }
 0x159   : > { %2089 = vmatprep.mubr.msk.bf16.mxu1 %vm2335_vm1, %v2334_v48 }
 0x15a   : > { %v1123_v39 = vcombine.high %v1101_v63, %v1101_v63  ;;  %v1115_v4 = vrot.slane %v1093_v61, %v2620_v29 }
 0x210   : > { %v2081_v49 = vpop.f32.mrf.mxu0 }
 0x211   : > { %v646_v18 = vadd.f32 %v2081_v49, %v1980_v6  ;;  %v1078_v49 = vcombine.high %v401_v38, %v401_v38 }
 0x212   : > { %v637_v7 = vpop.f32.mrf.mxu0 }
 0x213   : > { %v638_v10 = vadd.f32 %v1980_v6, %v637_v7  ;;  %v2549_v25 = vpack.c.bf16 %v646_v18, %v646_v18  ;;  %v2625_v7 = vsub.s32 0, %v1083_v59  ;;  %v1125_v59 = vcombine.high %v1115_v4, %v1115_v4 }
 0x214   : > { %v2082_v11 = vpop.f32.mrf.mxu0 }
 0x215   : > { %v2543_v14 = vpack.c.bf16 %v638_v10, %v638_v10  ;;  %v649_v26 = vadd.f32 %v2082_v11, %v1980_v6  ;;  %v1138_v11 = vrot.slane %v1123_v39, %v2625_v7 }
 0x216   : > { %v640_v15 = vpop.f32.mrf.mxu0 }
 0x217   : > { %v641_v16 = vadd.f32 %v1980_v6, %v640_v15  ;;  %677 = vrot.lane.b32.xlu0 %v2543_v14, %s2336_s17  ;;  %v2555_v32 = vpack.c.bf16 %v649_v26, %v649_v26  ;;  %v1134_v15 = vrot.slane %v1115_v4, %v2625_v7  ;;  %v1130_v26 = vrot.slane %v1101_v63, %v2625_v7 }
 0x218   : > { %v2085_v17 = vpop.f32.mrf.mxu1 }
 0x219   : > { %v2546_v19 = vpack.c.bf16 %v641_v16, %v641_v16  ;;  %v662_v27 = vadd.f32 %v2085_v17, %v1980_v6  ;;  %v2630_v16 = vrot.slane %v1078_v49, %v2620_v29  ;;  %v1142_v49 = vrot.slane %v1125_v59, %v2625_v7 }
 0x21a   : > { %v653_v22 = vpop.f32.mrf.mxu1 }
 0x21b   : > { %v654_v23 = vadd.f32 %v1980_v6, %v653_v22  ;;  %727 = vrot.lane.b32.xlu1 %v2546_v19, %s2336_s17  ;;  %v2557_v33 = vpack.c.bf16 %v662_v27, %v662_v27 }
 0x21c   : > { %v2086_v24 = vpop.f32.mrf.mxu1 }
 0x21d   : > { %v2551_v30 = vpack.c.bf16 %v654_v23, %v654_v23  ;;  %v665_v35 = vadd.f32 %v2086_v24, %v1980_v6 }
 0x21e   : > { %v656_v31 = vpop.f32.mrf.mxu1 }
 0x21f   : > { %776 = vrot.lane.b32.xlu1 %v2549_v25, %s2336_s17  ;;  %874 = vrot.lane.b32.xlu0 %v2551_v30, %s2336_s17  ;;  %v657_v34 = vadd.f32 %v1980_v6, %v656_v31  ;;  %v2564_v37 = vpack.c.bf16 %v665_v35, %v665_v35 }
 0x221   : > { %v2561_v36 = vpack.c.bf16 %v657_v34, %v657_v34 }
 0x223   : > { %825 = vrot.lane.b32.xlu1 %v2555_v32, %s2336_s17  ;;  %972 = vrot.lane.b32.xlu0 %v2557_v33, %s2336_s17 }
 0x227   : > { %923 = vrot.lane.b32.xlu1 %v2561_v36, %s2336_s17 }
 0x22b   : > { %1021 = vrot.lane.b32.xlu1 %v2564_v37, %s2336_s17 }
 0x289   : > { %v678_v40 = vpop.permute.xlu0 %677 }
 0x28a   : > { %v684_v41 = vsel %vm679_vm2, %v678_v40, 0  ;;  %v1108_v40 = vrot.slane %v2630_v16, %v2620_v29 }
 0x28b   : > { %2088 = vmatpush3.bf16.xpose.msra.mxu1 %v684_v41 }
 0x28c   : > { %2093 = vmatprep.subr.bf16.mxu1 %v2334_v48  ;;  %v1124_v55 = vcombine.high %v1108_v40, %v1108_v40 }
 0x28d   : > { %v728_v42 = vpop.permute.xlu1 %727 }
 0x28e   : > { %v733_v20 = vsel %vm679_vm2, %v728_v42, 0  ;;  %v1154_v61 = vrot.slane %v1124_v55, %v2625_v7 }
 0x291   : > { %v777_v43 = vpop.permute.xlu1 %776  ;;  %v875_v45 = vpop.permute.xlu0 %874 }
 0x292   : > { %v782_v44 = vsel %vm679_vm2, %v777_v43, 0  ;;  %2090 = vmatmul.mubr.msk.bf16.vlgmr.msra.gmra.mxu1 %vm679_vm2, %v2543_v14  ;;  %v880_v47 = vsel %vm679_vm2, %v875_v45, 0 }
 0x293   : > { %2094 = vmatpush3.bf16.xpose.msra.mxu1 %v733_v20  ;;  %2100 = vmatpush3.bf16.xpose.msra.mxu0 %v782_v44 }
 0x294   : > { %2095 = vmatprep.mubr.msk.bf16.mxu1 %vm2335_vm1, %v2334_v48  ;;  %2105 = vmatprep.subr.bf16.mxu1 %v2334_v48 }
 0x295   : > { %2111 = vmatprep.subr.bf16.mxu0 %v2334_v48  ;;  %v826_v46 = vpop.permute.xlu1 %825  ;;  %v973_v51 = vpop.permute.xlu0 %972 }
 0x296   : > { %v831_v50 = vsel %vm679_vm2, %v826_v46, 0  ;;  %v978_v52 = vsel %vm679_vm2, %v973_v51, 0 }
 0x299   : > { %v924_v28 = vpop.permute.xlu1 %923 }
 0x29a   : > { %2096 = vmatmul.mubr.msk.bf16.vlgmr.msra.gmra.mxu1 %vm679_vm2, %v2546_v19  ;;  %2102 = vmatmul.mubr.msk.bf16.vlgmr.msra.gmra.mxu0 %vm679_vm2, %v2549_v25  ;;  %v929_v53 = vsel %vm679_vm2, %v924_v28, 0 }
 0x29b   : > { %2106 = vmatpush3.bf16.xpose.msra.mxu1 %v831_v50  ;;  %2112 = vmatpush3.bf16.xpose.msra.mxu0 %v880_v47  ;;  %v1146_v47 = vrot.slane %v1108_v40, %v2625_v7 }
 0x29c   : > { %2107 = vmatprep.mubr.msk.bf16.mxu1 %vm2335_vm1, %v2334_v48  ;;  %2113 = vmatprep.mubr.msk.bf16.mxu0 %vm2335_vm1, %v2334_v48 }
 0x29d   : > { %2117 = vmatprep.subr.bf16.mxu1 %v2334_v48  ;;  %2123 = vmatprep.subr.bf16.mxu0 %v2334_v48  ;;  %v1022_v54 = vpop.permute.xlu1 %1021 }
 0x29e   : > { %v1027_v21 = vsel %vm679_vm2, %v1022_v54, 0 }
 0x2a2   : > { %2108 = vmatmul.mubr.msk.bf16.vlgmr.msra.gmra.mxu1 %vm679_vm2, %v2555_v32  ;;  %2114 = vmatmul.mubr.msk.bf16.vlgmr.msra.gmra.mxu0 %vm679_vm2, %v2551_v30 }
 0x2a3   : > { %2118 = vmatpush3.bf16.xpose.msra.mxu1 %v929_v53  ;;  %2124 = vmatpush3.bf16.xpose.msra.mxu0 %v978_v52 }
 0x2a4   : > { %2119 = vmatprep.mubr.msk.bf16.mxu1 %vm2335_vm1, %v2334_v48  ;;  %2125 = vmatprep.mubr.msk.bf16.mxu0 %vm2335_vm1, %v2334_v48 }
 0x2a5   : > { %2129 = vmatprep.subr.bf16.mxu1 %v2334_v48  ;;  %2135 = vmatprep.subr.bf16.mxu0 %v2334_v48 }
 0x2aa   : > { %2120 = vmatmul.mubr.msk.bf16.vlgmr.msra.gmra.mxu1 %vm679_vm2, %v2561_v36  ;;  %2126 = vmatmul.mubr.msk.bf16.vlgmr.msra.gmra.mxu0 %vm679_vm2, %v2557_v33 }
 0x2ab   : > { %2130 = vmatpush3.bf16.xpose.msra.mxu1 %v1027_v21  ;;  %2131 = vmatprep.mubr.msk.bf16.mxu1 %vm2335_vm1, %v2334_v48 }
 0x2ac   : > { %2141 = vmatprep.subr.bf16.mxu1 %v2334_v48  ;;  %2137 = vmatprep.mubr.msk.bf16.mxu0 %vm2335_vm1, %v2334_v48 }
 0x2b2   : > { %2132 = vmatmul.mubr.msk.bf16.vlgmr.msra.gmra.mxu1 %vm679_vm2, %v2564_v37 }
 0x2b3   : > { %2143 = vmatprep.mubr.msk.bf16.mxu1 %vm2335_vm1, %v2334_v48 }
 0x352   : > { %v720_v62 = vpop.f32.mrf.mxu1 }
 0x353   : > { %v1069_v22 = vmul.f32 0.25, %v720_v62 }
 0x354   : > { %v2091_v3 = vpop.f32.mrf.mxu1 }
 0x355   : > { %v2643_v44 = vadd.f32 %v1130_v26, %v1069_v22 }
 0x356   : > { %v723_v6 = vpop.f32.mrf.mxu1 }
 0x357   : > { %v1176_v52 = vsel %vm1175_vm3, %v2643_v44, -inf }
 0x358   : > { %v2092_v10 = vpop.f32.mrf.mxu1 }
 0x35a   : > { %v769_v17 = vpop.f32.mrf.mxu1  ;;  %v818_v18 = vpop.f32.mrf.mxu0 }
 0x35b   : > { %v1070_v23 = vmul.f32 0.25, %v769_v17  ;;  %v1071_v24 = vmul.f32 0.25, %v818_v18 }
 0x35c   : > { %v2097_v27 = vpop.f32.mrf.mxu1  ;;  %v2103_v31 = vpop.f32.mrf.mxu0 }
 0x35d   : > { %v2633_v34 = vadd.f32 %v1138_v11, %v1071_v24  ;;  %v2635_v35 = vadd.f32 %v1134_v15, %v1070_v23 }
 0x35e   : > { %v772_v41 = vpop.f32.mrf.mxu1  ;;  %v821_v42 = vpop.f32.mrf.mxu0 }
 0x35f   : > { %v1182_v43 = vsel %vm1175_vm3, %v2633_v34, -inf  ;;  %v1179_v20 = vsel %vm1175_vm3, %v2635_v35, -inf  ;;  %v1094_v41 = vcombine.high %v2630_v16, %v2630_v16 }
 0x360   : > { %v2104_v45 = vpop.f32.mrf.mxu0  ;;  %1183 = vmax.xlane.f32.xlu0 %v1182_v43  ;;  %1180 = vmax.xlane.f32.xlu1 %v1179_v20  ;;  %v2098_v46 = vpop.f32.mrf.mxu1 }
 0x361   : > { %v1122_v42 = vrot.slane %v1094_v41, %v2620_v29 }
 0x362   : > { %v867_v50 = vpop.f32.mrf.mxu1  ;;  %v916_v51 = vpop.f32.mrf.mxu0 }
 0x363   : > { %v1073_v28 = vmul.f32 0.25, %v916_v51  ;;  %v1072_v3 = vmul.f32 0.25, %v867_v50  ;;  %v1150_v43 = vrot.slane %v1122_v42, %v2625_v7  ;;  %v1126_v20 = vcombine.high %v1122_v42, %v1122_v42 }
 0x364   : > { %1177 = vmax.xlane.f32.xlu0 %v1176_v52  ;;  %v2109_v53 = vpop.f32.mrf.mxu1  ;;  %v2115_v54 = vpop.f32.mrf.mxu0 }
 0x365   : > { %v2648_v21 = vadd.f32 %v1146_v47, %v1073_v28  ;;  %v2658_v18 = vadd.f32 %v1142_v49, %v1072_v3  ;;  %v1158_v47 = vrot.slane %v1126_v20, %v2625_v7 }
 0x366   : > { %v870_v56 = vpop.f32.mrf.mxu1  ;;  %v919_v57 = vpop.f32.mrf.mxu0 }
 0x367   : > { %v1188_v58 = vsel %vm1175_vm3, %v2648_v21, -inf  ;;  %v1185_v26 = vsel %vm1175_vm3, %v2658_v18, -inf }
 0x368   : > { %v2110_v38 = vpop.f32.mrf.mxu1  ;;  %1189 = vmax.xlane.f32.xlu0 %v1188_v58  ;;  %v2116_v60 = vpop.f32.mrf.mxu0 }
 0x36a   : > { %v965_v62 = vpop.f32.mrf.mxu1  ;;  %v1014_v63 = vpop.f32.mrf.mxu0 }
 0x36b   : > { %v1075_v39 = vmul.f32 0.25, %v1014_v63 }
 0x36c   : > { %v2121_v6 = vpop.f32.mrf.mxu1  ;;  %v2127_v10 = vpop.f32.mrf.mxu0 }
 0x36d   : > { %v2654_v11 = vadd.f32 %v1154_v61, %v1075_v39 }
 0x36e   : > { %v968_v15 = vpop.f32.mrf.mxu1  ;;  %v1017_v17 = vpop.f32.mrf.mxu0 }
 0x36f   : > { %v1194_v4 = vsel %vm1175_vm3, %v2654_v11, -inf }
 0x370   : > { %v2122_v22 = vpop.f32.mrf.mxu1  ;;  %1195 = vmax.xlane.f32.xlu0 %v1194_v4  ;;  %v2128_v23 = vpop.f32.mrf.mxu0 }
 0x371   : > { %1321 = vrot.lane.b32.xlu1 %v2546_v19, %s2338_s28  ;;  %v1074_v19 = vmul.f32 0.25, %v965_v62 }
 0x372   : > { %v1063_v24 = vpop.f32.mrf.mxu1 }
 0x373   : > { %v1076_v45 = vmul.f32 0.25, %v1063_v24  ;;  %v1172_v46 = vadd.f32 %v1150_v43, %v1074_v19 }
 0x374   : > { %v2133_v27 = vpop.f32.mrf.mxu1  ;;  %1186 = vmax.xlane.f32.xlu0 %v1185_v26 }
 0x375   : > { %1369 = vrot.lane.b32.xlu1 %v2549_v25, %s2338_s28  ;;  %v1191_v25 = vsel %vm1175_vm3, %v1172_v46, -inf  ;;  %v1174_v50 = vadd.f32 %v1158_v47, %v1076_v45 }
 0x376   : > { %v1066_v31 = vpop.f32.mrf.mxu1 }
 0x377   : > { %v1197_v51 = vsel %vm1175_vm3, %v1174_v50, -inf }
 0x378   : > { %v2134_v40 = vpop.f32.mrf.mxu1 }
 0x38a   : > { %1272 = vrot.lane.b32.xlu0 %v2543_v14, %s2338_s28 }
 0x399   : > { %1192 = vmax.xlane.f32.xlu1 %v1191_v25 }
 0x39d   : > { %1198 = vmax.xlane.f32.xlu1 %v1197_v51 }
 0x3ae   : > { %1417 = vrot.lane.b32.xlu1 %v2555_v32, %s2338_s28 }
 0x3e9   : > { %v1181_v14 = vpop.xlane.xlu1 %1180  ;;  %v1184_v29 = vpop.xlane.xlu0 %1183 }
 0x3ea   : > { %v1201_v16 = vsub.f32 %v2635_v35, %v1181_v14  ;;  %v1202_v28 = vsub.f32 %v2633_v34, %v1184_v29 }
 0x3ec   : > { %v1210_v52 = vmul.f32 1.442695, %v1201_v16  ;;  %v1212_v53 = vmul.f32 1.442695, %v1202_v28 }
 0x3ed   : > { %v1322_v7 = vpop.permute.xlu1 %1321  ;;  %v1178_v54 = vpop.xlane.xlu0 %1177 }
 0x3ee   : > { %2262 = vpow2.f32 %v1210_v52  ;;  %v1327_v55 = vsel %vm1277_vm4, %v1322_v7, 0  ;;  %v1200_v56 = vsub.f32 %v2643_v44, %v1178_v54 }
 0x3ef   : > { %2264 = vpow2.f32 %v1212_v53  ;;  %2142 = vmatpush3.bf16.msra.mxu1 %v1327_v55 }
 0x3f0   : > { %v1208_v57 = vmul.f32 1.442695, %v1200_v56  ;;  %2153 = vmatprep.subr.bf16.mxu1 %v2334_v48 }
 0x3f1   : > { %v1190_v32 = vpop.xlane.xlu0 %1189  ;;  %v1370_v49 = vpop.permute.xlu1 %1369 }
 0x3f2   : > { %2266 = vpow2.f32 %v1208_v57  ;;  %v1204_v6 = vsub.f32 %v2648_v21, %v1190_v32  ;;  %v1375_v16 = vsel %vm1277_vm4, %v1370_v49, 0 }
 0x3f4   : > { %v1216_v10 = vmul.f32 1.442695, %v1204_v6 }
 0x3f9   : > { %v1196_v35 = vpop.xlane.xlu0 %1195 }
 0x3fa   : > { %v1206_v15 = vsub.f32 %v2654_v11, %v1196_v35 }
 0x3fb   : > { %v2263_v58 = vpop.eup %2262 }
 0x3fc   : > { %v2682_v34 = vpop.eup %2264  ;;  %v1227_v59 = vsel %vm1175_vm3, %v2263_v58, 0.0  ;;  %v1220_v23 = vmul.f32 1.442695, %v1206_v15 }
 0x3fd   : > { %1228 = vadd.xlane.f32.xlu1 %v1227_v59  ;;  %v1230_v38 = vsel %vm1175_vm3, %v2682_v34, 0.0  ;;  %v1187_v60 = vpop.xlane.xlu0 %1186 }
 0x3fe   : > { %1231 = vadd.xlane.f32.xlu0 %v1230_v38  ;;  %v1203_v3 = vsub.f32 %v2658_v18, %v1187_v60 }
 0x3ff   : > { %v2267_v44 = vpop.eup %2266 }
 0x400   : > { %v1224_v61 = vsel %vm1175_vm3, %v2267_v44, 0.0  ;;  %v1214_v39 = vmul.f32 1.442695, %v1203_v3 }
 0x401   : > { %v1273_v62 = vpop.permute.xlu0 %1272 }
 0x402   : > { %1225 = vadd.xlane.f32.xlu0 %v1224_v61  ;;  %v1279_v63 = vsel %vm1277_vm4, %v1273_v62, 0  ;;  %2268 = vpow2.f32 %v1214_v39 }
 0x403   : > { %2136 = vmatpush3.bf16.msra.mxu0 %v1279_v63  ;;  %2270 = vpow2.f32 %v1216_v10 }
 0x404   : > { %2147 = vmatprep.subr.bf16.mxu0 %v2334_v48 }
 0x40e   : > { %1513 = vrot.lane.b32.xlu1 %v2561_v36, %s2338_s28 }
 0x418   : > { %1465 = vrot.lane.b32.xlu0 %v2551_v30, %s2338_s28  ;;  %v2269_v30 = vpop.eup %2268 }
 0x419   : > { %v1233_v18 = vsel %vm1175_vm3, %v2269_v30, 0.0  ;;  %v2698_v21 = vpop.eup %2270 }
 0x41a   : > { %v1236_v31 = vsel %vm1175_vm3, %v2698_v21, 0.0 }
 0x422   : > { %v1193_v17 = vpop.xlane.xlu1 %1192 }
 0x423   : > { %v1205_v4 = vsub.f32 %v1172_v46, %v1193_v17 }
 0x425   : > { %v1218_v22 = vmul.f32 1.442695, %v1205_v4 }
 0x426   : > { %v1199_v24 = vpop.xlane.xlu1 %1198 }
 0x427   : > { %2272 = vpow2.f32 %v1218_v22  ;;  %v1207_v36 = vsub.f32 %v1174_v50, %v1199_v24 }
 0x428   : > { %2274 = vpow2.f32 %v1220_v23 }
 0x429   : > { %v1222_v26 = vmul.f32 1.442695, %v1207_v36  ;;  %v2245_v36 = vld [vmem:[%s385_s12] sm:$0xff]  }
 0x42a   : > { %v1418_v43 = vpop.permute.xlu1 %1417 }
 0x42b   : > { %2276 = vpow2.f32 %v1222_v26  ;;  %v1423_v14 = vsel %vm1277_vm4, %v1418_v43, 0 }
 0x432   : > { %1234 = vadd.xlane.f32.xlu1 %v1233_v18 }
 0x434   : > { %v2700_v27 = vpop.eup %2272 }
 0x435   : > { %v1239_v11 = vsel %vm1175_vm3, %v2700_v27, 0.0  ;;  %v2706_v40 = vpop.eup %2274 }
 0x436   : > { %1240 = vadd.xlane.f32.xlu1 %v1239_v11  ;;  %v1242_v19 = vsel %vm1175_vm3, %v2706_v40, 0.0 }
 0x437   : > { %1237 = vadd.xlane.f32.xlu0 %v1236_v31 }
 0x438   : > { %v2708_v41 = vpop.eup %2276 }
 0x439   : > { %v1245_v42 = vsel %vm1175_vm3, %v2708_v41, 0.0 }
 0x43a   : > { %1246 = vadd.xlane.f32.xlu1 %v1245_v42 }
 0x43b   : > { %1243 = vadd.xlane.f32.xlu0 %v1242_v19 }
 0x44b   : > { %1609 = vrot.lane.b32.xlu1 %v2564_v37, %s2338_s28 }
 0x451   : > { %1561 = vrot.lane.b32.xlu0 %v2557_v33, %s2338_s28 }
 0x486   : > { %v1229_v20 = vpop.xlane.xlu1 %1228 }
 0x487   : > { %2278 = vrcp.f32 %v1229_v20  ;;  %v1232_v45 = vpop.xlane.xlu0 %1231 }
 0x48a   : > { %v1514_v54 = vpop.permute.xlu1 %1513 }
 0x48b   : > { %v1226_v46 = vpop.xlane.xlu0 %1225 }
 0x48c   : > { %2280 = vrcp.f32 %v1226_v46 }
 0x48d   : > { %2282 = vrcp.f32 %v1232_v45 }
 0x48f   : > { %v1466_v52 = vpop.permute.xlu0 %1465 }
 0x490   : > { %v1471_v7 = vsel %vm1277_vm4, %v1466_v52, 0 }
 0x494   : > { %v2279_v47 = vpop.eup %2278 }
 0x495   : > { %v1257_v25 = vmul.f32 %v2279_v47, %v2263_v58 }
 0x497   : > { %v1265_v50 = vpack.c.bf16 %v1257_v25, %v1257_v25 }
 0x499   : > { %v2281_v51 = vpop.eup %2280  ;;  %2144 = vmatmul.mubr.msk.bf16.vlgmr.msra.gmra.mxu1 %vm1175_vm3, %v1265_v50 }
 0x49a   : > { %2154 = vmatpush3.bf16.msra.mxu1 %v1423_v14  ;;  %v1256_v37 = vmul.f32 %v2281_v51, %v2267_v44  ;;  %2155 = vmatprep.mubr.msk.bf16.mxu1 %vm2335_vm1, %v2334_v48  ;;  %v2283_v29 = vpop.eup %2282  ;;  %v1519_v44 = vsel %vm1277_vm4, %v1514_v54, 0 }
 0x49b   : > { %2165 = vmatprep.subr.bf16.mxu1 %v2334_v48  ;;  %v1258_v28 = vmul.f32 %v2283_v29, %v2682_v34 }
 0x49c   : > { %v1264_v33 = vpack.c.bf16 %v1256_v37, %v1256_v37 }
 0x49d   : > { %v1266_v53 = vpack.c.bf16 %v1258_v28, %v1258_v28 }
 0x49e   : > { %2138 = vmatmul.mubr.msk.bf16.vlgmr.msra.gmra.mxu0 %vm1175_vm3, %v1264_v33 }
 0x49f   : > { %2148 = vmatpush3.bf16.msra.mxu0 %v1375_v16  ;;  %2149 = vmatprep.mubr.msk.bf16.mxu0 %vm2335_vm1, %v2334_v48 }
 0x4a0   : > { %2159 = vmatprep.subr.bf16.mxu0 %v2334_v48 }
 0x4a6   : > { %2150 = vmatmul.mubr.msk.bf16.vlgmr.msra.gmra.mxu0 %vm1175_vm3, %v1266_v53 }
 0x4a7   : > { %2160 = vmatpush3.bf16.msra.mxu0 %v1471_v7  ;;  %2161 = vmatprep.mubr.msk.bf16.mxu0 %vm2335_vm1, %v2334_v48 }
 0x4a8   : > { %2171 = vmatprep.subr.bf16.mxu0 %v2334_v48 }
 0x4bb   : > { %v1235_v55 = vpop.xlane.xlu1 %1234 }
 0x4bc   : > { %2284 = vrcp.f32 %v1235_v55 }
 0x4bf   : > { %v1241_v56 = vpop.xlane.xlu1 %1240 }
 0x4c0   : > { %2286 = vrcp.f32 %v1241_v56  ;;  %v1238_v57 = vpop.xlane.xlu0 %1237 }
 0x4c1   : > { %2288 = vrcp.f32 %v1238_v57 }
 0x4c3   : > { %v1247_v35 = vpop.xlane.xlu1 %1246 }
 0x4c4   : > { %v1244_v32 = vpop.xlane.xlu0 %1243 }
 0x4c5   : > { %2290 = vrcp.f32 %v1244_v32 }
 0x4c6   : > { %2292 = vrcp.f32 %v1247_v35 }
 0x4c7   : > { %v1610_v49 = vpop.permute.xlu1 %1609 }
 0x4c8   : > { %v1562_v62 = vpop.permute.xlu0 %1561  ;;  %v1615_v4 = vsel %vm1277_vm4, %v1610_v49, 0 }
 0x4c9   : > { %v2285_v58 = vpop.eup %2284  ;;  %v1567_v6 = vsel %vm1277_vm4, %v1562_v62, 0 }
 0x4ca   : > { %v1259_v34 = vmul.f32 %v2285_v58, %v2269_v30 }
 0x4cc   : > { %v1267_v59 = vpack.c.bf16 %v1259_v34, %v1259_v34 }
 0x4cd   : > { %v2287_v38 = vpop.eup %2286 }
 0x4ce   : > { %v2289_v60 = vpop.eup %2288  ;;  %2156 = vmatmul.mubr.msk.bf16.vlgmr.msra.gmra.mxu1 %vm1175_vm3, %v1267_v59  ;;  %v1261_v63 = vmul.f32 %v2287_v38, %v2700_v27 }
 0x4cf   : > { %2166 = vmatpush3.bf16.msra.mxu1 %v1519_v44  ;;  %v1260_v61 = vmul.f32 %v2289_v60, %v2698_v21  ;;  %2167 = vmatprep.mubr.msk.bf16.mxu1 %vm2335_vm1, %v2334_v48 }
 0x4d0   : > { %2177 = vmatprep.subr.bf16.mxu1 %v2334_v48  ;;  %v1269_v10 = vpack.c.bf16 %v1261_v63, %v1261_v63 }
 0x4d1   : > { %v1268_v3 = vpack.c.bf16 %v1260_v61, %v1260_v61 }
 0x4d2   : > { %v2291_v39 = vpop.eup %2290 }
 0x4d3   : > { %2162 = vmatmul.mubr.msk.bf16.vlgmr.msra.gmra.mxu0 %vm1175_vm3, %v1268_v3  ;;  %v2293_v15 = vpop.eup %2292  ;;  %v1262_v17 = vmul.f32 %v2291_v39, %v2706_v40 }
 0x4d4   : > { %2172 = vmatpush3.bf16.msra.mxu0 %v1567_v6  ;;  %2173 = vmatprep.mubr.msk.bf16.mxu0 %vm2335_vm1, %v2334_v48  ;;  %v1263_v22 = vmul.f32 %v2293_v15, %v2708_v41 }
 0x4d5   : > { %v1270_v23 = vpack.c.bf16 %v1262_v17, %v1262_v17  ;;  %2183 = vmatprep.subr.bf16.mxu0 %v2245_v36 }
 0x4d6   : > { %2168 = vmatmul.mubr.msk.bf16.vlgmr.msra.gmra.mxu1 %vm1175_vm3, %v1269_v10  ;;  %v1271_v24 = vpack.c.bf16 %v1263_v22, %v1263_v22 }
 0x4d7   : > { %2178 = vmatpush3.bf16.msra.mxu1 %v1615_v4  ;;  %2179 = vmatprep.mubr.msk.bf16.mxu1 %vm2335_vm1, %v2334_v48 }
 0x4db   : > { %2174 = vmatmul.mubr.msk.bf16.vlgmr.msra.gmra.mxu0 %vm1175_vm3, %v1270_v23 }
 0x4dc   : > { %2184 = vmatpush3.bf16.msra.mxu0 %v2245_v36 }
 0x4de   : > { %2180 = vmatmul.mubr.msk.bf16.vlgmr.msra.gmra.mxu1 %vm1175_vm3, %v1271_v24 }
 0x559   : > { %v1363_v26 = vpop.f32.mrf.mxu1 }
 0x55b   : > { %v2145_v30 = vpop.f32.mrf.mxu1 }
 0x55d   : > { %v1366_v18 = vpop.f32.mrf.mxu1 }
 0x55e   : > { %v1315_v48 = vpop.f32.mrf.mxu0 }
 0x55f   : > { %v2028_v21 = vpack.c.bf16 %v1363_v26, %v1315_v48  ;;  %v2146_v27 = vpop.f32.mrf.mxu1 }
 0x560   : > { %v2139_v11 = vpop.f32.mrf.mxu0 }
 0x561   : > { %2185 = vmatprep.mubr.msk.bf16.mxu0 %vm679_vm2, %v2028_v21 }
 0x562   : > { %v1318_v31 = vpop.f32.mrf.mxu0 }
 0x564   : > { %v2140_v40 = vpop.f32.mrf.mxu0 }
 0x566   : > { %v1411_v41 = vpop.f32.mrf.mxu0 }
 0x568   : > { %v2151_v42 = vpop.f32.mrf.mxu0 }
 0x56a   : > { %v1414_v19 = vpop.f32.mrf.mxu0 }
 0x56c   : > { %v2152_v43 = vpop.f32.mrf.mxu0 }
 0x58e   : > { %v1459_v20 = vpop.f32.mrf.mxu1 }
 0x58f   : > { %v2029_v45 = vpack.c.bf16 %v1459_v20, %v1411_v41 }
 0x590   : > { %v2157_v46 = vpop.f32.mrf.mxu1 }
 0x591   : > { %2186 = vmatmul.mubr.msk.bf16.vlgmr.msra.gmra.mxu0 %vm679_vm2, %v2029_v45 }
 0x592   : > { %v1462_v47 = vpop.f32.mrf.mxu1 }
 0x593   : > { %v1507_v25 = vpop.f32.mrf.mxu0 }
 0x594   : > { %v2158_v50 = vpop.f32.mrf.mxu1 }
 0x595   : > { %v2163_v51 = vpop.f32.mrf.mxu0 }
 0x596   : > { %v1555_v14 = vpop.f32.mrf.mxu1 }
 0x597   : > { %v1510_v37 = vpop.f32.mrf.mxu0  ;;  %v2030_v33 = vpack.c.bf16 %v1555_v14, %v1507_v25 }
 0x598   : > { %v2169_v29 = vpop.f32.mrf.mxu1 }
 0x599   : > { %v2164_v16 = vpop.f32.mrf.mxu0  ;;  %2189 = vmatprep.mubr.msk.bf16.mxu0 %vm679_vm2, %v2030_v33 }
 0x59a   : > { %v1558_v28 = vpop.f32.mrf.mxu1 }
 0x59b   : > { %v1603_v52 = vpop.f32.mrf.mxu0 }
 0x59c   : > { %v2170_v53 = vpop.f32.mrf.mxu1 }
 0x59d   : > { %v2175_v7 = vpop.f32.mrf.mxu0 }
 0x59e   : > { %v1651_v54 = vpop.f32.mrf.mxu1 }
 0x59f   : > { %v1606_v55 = vpop.f32.mrf.mxu0  ;;  %v2031_v56 = vpack.c.bf16 %v1651_v54, %v1603_v52 }
 0x5a0   : > { %v2181_v57 = vpop.f32.mrf.mxu1 }
 0x5a1   : > { %v2176_v32 = vpop.f32.mrf.mxu0  ;;  %2190 = vmatmul.mubr.msk.bf16.gmra.mxu0 %vm679_vm2, %v2031_v56 }
 0x5a2   : > { %v1654_v35 = vpop.f32.mrf.mxu1 }
 0x5a4   : > { %v2182_v58 = vpop.f32.mrf.mxu1 }
 0x651   : > { %v2187_v34 = vpop.f32.mrf.mxu0 }
 0x653   : > { %v1737_v59 = vpop.f32.mrf.mxu0 }
 0x655   : > { %v2188_v38 = vpop.f32.mrf.mxu0 }
 0x657   : > { %v1740_v60 = vpop.f32.mrf.mxu0 }
 0x661   : > { %v2191_v44 = vpop.f32.mrf.mxu0 }
 0x663   : > { %v1753_v61 = vpop.f32.mrf.mxu0  ;;  %1771 = sbr.rel (%p2016_p8) target bundleno = 1649 (0x671), region = 56 }
 0x665   : > { %v2192_v62 = vpop.f32.mrf.mxu0 }
 0x667   : > { %v1756_v63 = vpop.f32.mrf.mxu0 }
 0x668   : > { %v2017_v3 = vld [vmem:[%s2829_s7] ss:$0 sm:$0xff] }
 0x669   : > { %v1779_v39 = vadd.f32 %v2017_v3, %v2427_v0  ;;  %v1780_v49 = vadd.f32 %v2017_v3, %v2431_v2  ;;  %v1781_v6 = vadd.f32 %v2017_v3, %v2429_v1  ;;  %v1782_v10 = vadd.f32 %v2017_v3, %v2437_v5 }
 0x66a   : > { %v1783_v15 = vadd.f32 %v2017_v3, %v2443_v8  ;;  %v1784_v17 = vadd.f32 %v2017_v3, %v2445_v9  ;;  %v1785_v4 = vadd.f32 %v2017_v3, %v2451_v12  ;;  %v1786_v22 = vadd.f32 %v2017_v3, %v2453_v13 }
 0x66b   : > { %v1787_v23 = vadd.f32 %v1779_v39, %v1737_v59  ;;  %v1788_v24 = vadd.f32 %v1780_v49, %v1740_v60  ;;  %v1789_v36 = vadd.f32 %v2187_v34, %v1781_v6  ;;  %v1790_v26 = vadd.f32 %v2188_v38, %v1782_v10 }
 0x66c   : > { %v1791_v30 = vadd.f32 %v1783_v15, %v1753_v61  ;;  %v1792_v0 = vadd.f32 %v1784_v17, %v1756_v63  ;;  %v1793_v18 = vadd.f32 %v2191_v44, %v1785_v4  ;;  %v1794_v2 = vadd.f32 %v2192_v62, %v1786_v22 }
 0x66d   : > { %1795 = vst.msk [vmem:[#allocation2] sm:$0xff] %vm411_vm0, %v1787_v23  ;;  %1796 = vst.msk [vmem:[#allocation2 + $0x8] sm:$0xff] %vm411_vm0, %v1788_v24 }
 0x66e   : > { %1797 = vst.msk [vmem:[#allocation2 + $0x10] sm:$0xff] %vm411_vm0, %v1789_v36  ;;  %1798 = vst.msk [vmem:[#allocation2 + $0x18] sm:$0xff] %vm411_vm0, %v1790_v26 }
 0x66f   : > { %1799 = vst.msk [vmem:[#allocation2 + $0x20] sm:$0xff] %vm411_vm0, %v1791_v30  ;;  %1800 = vst.msk [vmem:[#allocation2 + $0x28] sm:$0xff] %vm411_vm0, %v1792_v0 }
 0x670   : > { %1801 = vst.msk [vmem:[#allocation2 + $0x30] sm:$0xff] %vm411_vm0, %v1793_v18  ;;  %1802 = vst.msk [vmem:[#allocation2 + $0x38] sm:$0xff] %vm411_vm0, %v1794_v2 }
 0x671 PF: > { %p2018_p9 = scmp.le.s32.totalorder %s2316_s27, 0 }
 0x673   : > { %1806 = sbr.rel (%p2018_p9) target bundleno = 1663 (0x67f), region = 60 }
 0x678   : > { %v1807_v1 = vld [vmem:[#allocation2] sm:$0xff]  ;;  %v1808_v5 = vld [vmem:[#allocation2 + $0x8] sm:$0xff]  ;;  %v1809_v8 = vld [vmem:[#allocation2 + $0x10] sm:$0xff] }
 0x679   : > { %v1815_v9 = vadd.f32 %v1807_v1, %v1737_v59  ;;  %v1816_v12 = vadd.f32 %v1808_v5, %v1740_v60  ;;  %v1817_v13 = vadd.f32 %v2187_v34, %v1809_v8  ;;  %v1810_v48 = vld [vmem:[#allocation2 + $0x18] sm:$0xff]  ;;  %v1811_v21 = vld [vmem:[#allocation2 + $0x20] sm:$0xff]  ;;  %v1812_v27 = vld [vmem:[#allocation2 + $0x28] sm:$0xff] }
 0x67a   : > { %v1818_v11 = vadd.f32 %v2188_v38, %v1810_v48  ;;  %v1819_v31 = vadd.f32 %v1811_v21, %v1753_v61  ;;  %v1820_v40 = vadd.f32 %v1812_v27, %v1756_v63  ;;  %v1813_v41 = vld [vmem:[#allocation2 + $0x30] sm:$0xff]  ;;  %v1814_v42 = vld [vmem:[#allocation2 + $0x38] sm:$0xff] }
 0x67b   : > { %1823 = vst.msk [vmem:[#allocation2] sm:$0xff] %vm411_vm0, %v1815_v9  ;;  %1824 = vst.msk [vmem:[#allocation2 + $0x8] sm:$0xff] %vm411_vm0, %v1816_v12  ;;  %v1821_v19 = vadd.f32 %v2191_v44, %v1813_v41  ;;  %v1822_v43 = vadd.f32 %v2192_v62, %v1814_v42 }
 0x67c   : > { %1825 = vst.msk [vmem:[#allocation2 + $0x10] sm:$0xff] %vm411_vm0, %v1817_v13  ;;  %1826 = vst.msk [vmem:[#allocation2 + $0x18] sm:$0xff] %vm411_vm0, %v1818_v11 }
 0x67d   : > { %1827 = vst.msk [vmem:[#allocation2 + $0x20] sm:$0xff] %vm411_vm0, %v1819_v31  ;;  %1828 = vst.msk [vmem:[#allocation2 + $0x28] sm:$0xff] %vm411_vm0, %v1820_v40 }
 0x67e   : > { %1829 = vst.msk [vmem:[#allocation2 + $0x30] sm:$0xff] %vm411_vm0, %v1821_v19  ;;  %1830 = vst.msk [vmem:[#allocation2 + $0x38] sm:$0xff] %vm411_vm0, %v1822_v43 }
 0x67f PF: > { %p2019_p10 = scmp.ne.s32.totalorder %s2316_s27, 1 }
 0x681   : > { %1834 = sbr.rel (%p2019_p10) target bundleno = 1675 (0x68b), region = 64 }
 0x686   : > { %v1835_v20 = vld [vmem:[#allocation2] sm:$0xff]  ;;  %v1836_v45 = vld [vmem:[#allocation2 + $0x8] sm:$0xff]  ;;  %v1837_v46 = vld [vmem:[#allocation2 + $0x10] sm:$0xff] }
 0x687   : > { %1843 = vst.msk [vmem:[%s2425_s19] sm:$0xff] %vm411_vm0, %v1835_v20  ;;  %1844 = vst.msk [vmem:[%s2425_s19 + $0x8] sm:$0xff] %vm411_vm0, %v1836_v45  ;;  %v1838_v47 = vld [vmem:[#allocation2 + $0x18] sm:$0xff]  ;;  %v1839_v25 = vld [vmem:[#allocation2 + $0x20] sm:$0xff] }
 0x688   : > { %1845 = vst.msk [vmem:[%s2425_s19 + $0x10] sm:$0xff] %vm411_vm0, %v1837_v46  ;;  %v1840_v50 = vld [vmem:[#allocation2 + $0x28] sm:$0xff]  ;;  %1846 = vst.msk [vmem:[%s2425_s19 + $0x18] sm:$0xff] %vm411_vm0, %v1838_v47  ;;  %v1841_v51 = vld [vmem:[#allocation2 + $0x30] sm:$0xff] }
 0x689   : > { %1847 = vst.msk [vmem:[%s2425_s19 + $0x20] sm:$0xff] %vm411_vm0, %v1839_v25  ;;  %1848 = vst.msk [vmem:[%s2425_s19 + $0x28] sm:$0xff] %vm411_vm0, %v1840_v50  ;;  %v1842_v14 = vld [vmem:[#allocation2 + $0x38] sm:$0xff] }
 0x68a   : > { %1849 = vst.msk [vmem:[%s2425_s19 + $0x30] sm:$0xff] %vm411_vm0, %v1841_v51  ;;  %1850 = vst.msk [vmem:[%s2425_s19 + $0x38] sm:$0xff] %vm411_vm0, %v1842_v14 }
 0x68b PF: > { %s18_s9 = sadd.s32 1, %s2332_s9   ;;  %s2831_s27 = smov %s2324_s29 }
 0x68c   : > { %p15_p11 = scmp.ge.s32.totalorder %s18_s9, 6   ;;  %s2832_s28 = smov %s2328_s30 }
 0x68d   : > { %s2833_s29 = smov %s2836_s10  ;;  %s2834_s30 = smov %s2840_s11 }
 0x68e   :  { %17 = sbr.rel (!%p15_p11) target bundleno = 3 (0x3), region = 106 }

// kernel: _lambda_.7
= control target key start
LH: loop header
LB: loop body
LE: loop exit
PB: predicated region body
PF: predicated region fallthrough
CT: control target
= control target key end

     0   :  { %s3358_s23 = smov 0   ;;  %s3360_s24 = smov 0   ;;  %s3983_s0 = inlined_call_operand.vmem [shape: f32[16,8,32], index: 0, kind: input, shape index: {}]   ;;  %s3984_s1 = inlined_call_operand.vmem [shape: f32[16,8], index: 1, kind: input, shape index: {}]   ;;  %s3985_s2 = inlined_call_operand.vmem [shape: f32[1,32], index: 2, kind: input, shape index: {}]   ;;  %s3986_s3 = inlined_call_operand.vmem [shape: f32[1,32], index: 3, kind: input, shape index: {}]   ;;  %s3987_s4 = inlined_call_operand.vmem [shape: bf16[2,32,48], index: 4, kind: input, shape index: {}]   ;;  %s3988_s5 = inlined_call_operand.vmem [shape: f32[2,1,48], index: 5, kind: input, shape index: {}]   ;;  %s3989_s6 = inlined_call_operand.vmem [shape: bf16[2,16,32], index: 6, kind: input, shape index: {}]   ;;  %s3990_s7 = inlined_call_operand.vmem [shape: f32[1,32], index: 7, kind: input, shape index: {}]   ;;  %s3991_s8 = inlined_call_operand.vmem [shape: f32[1,32], index: 8, kind: input, shape index: {}]   ;;  %s3992_s9 = inlined_call_operand.vmem [shape: f32[1,32], index: 9, kind: input, shape index: {}]   ;;  %s3993_s10 = inlined_call_operand.vmem [shape: bf16[32,64], index: 10, kind: input, shape index: {}]   ;;  %s3994_s11 = inlined_call_operand.vmem [shape: f32[1,64], index: 11, kind: input, shape index: {}]   ;;  %s3995_s12 = inlined_call_operand.vmem [shape: bf16[64,32], index: 12, kind: input, shape index: {}]   ;;  %s3996_s13 = inlined_call_operand.vmem [shape: f32[1,32], index: 13, kind: input, shape index: {}]   ;;  %s3997_s14 = inlined_call_operand.vmem [shape: f32[1,32], index: 14, kind: input, shape index: {}]   ;;  %s3998_s15 = inlined_call_operand.<no memory space> [shape: f32[1,1], index: 15, kind: input, shape index: {}]   ;;  %s3999_s16 = inlined_call_operand.vmem [shape: f32[16,8], index: 16, kind: output, shape index: {}]  }
   0x1   :  { %4000 = sst [smem:[#allocation4_spill]] %s3983_s0  ;;  %v21_v0 = vstv %s3998_s15  ;;  %s3362_s25 = smov 0  }
   0x2   :  { %22 = vst [vmem:[#allocation3] sm:$0x1] %v21_v0  ;;  %s3364_s26 = smov 0   ;;  %s3366_s27 = smov 0  }
   0x3 LB: > { %s37_s15 = sadd.s32 1, %s3254_s25  ;;  %s40_s28 = sadd.s32 1, %s3258_s26  ;;  %s3262_s27 = sphi %s3366_s27, %s28_s27   ;;  %s3258_s26 = sphi %s3364_s26, %s4005_s26   ;;  %s3254_s25 = sphi %s3362_s25, %s4004_s25   ;;  %s3250_s24 = sphi %s3360_s24, %s4003_s24   ;;  %s3246_s23 = sphi %s3358_s23, %s4002_s23  }
   0x4   : > { %p38_p0 = scmp.ge.s32.totalorder %s37_s15, 2  ;;  %p2781_p1 = scmp.ge.s32.totalorder %s3262_s27, 1 }
   0x5   : > { %p514_p2 = scmp.lt.s32.totalorder %s3262_s27, 5 }
   0x6   : > { %s4007_s15 = smov (%p38_p0, %s37_s15), 0  ;;  %s4009_s28 = smov (!%p38_p0, %s40_s28), %s3258_s26 }
   0x7   : > { %p515_p3 = pnand %p2781_p1, %p514_p2  ;;  %p42_p4 = scmp.ge.s32.totalorder %s4009_s28, 2 }
   0x8   : > { %s2782_s29 = sshll.u32 (!%p515_p3), %s3250_s24, 3  ;;  %s4001_s18 = sld [smem:[#allocation4_spill]] (!%p515_p3) }
   0x9   : > { %s4011_s28 = smov (%p42_p4, %s4009_s28), 0  ;;  %518 = sbr.rel (%p515_p3) target bundleno = 2593 (0xa21), region = 84 }
   0xa   : > { %p581_p5 = scmp.lt.s32.totalorder (!%p515_p3), %s2782_s29, 15  ;;  %p590_p6 = scmp.lt.s32.totalorder (!%p515_p3), %s3246_s23, 1 }
   0xb   : > { %p586_p7 = scmp.lt.s32.totalorder (!%p515_p3), %s3250_s24, 1  ;;  %p2828_p8 = scmp.ne.s32.totalorder (!%p515_p3), %s3246_s23, 0 }
   0xe   : > { %s4013_s29 = smov (!%p581_p5, %s2782_s29), 15  ;;  %vm626_vm0 = vcmask 261120   ;;  %vm3265_vm1 = vmmov 0   ;;  %vm894_vm2 = vcmask 130048   ;;  %s4015_s24 = smov (!%p586_p7, %s3250_s24), 1  ;;  %vm1390_vm3 = vcmask 64512  }
   0xf   : > { %s2783_s30 = sshll.u32 %s4013_s29, 3  ;;  %s2784_s0 = sshll.u32 %s4015_s24, 3  ;;  %vm1492_vm4 = vcmask 1043456  }
  0x10   : > { %s584_s19 = scalar_lea.vmem %s4001_s18, %s2783_s30  ;;  %s3268_s24 = smov 96  }
  0x11   : > { %v3396_v1 = vld [vmem:[%s584_s19] sm:$0xff]  ;;  %v3398_v2 = vld [vmem:[%s584_s19 + $0x10] sm:$0xff]  ;;  %v3400_v3 = vld [vmem:[%s584_s19 + $0x8] sm:$0xff]  ;;  %s3478_s20 = scalar_select %p590_p6, %s3246_s23, 1 }
  0x12   : > { %v627_v4 = vsel %vm626_vm0, %v3396_v1, 0.0  ;;  %v633_v5 = vsel %vm626_vm0, %v3398_v2, 0.0  ;;  %v3406_v6 = vld [vmem:[%s584_s19 + $0x18] sm:$0xff]  ;;  %v630_v7 = vsel %vm626_vm0, %v3400_v3, 0.0  ;;  %v3412_v9 = vld [vmem:[%s584_s19 + $0x20] sm:$0xff]  ;;  %v3414_v10 = vld [vmem:[%s584_s19 + $0x28] sm:$0xff] }
  0x13   : > { %628 = vadd.xlane.f32.xlu0 %v627_v4  ;;  %634 = vadd.xlane.f32.xlu1 %v633_v5  ;;  %v636_v8 = vsel %vm626_vm0, %v3406_v6, 0.0  ;;  %v639_v11 = vsel %vm626_vm0, %v3412_v9, 0.0  ;;  %v642_v12 = vsel %vm626_vm0, %v3414_v10, 0.0  ;;  %v3420_v13 = vld [vmem:[%s584_s19 + $0x30] sm:$0xff]  ;;  %v3422_v14 = vld [vmem:[%s584_s19 + $0x38] sm:$0xff]  ;;  %s2862_s21 = sshll.u32 %s3478_s20, 4  ;;  %s597_s29 = scalar_lea.vmem %s3988_s5, %s3478_s20 }
  0x14   : > { %v645_v15 = vsel %vm626_vm0, %v3420_v13, 0.0  ;;  %v648_v16 = vsel %vm626_vm0, %v3422_v14, 0.0  ;;  %s594_s30 = scalar_lea.vmem %s3987_s4, %s2862_s21  ;;  %s3589_s19 = scalar_lea.vmem %s3999_s16, %s2784_s0 }
  0x15   : > { %v3133_v57 = vld [vmem:[%s594_s30 + $0x8] sm:$0xff]   ;;  %v3134_v58 = vld [vmem:[%s594_s30] sm:$0xff]   ;;  %s3266_s30 = smov 112  }
  0x16   : > { %2937 = vmatprep.subr.bf16.mxu0 %v3133_v57  ;;  %3083 = vmatprep.subr.bf16.mxu1 %v3133_v57 }
  0x17   : > { %631 = vadd.xlane.f32.xlu0 %v630_v7  ;;  %637 = vadd.xlane.f32.xlu1 %v636_v8 }
  0x18   : > { %2938 = vmatpush3.bf16.msra.mxu0 %v3133_v57  ;;  %3085 = vmatpush3.bf16.msra.mxu1 %v3133_v57 }
  0x19   : > { %2939 = vmatprep.subr.bf16.mxu0 %v3134_v58  ;;  %3084 = vmatprep.subr.bf16.mxu1 %v3134_v58 }
  0x1b   : > { %640 = vadd.xlane.f32.xlu0 %v639_v11  ;;  %643 = vadd.xlane.f32.xlu1 %v642_v12 }
  0x1c   : > { %2940 = vmatpush3.bf16.msra.mxu0 %v3134_v58  ;;  %3086 = vmatpush3.bf16.msra.mxu1 %v3134_v58 }
  0x1f   : > { %646 = vadd.xlane.f32.xlu0 %v645_v15  ;;  %649 = vadd.xlane.f32.xlu1 %v648_v16 }
  0x9c   : > { %v629_v17 = vpop.xlane.xlu0 %628  ;;  %v635_v18 = vpop.xlane.xlu1 %634 }
  0x9d   : > { %v652_v19 = vmul.f32 0.03125, %v629_v17  ;;  %v654_v20 = vmul.f32 0.03125, %v635_v18 }
  0x9f   : > { %v3429_v21 = vsub.f32 %v3396_v1, %v652_v19  ;;  %v3432_v22 = vsub.f32 %v3398_v2, %v654_v20 }
  0xa0   : > { %v632_v23 = vpop.xlane.xlu0 %631  ;;  %v638_v24 = vpop.xlane.xlu1 %637 }
  0xa1   : > { %v653_v25 = vmul.f32 0.03125, %v632_v23  ;;  %v655_v26 = vmul.f32 0.03125, %v638_v24  ;;  %v668_v27 = vmul.f32 %v3429_v21, %v3429_v21  ;;  %v670_v28 = vmul.f32 %v3432_v22, %v3432_v22 }
  0xa3   : > { %v3439_v29 = vsub.f32 %v3400_v3, %v653_v25  ;;  %v3442_v30 = vsub.f32 %v3406_v6, %v655_v26  ;;  %v676_v31 = vsel %vm626_vm0, %v668_v27, 0.0  ;;  %v682_v34 = vsel %vm626_vm0, %v670_v28, 0.0 }
  0xa4   : > { %677 = vadd.xlane.f32.xlu0 %v676_v31  ;;  %v641_v32 = vpop.xlane.xlu0 %640  ;;  %v644_v33 = vpop.xlane.xlu1 %643 }
  0xa5   : > { %v656_v35 = vmul.f32 0.03125, %v641_v32  ;;  %v657_v36 = vmul.f32 0.03125, %v644_v33  ;;  %v669_v37 = vmul.f32 %v3439_v29, %v3439_v29  ;;  %v671_v38 = vmul.f32 %v3442_v30, %v3442_v30  ;;  %v2790_v33 = vld [vmem:[%s3985_s2] ss:$0 sm:$0xff] }
  0xa7   : > { %v3451_v39 = vsub.f32 %v3412_v9, %v656_v35  ;;  %v3454_v40 = vsub.f32 %v3414_v10, %v657_v36  ;;  %v679_v41 = vsel %vm626_vm0, %v669_v37, 0.0  ;;  %v685_v44 = vsel %vm626_vm0, %v671_v38, 0.0  ;;  %v2791_v38 = vld [vmem:[%s3986_s3] ss:$0 sm:$0xff] }
  0xa8   : > { %683 = vadd.xlane.f32.xlu0 %v682_v34  ;;  %680 = vadd.xlane.f32.xlu1 %v679_v41  ;;  %v647_v42 = vpop.xlane.xlu0 %646  ;;  %v650_v43 = vpop.xlane.xlu1 %649 }
  0xa9   : > { %v658_v45 = vmul.f32 0.03125, %v647_v42  ;;  %v659_v46 = vmul.f32 0.03125, %v650_v43  ;;  %v672_v47 = vmul.f32 %v3451_v39, %v3451_v39  ;;  %v673_v48 = vmul.f32 %v3454_v40, %v3454_v40 }
  0xab   : > { %v3463_v49 = vsub.f32 %v3420_v13, %v658_v45  ;;  %v3466_v50 = vsub.f32 %v3422_v14, %v659_v46  ;;  %v688_v51 = vsel %vm626_vm0, %v672_v47, 0.0  ;;  %v691_v52 = vsel %vm626_vm0, %v673_v48, 0.0 }
  0xac   : > { %686 = vadd.xlane.f32.xlu1 %v685_v44  ;;  %689 = vadd.xlane.f32.xlu0 %v688_v51 }
  0xad   : > { %v674_v53 = vmul.f32 %v3463_v49, %v3463_v49  ;;  %v675_v54 = vmul.f32 %v3466_v50, %v3466_v50 }
  0xaf   : > { %v694_v55 = vsel %vm626_vm0, %v674_v53, 0.0  ;;  %v697_v56 = vsel %vm626_vm0, %v675_v54, 0.0 }
  0xb0   : > { %692 = vadd.xlane.f32.xlu1 %v691_v52  ;;  %695 = vadd.xlane.f32.xlu0 %v694_v55 }
  0xb4   : > { %698 = vadd.xlane.f32.xlu1 %v697_v56 }
 0x12d   : > { %v678_v59 = vpop.xlane.xlu0 %677 }
 0x12e   : > { %v700_v60 = vmul.f32 0.03125, %v678_v59 }
 0x130   : > { %v708_v61 = vadd.f32 1e-05, %v700_v60 }
 0x131   : > { %v681_v62 = vpop.xlane.xlu1 %680  ;;  %v684_v63 = vpop.xlane.xlu0 %683 }
 0x132   : > { %3137 = vrsqrt.f32 %v708_v61  ;;  %v701_v0 = vmul.f32 0.03125, %v681_v62  ;;  %v702_v4 = vmul.f32 0.03125, %v684_v63 }
 0x134   : > { %v709_v5 = vadd.f32 1e-05, %v701_v0  ;;  %v710_v7 = vadd.f32 1e-05, %v702_v4 }
 0x135   : > { %v687_v8 = vpop.xlane.xlu1 %686  ;;  %v690_v11 = vpop.xlane.xlu0 %689 }
 0x136   : > { %3139 = vrsqrt.f32 %v709_v5  ;;  %v703_v12 = vmul.f32 0.03125, %v687_v8  ;;  %v704_v15 = vmul.f32 0.03125, %v690_v11 }
 0x137   : > { %3141 = vrsqrt.f32 %v710_v7  ;;  %v2792_v7 = vld [vmem:[%s597_s29] ss:$0 sm:$0xff]  ;;  %s589_s29 = scalar_lea.vmem %s3984_s1, %s2784_s0 }
 0x138   : > { %v711_v16 = vadd.f32 1e-05, %v703_v12  ;;  %v712_v17 = vadd.f32 1e-05, %v704_v15 }
 0x139   : > { %v693_v18 = vpop.xlane.xlu1 %692  ;;  %v696_v19 = vpop.xlane.xlu0 %695 }
 0x13a   : > { %3143 = vrsqrt.f32 %v711_v16  ;;  %v705_v20 = vmul.f32 0.03125, %v693_v18  ;;  %v706_v23 = vmul.f32 0.03125, %v696_v19 }
 0x13b   : > { %3145 = vrsqrt.f32 %v712_v17 }
 0x13c   : > { %v713_v24 = vadd.f32 1e-05, %v705_v20  ;;  %v714_v25 = vadd.f32 1e-05, %v706_v23 }
 0x13d   : > { %v699_v26 = vpop.xlane.xlu1 %698 }
 0x13e   : > { %3147 = vrsqrt.f32 %v713_v24  ;;  %v707_v27 = vmul.f32 0.03125, %v699_v26 }
 0x13f   : > { %v3138_v28 = vpop.eup %3137  ;;  %3149 = vrsqrt.f32 %v714_v25 }
 0x140   : > { %v715_v31 = vadd.f32 1e-05, %v707_v27  ;;  %v724_v32 = vmul.f32 %v3138_v28, %v3429_v21 }
 0x142   : > { %3151 = vrsqrt.f32 %v715_v31  ;;  %v738_v37 = vmul.f32 %v2790_v33, %v724_v32 }
 0x143   : > { %v3140_v34 = vpop.eup %3139 }
 0x144   : > { %v3142_v35 = vpop.eup %3141  ;;  %v725_v36 = vmul.f32 %v3140_v34, %v3439_v29  ;;  %v752_v21 = vadd.f32 %v2791_v38, %v738_v37 }
 0x145   : > { %v726_v41 = vmul.f32 %v3142_v35, %v3432_v22 }
 0x146   : > { %v739_v42 = vmul.f32 %v2790_v33, %v725_v36 }
 0x147   : > { %v3144_v43 = vpop.eup %3143  ;;  %v740_v47 = vmul.f32 %v2790_v33, %v726_v41 }
 0x148   : > { %v3146_v44 = vpop.eup %3145  ;;  %v753_v45 = vadd.f32 %v2791_v38, %v739_v42  ;;  %v727_v46 = vmul.f32 %v3144_v43, %v3442_v30 }
 0x149   : > { %v728_v48 = vmul.f32 %v3146_v44, %v3451_v39  ;;  %v754_v54 = vadd.f32 %v2791_v38, %v740_v47 }
 0x14a   : > { %v2864_v51 = vpack.c.bf16 %v753_v45, %v752_v21  ;;  %v741_v52 = vmul.f32 %v2790_v33, %v727_v46 }
 0x14b   : > { %v3148_v29 = vpop.eup %3147  ;;  %v742_v56 = vmul.f32 %v2790_v33, %v728_v48 }
 0x14c   : > { %v3150_v53 = vpop.eup %3149  ;;  %2941 = vmatprep.mubr.msk.bf16.mxu0 %vm626_vm0, %v2864_v51  ;;  %v755_v55 = vadd.f32 %v2791_v38, %v741_v52  ;;  %v729_v22 = vmul.f32 %v3148_v29, %v3454_v40 }
 0x14d   : > { %v730_v57 = vmul.f32 %v3150_v53, %v3463_v49  ;;  %v756_v30 = vadd.f32 %v2791_v38, %v742_v56  ;;  %v3264_v49 = vmov 0.0   ;;  %v3267_v56 = vmov 1966171168  }
 0x14e   : > { %v2865_v58 = vpack.c.bf16 %v755_v55, %v754_v54  ;;  %v743_v59 = vmul.f32 %v2790_v33, %v729_v22  ;;  %2949 = vmatprep.subr.bf16.mxu1 %v3264_v49  ;;  %2961 = vmatprep.subr.bf16.mxu0 %v3264_v49 }
 0x14f   : > { %v3152_v60 = vpop.eup %3151  ;;  %v744_v62 = vmul.f32 %v2790_v33, %v730_v57  ;;  %v1295_v57 = vunpack.c.l.s4 %v3267_v56 }
 0x150   : > { %2942 = vmatmul.mubr.msk.bf16.vlgmr.msra.gmra.mxu0 %vm626_vm0, %v2865_v58  ;;  %v757_v39 = vadd.f32 %v2791_v38, %v743_v59  ;;  %v731_v61 = vmul.f32 %v3152_v60, %v3466_v50  ;;  %v1297_v58 = vlaneseq }
 0x151   : > { %v758_v4 = vadd.f32 %v2791_v38, %v744_v62  ;;  %2963 = vmatprep.mubr.msk.bf16.mxu0 %vm3265_vm1, %v3264_v49  ;;  %v1296_v59 = vunpack.c.0.s8 %v1295_v57 }
 0x152   : > { %v2866_v63 = vpack.c.bf16 %v757_v39, %v756_v30  ;;  %v745_v0 = vmul.f32 %v2790_v33, %v731_v61  ;;  %v3592_v60 = vshrl.u32 %v1297_v58, 7  ;;  %v616_v39 = vld [vmem:[%s589_s29] sm:$0xff] }
 0x154   : > { %2945 = vmatprep.mubr.msk.bf16.mxu1 %vm626_vm0, %v2866_v63  ;;  %v759_v40 = vadd.f32 %v2791_v38, %v745_v0  ;;  %v3598_v30 = vsub.s32 %v1296_v59, %v3592_v60 }
 0x156   : > { %v2867_v5 = vpack.c.bf16 %v759_v40, %v758_v4  ;;  %v1300_v61 = vrot.slane %v616_v39, %v3598_v30 }
 0x158   : > { %2946 = vmatmul.mubr.msk.bf16.vlgmr.msra.gmra.mxu1 %vm626_vm0, %v2867_v5  ;;  %v1308_v62 = vcombine.high %v1300_v61, %v1300_v61  ;;  %v1316_v0 = vrot.slane %v1300_v61, %v3598_v30 }
 0x159   : > { %2951 = vmatprep.mubr.msk.bf16.mxu1 %vm3265_vm1, %v3264_v49 }
 0x15a   : > { %v1338_v40 = vcombine.high %v1316_v0, %v1316_v0  ;;  %v1330_v5 = vrot.slane %v1308_v62, %v3598_v30 }
 0x15c   : > { %v1340_v61 = vcombine.high %v1330_v5, %v1330_v5 }
 0x210   : > { %v2943_v50 = vpop.f32.mrf.mxu0 }
 0x211   : > { %v861_v19 = vadd.f32 %v2943_v50, %v2792_v7  ;;  %v1293_v50 = vcombine.high %v616_v39, %v616_v39 }
 0x212   : > { %v852_v8 = vpop.f32.mrf.mxu0 }
 0x213   : > { %v853_v11 = vadd.f32 %v2792_v7, %v852_v8  ;;  %v3518_v26 = vpack.c.bf16 %v861_v19, %v861_v19  ;;  %v3604_v8 = vsub.s32 0, %v3592_v60 }
 0x214   : > { %v2944_v12 = vpop.f32.mrf.mxu0 }
 0x215   : > { %v3512_v15 = vpack.c.bf16 %v853_v11, %v853_v11  ;;  %v864_v27 = vadd.f32 %v2944_v12, %v2792_v7  ;;  %v1353_v12 = vrot.slane %v1338_v40, %v3604_v8 }
 0x216   : > { %v855_v16 = vpop.f32.mrf.mxu0 }
 0x217   : > { %v856_v17 = vadd.f32 %v2792_v7, %v855_v16  ;;  %892 = vrot.lane.b32.xlu0 %v3512_v15, %s3266_s30  ;;  %v3524_v33 = vpack.c.bf16 %v864_v27, %v864_v27  ;;  %v1349_v16 = vrot.slane %v1330_v5, %v3604_v8  ;;  %v1345_v27 = vrot.slane %v1316_v0, %v3604_v8 }
 0x218   : > { %v2947_v18 = vpop.f32.mrf.mxu1 }
 0x219   : > { %v3515_v20 = vpack.c.bf16 %v856_v17, %v856_v17  ;;  %v877_v28 = vadd.f32 %v2947_v18, %v2792_v7  ;;  %v3609_v17 = vrot.slane %v1293_v50, %v3598_v30 }
 0x21a   : > { %v868_v23 = vpop.f32.mrf.mxu1 }
 0x21b   : > { %v869_v24 = vadd.f32 %v2792_v7, %v868_v23  ;;  %942 = vrot.lane.b32.xlu1 %v3515_v20, %s3266_s30  ;;  %v3526_v34 = vpack.c.bf16 %v877_v28, %v877_v28 }
 0x21c   : > { %v2948_v25 = vpop.f32.mrf.mxu1 }
 0x21d   : > { %v3520_v31 = vpack.c.bf16 %v869_v24, %v869_v24  ;;  %v880_v36 = vadd.f32 %v2948_v25, %v2792_v7 }
 0x21e   : > { %v871_v32 = vpop.f32.mrf.mxu1 }
 0x21f   : > { %991 = vrot.lane.b32.xlu1 %v3518_v26, %s3266_s30  ;;  %1089 = vrot.lane.b32.xlu0 %v3520_v31, %s3266_s30  ;;  %v872_v35 = vadd.f32 %v2792_v7, %v871_v32  ;;  %v3533_v38 = vpack.c.bf16 %v880_v36, %v880_v36 }
 0x221   : > { %v3530_v37 = vpack.c.bf16 %v872_v35, %v872_v35 }
 0x223   : > { %1040 = vrot.lane.b32.xlu1 %v3524_v33, %s3266_s30  ;;  %1187 = vrot.lane.b32.xlu0 %v3526_v34, %s3266_s30 }
 0x227   : > { %1138 = vrot.lane.b32.xlu1 %v3530_v37, %s3266_s30 }
 0x22b   : > { %1236 = vrot.lane.b32.xlu1 %v3533_v38, %s3266_s30  ;;  %s2863_s30 = sshll.u32 %s3478_s20, 3 }
 0x22c   : > { %s602_s18 = scalar_lea.vmem %s3989_s6, %s2863_s30 }
 0x289   : > { %v893_v41 = vpop.permute.xlu0 %892 }
 0x28a   : > { %v899_v42 = vsel %vm894_vm2, %v893_v41, 0  ;;  %v1323_v41 = vrot.slane %v3609_v17, %v3598_v30 }
 0x28b   : > { %2950 = vmatpush3.bf16.xpose.msra.mxu1 %v899_v42 }
 0x28c   : > { %2955 = vmatprep.subr.bf16.mxu1 %v3264_v49  ;;  %v1339_v56 = vcombine.high %v1323_v41, %v1323_v41 }
 0x28d   : > { %v943_v43 = vpop.permute.xlu1 %942 }
 0x28e   : > { %v948_v21 = vsel %vm894_vm2, %v943_v43, 0  ;;  %v1369_v0 = vrot.slane %v1339_v56, %v3604_v8 }
 0x291   : > { %v992_v44 = vpop.permute.xlu1 %991  ;;  %v1090_v46 = vpop.permute.xlu0 %1089 }
 0x292   : > { %v997_v45 = vsel %vm894_vm2, %v992_v44, 0  ;;  %2952 = vmatmul.mubr.msk.bf16.vlgmr.msra.gmra.mxu1 %vm894_vm2, %v3512_v15  ;;  %v1095_v48 = vsel %vm894_vm2, %v1090_v46, 0 }
 0x293   : > { %2956 = vmatpush3.bf16.xpose.msra.mxu1 %v948_v21  ;;  %2962 = vmatpush3.bf16.xpose.msra.mxu0 %v997_v45 }
 0x294   : > { %2957 = vmatprep.mubr.msk.bf16.mxu1 %vm3265_vm1, %v3264_v49  ;;  %2967 = vmatprep.subr.bf16.mxu1 %v3264_v49 }
 0x295   : > { %2973 = vmatprep.subr.bf16.mxu0 %v3264_v49  ;;  %v1041_v47 = vpop.permute.xlu1 %1040  ;;  %v1188_v52 = vpop.permute.xlu0 %1187 }
 0x296   : > { %v1046_v51 = vsel %vm894_vm2, %v1041_v47, 0  ;;  %v1193_v53 = vsel %vm894_vm2, %v1188_v52, 0 }
 0x299   : > { %v1139_v29 = vpop.permute.xlu1 %1138 }
 0x29a   : > { %2958 = vmatmul.mubr.msk.bf16.vlgmr.msra.gmra.mxu1 %vm894_vm2, %v3515_v20  ;;  %2964 = vmatmul.mubr.msk.bf16.vlgmr.msra.gmra.mxu0 %vm894_vm2, %v3518_v26  ;;  %v1144_v54 = vsel %vm894_vm2, %v1139_v29, 0 }
 0x29b   : > { %2968 = vmatpush3.bf16.xpose.msra.mxu1 %v1046_v51  ;;  %2974 = vmatpush3.bf16.xpose.msra.mxu0 %v1095_v48  ;;  %v1361_v48 = vrot.slane %v1323_v41, %v3604_v8 }
 0x29c   : > { %2969 = vmatprep.mubr.msk.bf16.mxu1 %vm3265_vm1, %v3264_v49  ;;  %2975 = vmatprep.mubr.msk.bf16.mxu0 %vm3265_vm1, %v3264_v49 }
 0x29d   : > { %2979 = vmatprep.subr.bf16.mxu1 %v3264_v49  ;;  %2985 = vmatprep.subr.bf16.mxu0 %v3264_v49  ;;  %v1237_v55 = vpop.permute.xlu1 %1236 }
 0x29e   : > { %v1242_v22 = vsel %vm894_vm2, %v1237_v55, 0 }
 0x2a2   : > { %2970 = vmatmul.mubr.msk.bf16.vlgmr.msra.gmra.mxu1 %vm894_vm2, %v3524_v33  ;;  %2976 = vmatmul.mubr.msk.bf16.vlgmr.msra.gmra.mxu0 %vm894_vm2, %v3520_v31 }
 0x2a3   : > { %2980 = vmatpush3.bf16.xpose.msra.mxu1 %v1144_v54  ;;  %2986 = vmatpush3.bf16.xpose.msra.mxu0 %v1193_v53 }
 0x2a4   : > { %2981 = vmatprep.mubr.msk.bf16.mxu1 %vm3265_vm1, %v3264_v49  ;;  %2987 = vmatprep.mubr.msk.bf16.mxu0 %vm3265_vm1, %v3264_v49 }
 0x2a5   : > { %2991 = vmatprep.subr.bf16.mxu1 %v3264_v49  ;;  %2997 = vmatprep.subr.bf16.mxu0 %v3264_v49 }
 0x2aa   : > { %2982 = vmatmul.mubr.msk.bf16.vlgmr.msra.gmra.mxu1 %vm894_vm2, %v3530_v37  ;;  %2988 = vmatmul.mubr.msk.bf16.vlgmr.msra.gmra.mxu0 %vm894_vm2, %v3526_v34 }
 0x2ab   : > { %2992 = vmatpush3.bf16.xpose.msra.mxu1 %v1242_v22  ;;  %2993 = vmatprep.mubr.msk.bf16.mxu1 %vm3265_vm1, %v3264_v49 }
 0x2ac   : > { %3003 = vmatprep.subr.bf16.mxu1 %v3264_v49  ;;  %2999 = vmatprep.mubr.msk.bf16.mxu0 %vm3265_vm1, %v3264_v49 }
 0x2b2   : > { %2994 = vmatmul.mubr.msk.bf16.vlgmr.msra.gmra.mxu1 %vm894_vm2, %v3533_v38 }
 0x2b3   : > { %3005 = vmatprep.mubr.msk.bf16.mxu1 %vm3265_vm1, %v3264_v49 }
 0x352   : > { %v935_v63 = vpop.f32.mrf.mxu1 }
 0x353   : > { %v1284_v23 = vmul.f32 0.25, %v935_v63 }
 0x354   : > { %v2953_v4 = vpop.f32.mrf.mxu1 }
 0x355   : > { %v3622_v45 = vadd.f32 %v1345_v27, %v1284_v23 }
 0x356   : > { %v938_v7 = vpop.f32.mrf.mxu1 }
 0x357   : > { %v1391_v53 = vsel %vm1390_vm3, %v3622_v45, -inf }
 0x358   : > { %v2954_v11 = vpop.f32.mrf.mxu1 }
 0x359   : > { %v1357_v11 = vrot.slane %v1340_v61, %v3604_v8 }
 0x35a   : > { %v984_v18 = vpop.f32.mrf.mxu1  ;;  %v1033_v19 = vpop.f32.mrf.mxu0 }
 0x35b   : > { %v1285_v24 = vmul.f32 0.25, %v984_v18  ;;  %v1286_v25 = vmul.f32 0.25, %v1033_v19 }
 0x35c   : > { %v2959_v28 = vpop.f32.mrf.mxu1  ;;  %v2965_v32 = vpop.f32.mrf.mxu0 }
 0x35d   : > { %v3612_v35 = vadd.f32 %v1353_v12, %v1286_v25  ;;  %v3614_v36 = vadd.f32 %v1349_v16, %v1285_v24 }
 0x35e   : > { %v987_v42 = vpop.f32.mrf.mxu1  ;;  %v1036_v43 = vpop.f32.mrf.mxu0 }
 0x35f   : > { %v1397_v44 = vsel %vm1390_vm3, %v3612_v35, -inf  ;;  %v1394_v21 = vsel %vm1390_vm3, %v3614_v36, -inf }
 0x360   : > { %v2966_v46 = vpop.f32.mrf.mxu0  ;;  %1398 = vmax.xlane.f32.xlu0 %v1397_v44  ;;  %1395 = vmax.xlane.f32.xlu1 %v1394_v21  ;;  %v2960_v47 = vpop.f32.mrf.mxu1  ;;  %v1309_v44 = vcombine.high %v3609_v17, %v3609_v17 }
 0x362   : > { %v1082_v51 = vpop.f32.mrf.mxu1  ;;  %v1131_v52 = vpop.f32.mrf.mxu0  ;;  %v1337_v21 = vrot.slane %v1309_v44, %v3598_v30 }
 0x363   : > { %v1288_v29 = vmul.f32 0.25, %v1131_v52  ;;  %v1287_v50 = vmul.f32 0.25, %v1082_v51 }
 0x364   : > { %1392 = vmax.xlane.f32.xlu0 %v1391_v53  ;;  %v2971_v54 = vpop.f32.mrf.mxu1  ;;  %v2977_v55 = vpop.f32.mrf.mxu0  ;;  %v1365_v46 = vrot.slane %v1337_v21, %v3604_v8  ;;  %v1341_v47 = vcombine.high %v1337_v21, %v1337_v21 }
 0x365   : > { %v3627_v22 = vadd.f32 %v1361_v48, %v1288_v29  ;;  %v3637_v24 = vadd.f32 %v1357_v11, %v1287_v50 }
 0x366   : > { %v1085_v57 = vpop.f32.mrf.mxu1  ;;  %v1134_v59 = vpop.f32.mrf.mxu0  ;;  %v1373_v52 = vrot.slane %v1341_v47, %v3604_v8 }
 0x367   : > { %v1403_v39 = vsel %vm1390_vm3, %v3627_v22, -inf  ;;  %v1400_v32 = vsel %vm1390_vm3, %v3637_v24, -inf }
 0x368   : > { %v2972_v62 = vpop.f32.mrf.mxu1  ;;  %1404 = vmax.xlane.f32.xlu0 %v1403_v39  ;;  %v2978_v63 = vpop.f32.mrf.mxu0 }
 0x36a   : > { %v1180_v4 = vpop.f32.mrf.mxu1  ;;  %v1229_v40 = vpop.f32.mrf.mxu0 }
 0x36b   : > { %v1290_v7 = vmul.f32 0.25, %v1229_v40 }
 0x36c   : > { %v2983_v12 = vpop.f32.mrf.mxu1  ;;  %v2989_v16 = vpop.f32.mrf.mxu0 }
 0x36d   : > { %v3633_v18 = vadd.f32 %v1369_v0, %v1290_v7 }
 0x36e   : > { %v1183_v19 = vpop.f32.mrf.mxu1  ;;  %v1232_v23 = vpop.f32.mrf.mxu0 }
 0x36f   : > { %v1409_v5 = vsel %vm1390_vm3, %v3633_v18, -inf }
 0x370   : > { %v2984_v25 = vpop.f32.mrf.mxu1  ;;  %1410 = vmax.xlane.f32.xlu0 %v1409_v5  ;;  %v2990_v27 = vpop.f32.mrf.mxu0 }
 0x371   : > { %1536 = vrot.lane.b32.xlu1 %v3515_v20, %s3268_s24  ;;  %v1289_v20 = vmul.f32 0.25, %v1180_v4 }
 0x372   : > { %v1278_v28 = vpop.f32.mrf.mxu1 }
 0x373   : > { %v1291_v48 = vmul.f32 0.25, %v1278_v28  ;;  %v1387_v51 = vadd.f32 %v1365_v46, %v1289_v20 }
 0x374   : > { %v2995_v41 = vpop.f32.mrf.mxu1  ;;  %1401 = vmax.xlane.f32.xlu0 %v1400_v32 }
 0x375   : > { %1584 = vrot.lane.b32.xlu1 %v3518_v26, %s3268_s24  ;;  %v1406_v26 = vsel %vm1390_vm3, %v1387_v51, -inf  ;;  %v1389_v29 = vadd.f32 %v1373_v52, %v1291_v48 }
 0x376   : > { %v1281_v42 = vpop.f32.mrf.mxu1 }
 0x377   : > { %v1412_v53 = vsel %vm1390_vm3, %v1389_v29, -inf }
 0x378   : > { %v2996_v43 = vpop.f32.mrf.mxu1 }
 0x38a   : > { %1487 = vrot.lane.b32.xlu0 %v3512_v15, %s3268_s24 }
 0x399   : > { %1407 = vmax.xlane.f32.xlu1 %v1406_v26 }
 0x39d   : > { %1413 = vmax.xlane.f32.xlu1 %v1412_v53 }
 0x3ae   : > { %1632 = vrot.lane.b32.xlu1 %v3524_v33, %s3268_s24 }
 0x3e9   : > { %v1396_v15 = vpop.xlane.xlu1 %1395  ;;  %v1399_v30 = vpop.xlane.xlu0 %1398 }
 0x3ea   : > { %v1416_v17 = vsub.f32 %v3614_v36, %v1396_v15  ;;  %v1417_v54 = vsub.f32 %v3612_v35, %v1399_v30 }
 0x3ec   : > { %v1425_v55 = vmul.f32 1.442695, %v1416_v17  ;;  %v1427_v56 = vmul.f32 1.442695, %v1417_v54 }
 0x3ed   : > { %v1537_v8 = vpop.permute.xlu1 %1536  ;;  %v1393_v57 = vpop.xlane.xlu0 %1392 }
 0x3ee   : > { %3153 = vpow2.f32 %v1425_v55  ;;  %v1542_v59 = vsel %vm1492_vm4, %v1537_v8, 0  ;;  %v1415_v39 = vsub.f32 %v3622_v45, %v1393_v57 }
 0x3ef   : > { %3155 = vpow2.f32 %v1427_v56  ;;  %3004 = vmatpush3.bf16.msra.mxu1 %v1542_v59 }
 0x3f0   : > { %v1423_v61 = vmul.f32 1.442695, %v1415_v39  ;;  %3015 = vmatprep.subr.bf16.mxu1 %v3264_v49 }
 0x3f1   : > { %v1405_v33 = vpop.xlane.xlu0 %1404  ;;  %v1585_v16 = vpop.permute.xlu1 %1584 }
 0x3f2   : > { %3157 = vpow2.f32 %v1423_v61  ;;  %v1419_v19 = vsub.f32 %v3627_v22, %v1405_v33  ;;  %v1590_v55 = vsel %vm1492_vm4, %v1585_v16, 0 }
 0x3f4   : > { %v1431_v23 = vmul.f32 1.442695, %v1419_v19 }
 0x3f9   : > { %v1411_v36 = vpop.xlane.xlu0 %1410 }
 0x3fa   : > { %v1421_v5 = vsub.f32 %v3633_v18, %v1411_v36 }
 0x3fb   : > { %v3154_v62 = vpop.eup %3153 }
 0x3fc   : > { %v3661_v35 = vpop.eup %3155  ;;  %v1442_v63 = vsel %vm1390_vm3, %v3154_v62, 0.0  ;;  %v1435_v32 = vmul.f32 1.442695, %v1421_v5 }
 0x3fd   : > { %1443 = vadd.xlane.f32.xlu1 %v1442_v63  ;;  %v1445_v0 = vsel %vm1390_vm3, %v3661_v35, 0.0  ;;  %v1402_v4 = vpop.xlane.xlu0 %1401 }
 0x3fe   : > { %1446 = vadd.xlane.f32.xlu0 %v1445_v0  ;;  %v1418_v11 = vsub.f32 %v3637_v24, %v1402_v4 }
 0x3ff   : > { %v3158_v45 = vpop.eup %3157 }
 0x400   : > { %v1439_v40 = vsel %vm1390_vm3, %v3158_v45, 0.0  ;;  %v1429_v12 = vmul.f32 1.442695, %v1418_v11 }
 0x401   : > { %v1488_v50 = vpop.permute.xlu0 %1487 }
 0x402   : > { %1440 = vadd.xlane.f32.xlu0 %v1439_v40  ;;  %v1494_v7 = vsel %vm1492_vm4, %v1488_v50, 0  ;;  %3159 = vpow2.f32 %v1429_v12 }
 0x403   : > { %2998 = vmatpush3.bf16.msra.mxu0 %v1494_v7  ;;  %3161 = vpow2.f32 %v1431_v23 }
 0x404   : > { %3009 = vmatprep.subr.bf16.mxu0 %v3264_v49 }
 0x40e   : > { %1728 = vrot.lane.b32.xlu1 %v3530_v37, %s3268_s24 }
 0x418   : > { %1680 = vrot.lane.b32.xlu0 %v3520_v31, %s3268_s24  ;;  %v3160_v31 = vpop.eup %3159 }
 0x419   : > { %v1448_v24 = vsel %vm1390_vm3, %v3160_v31, 0.0  ;;  %v3677_v22 = vpop.eup %3161 }
 0x41a   : > { %v1451_v44 = vsel %vm1390_vm3, %v3677_v22, 0.0 }
 0x422   : > { %v1408_v25 = vpop.xlane.xlu1 %1407 }
 0x423   : > { %v1420_v27 = vsub.f32 %v1387_v51, %v1408_v25 }
 0x425   : > { %v1433_v28 = vmul.f32 1.442695, %v1420_v27 }
 0x426   : > { %v1414_v41 = vpop.xlane.xlu1 %1413 }
 0x427   : > { %3163 = vpow2.f32 %v1433_v28  ;;  %v1422_v37 = vsub.f32 %v1389_v29, %v1414_v41 }
 0x428   : > { %3165 = vpow2.f32 %v1435_v32 }
 0x429   : > { %v1437_v42 = vmul.f32 1.442695, %v1422_v37 }
 0x42a   : > { %v1633_v48 = vpop.permute.xlu1 %1632 }
 0x42b   : > { %3167 = vpow2.f32 %v1437_v42  ;;  %v1638_v17 = vsel %vm1492_vm4, %v1633_v48, 0 }
 0x432   : > { %1449 = vadd.xlane.f32.xlu1 %v1448_v24 }
 0x434   : > { %v3679_v43 = vpop.eup %3163 }
 0x435   : > { %v1454_v18 = vsel %vm1390_vm3, %v3679_v43, 0.0  ;;  %v3685_v21 = vpop.eup %3165 }
 0x436   : > { %1455 = vadd.xlane.f32.xlu1 %v1454_v18  ;;  %v1457_v47 = vsel %vm1390_vm3, %v3685_v21, 0.0 }
 0x437   : > { %1452 = vadd.xlane.f32.xlu0 %v1451_v44 }
 0x438   : > { %v3687_v20 = vpop.eup %3167 }
 0x439   : > { %v1460_v46 = vsel %vm1390_vm3, %v3687_v20, 0.0 }
 0x43a   : > { %1461 = vadd.xlane.f32.xlu1 %v1460_v46 }
 0x43b   : > { %1458 = vadd.xlane.f32.xlu0 %v1457_v47 }
 0x44b   : > { %1824 = vrot.lane.b32.xlu1 %v3533_v38, %s3268_s24 }
 0x451   : > { %1776 = vrot.lane.b32.xlu0 %v3526_v34, %s3268_s24 }
 0x486   : > { %v1444_v51 = vpop.xlane.xlu1 %1443 }
 0x487   : > { %3169 = vrcp.f32 %v1444_v51  ;;  %v1447_v52 = vpop.xlane.xlu0 %1446 }
 0x48a   : > { %v1729_v39 = vpop.permute.xlu1 %1728 }
 0x48b   : > { %v1441_v26 = vpop.xlane.xlu0 %1440  ;;  %v1734_v50 = vsel %vm1492_vm4, %v1729_v39, 0 }
 0x48c   : > { %3171 = vrcp.f32 %v1441_v26 }
 0x48d   : > { %3173 = vrcp.f32 %v1447_v52 }
 0x48f   : > { %v1681_v8 = vpop.permute.xlu0 %1680 }
 0x490   : > { %v1686_v59 = vsel %vm1492_vm4, %v1681_v8, 0 }
 0x494   : > { %v3170_v29 = vpop.eup %3169 }
 0x495   : > { %v1472_v53 = vmul.f32 %v3170_v29, %v3154_v62 }
 0x497   : > { %v1480_v15 = vpack.c.bf16 %v1472_v53, %v1472_v53 }
 0x499   : > { %v3172_v30 = vpop.eup %3171  ;;  %3006 = vmatmul.mubr.msk.bf16.vlgmr.msra.gmra.mxu1 %vm1390_vm3, %v1480_v15 }
 0x49a   : > { %3016 = vmatpush3.bf16.msra.mxu1 %v1638_v17  ;;  %v1471_v38 = vmul.f32 %v3172_v30, %v3158_v45  ;;  %3017 = vmatprep.mubr.msk.bf16.mxu1 %vm3265_vm1, %v3264_v49  ;;  %v3174_v54 = vpop.eup %3173 }
 0x49b   : > { %3027 = vmatprep.subr.bf16.mxu1 %v3264_v49  ;;  %v1473_v56 = vmul.f32 %v3174_v54, %v3661_v35 }
 0x49c   : > { %v1479_v34 = vpack.c.bf16 %v1471_v38, %v1471_v38 }
 0x49d   : > { %v1481_v57 = vpack.c.bf16 %v1473_v56, %v1473_v56 }
 0x49e   : > { %3000 = vmatmul.mubr.msk.bf16.vlgmr.msra.gmra.mxu0 %vm1390_vm3, %v1479_v34 }
 0x49f   : > { %3010 = vmatpush3.bf16.msra.mxu0 %v1590_v55  ;;  %3011 = vmatprep.mubr.msk.bf16.mxu0 %vm3265_vm1, %v3264_v49 }
 0x4a0   : > { %3021 = vmatprep.subr.bf16.mxu0 %v3264_v49 }
 0x4a6   : > { %3012 = vmatmul.mubr.msk.bf16.vlgmr.msra.gmra.mxu0 %vm1390_vm3, %v1481_v57 }
 0x4a7   : > { %3022 = vmatpush3.bf16.msra.mxu0 %v1686_v59  ;;  %3023 = vmatprep.mubr.msk.bf16.mxu0 %vm3265_vm1, %v3264_v49 }
 0x4a8   : > { %3033 = vmatprep.subr.bf16.mxu0 %v3264_v49 }
 0x4bb   : > { %v1450_v61 = vpop.xlane.xlu1 %1449 }
 0x4bc   : > { %3175 = vrcp.f32 %v1450_v61 }
 0x4bf   : > { %v1456_v33 = vpop.xlane.xlu1 %1455 }
 0x4c0   : > { %3177 = vrcp.f32 %v1456_v33  ;;  %v1453_v36 = vpop.xlane.xlu0 %1452 }
 0x4c1   : > { %3179 = vrcp.f32 %v1453_v36 }
 0x4c3   : > { %v1462_v35 = vpop.xlane.xlu1 %1461 }
 0x4c4   : > { %v1459_v62 = vpop.xlane.xlu0 %1458 }
 0x4c5   : > { %3181 = vrcp.f32 %v1459_v62 }
 0x4c6   : > { %3183 = vrcp.f32 %v1462_v35 }
 0x4c7   : > { %v1825_v23 = vpop.permute.xlu1 %1824 }
 0x4c8   : > { %v1777_v11 = vpop.permute.xlu0 %1776  ;;  %v1830_v32 = vsel %vm1492_vm4, %v1825_v23, 0 }
 0x4c9   : > { %v3176_v63 = vpop.eup %3175  ;;  %v1782_v5 = vsel %vm1492_vm4, %v1777_v11, 0 }
 0x4ca   : > { %v1474_v0 = vmul.f32 %v3176_v63, %v3160_v31  ;;  %v3136_v31 = vld [vmem:[%s602_s18] sm:$0xff]  }
 0x4cc   : > { %v1482_v4 = vpack.c.bf16 %v1474_v0, %v1474_v0 }
 0x4cd   : > { %v3178_v45 = vpop.eup %3177 }
 0x4ce   : > { %v3180_v40 = vpop.eup %3179  ;;  %3018 = vmatmul.mubr.msk.bf16.vlgmr.msra.gmra.mxu1 %vm1390_vm3, %v1482_v4  ;;  %v1476_v12 = vmul.f32 %v3178_v45, %v3679_v43 }
 0x4cf   : > { %3028 = vmatpush3.bf16.msra.mxu1 %v1734_v50  ;;  %v1475_v7 = vmul.f32 %v3180_v40, %v3677_v22  ;;  %3029 = vmatprep.mubr.msk.bf16.mxu1 %vm3265_vm1, %v3264_v49 }
 0x4d0   : > { %3039 = vmatprep.subr.bf16.mxu1 %v3264_v49  ;;  %v1484_v25 = vpack.c.bf16 %v1476_v12, %v1476_v12 }
 0x4d1   : > { %v1483_v16 = vpack.c.bf16 %v1475_v7, %v1475_v7 }
 0x4d2   : > { %v3182_v19 = vpop.eup %3181 }
 0x4d3   : > { %3024 = vmatmul.mubr.msk.bf16.vlgmr.msra.gmra.mxu0 %vm1390_vm3, %v1483_v16  ;;  %v3184_v27 = vpop.eup %3183  ;;  %v1477_v28 = vmul.f32 %v3182_v19, %v3685_v21 }
 0x4d4   : > { %3034 = vmatpush3.bf16.msra.mxu0 %v1782_v5  ;;  %3035 = vmatprep.mubr.msk.bf16.mxu0 %vm3265_vm1, %v3264_v49  ;;  %v1478_v41 = vmul.f32 %v3184_v27, %v3687_v20 }
 0x4d5   : > { %v1485_v37 = vpack.c.bf16 %v1477_v28, %v1477_v28  ;;  %3045 = vmatprep.subr.bf16.mxu0 %v3136_v31 }
 0x4d6   : > { %3030 = vmatmul.mubr.msk.bf16.vlgmr.msra.gmra.mxu1 %vm1390_vm3, %v1484_v25  ;;  %v1486_v42 = vpack.c.bf16 %v1478_v41, %v1478_v41 }
 0x4d7   : > { %3040 = vmatpush3.bf16.msra.mxu1 %v1830_v32  ;;  %3041 = vmatprep.mubr.msk.bf16.mxu1 %vm3265_vm1, %v3264_v49 }
 0x4db   : > { %3036 = vmatmul.mubr.msk.bf16.vlgmr.msra.gmra.mxu0 %vm1390_vm3, %v1485_v37 }
 0x4dc   : > { %3046 = vmatpush3.bf16.msra.mxu0 %v3136_v31 }
 0x4de   : > { %3042 = vmatmul.mubr.msk.bf16.vlgmr.msra.gmra.mxu1 %vm1390_vm3, %v1486_v42 }
 0x559   : > { %v1578_v24 = vpop.f32.mrf.mxu1 }
 0x55b   : > { %v3007_v22 = vpop.f32.mrf.mxu1 }
 0x55d   : > { %v1581_v43 = vpop.f32.mrf.mxu1 }
 0x55e   : > { %v1530_v49 = vpop.f32.mrf.mxu0 }
 0x55f   : > { %v2868_v18 = vpack.c.bf16 %v1578_v24, %v1530_v49  ;;  %v3008_v44 = vpop.f32.mrf.mxu1 }
 0x560   : > { %v3001_v21 = vpop.f32.mrf.mxu0 }
 0x561   : > { %3047 = vmatprep.mubr.msk.bf16.mxu0 %vm894_vm2, %v2868_v18 }
 0x562   : > { %v1533_v20 = vpop.f32.mrf.mxu0 }
 0x564   : > { %v3002_v46 = vpop.f32.mrf.mxu0 }
 0x566   : > { %v1626_v47 = vpop.f32.mrf.mxu0 }
 0x568   : > { %v3013_v48 = vpop.f32.mrf.mxu0 }
 0x56a   : > { %v1629_v51 = vpop.f32.mrf.mxu0 }
 0x56c   : > { %v3014_v52 = vpop.f32.mrf.mxu0 }
 0x58e   : > { %v1674_v26 = vpop.f32.mrf.mxu1 }
 0x58f   : > { %v2869_v29 = vpack.c.bf16 %v1674_v26, %v1626_v47 }
 0x590   : > { %v3019_v53 = vpop.f32.mrf.mxu1 }
 0x591   : > { %3048 = vmatmul.mubr.msk.bf16.vlgmr.msra.gmra.mxu0 %vm894_vm2, %v2869_v29 }
 0x592   : > { %v1677_v15 = vpop.f32.mrf.mxu1 }
 0x593   : > { %v1722_v30 = vpop.f32.mrf.mxu0 }
 0x594   : > { %v3020_v17 = vpop.f32.mrf.mxu1 }
 0x595   : > { %v3025_v38 = vpop.f32.mrf.mxu0 }
 0x596   : > { %v1770_v34 = vpop.f32.mrf.mxu1 }
 0x597   : > { %v1725_v54 = vpop.f32.mrf.mxu0  ;;  %v2870_v55 = vpack.c.bf16 %v1770_v34, %v1722_v30 }
 0x598   : > { %v3031_v56 = vpop.f32.mrf.mxu1 }
 0x599   : > { %v3026_v8 = vpop.f32.mrf.mxu0  ;;  %3051 = vmatprep.mubr.msk.bf16.mxu0 %vm894_vm2, %v2870_v55 }
 0x59a   : > { %v1773_v57 = vpop.f32.mrf.mxu1 }
 0x59b   : > { %v1818_v59 = vpop.f32.mrf.mxu0 }
 0x59c   : > { %v3032_v39 = vpop.f32.mrf.mxu1 }
 0x59d   : > { %v3037_v61 = vpop.f32.mrf.mxu0 }
 0x59e   : > { %v1866_v33 = vpop.f32.mrf.mxu1 }
 0x59f   : > { %v1821_v36 = vpop.f32.mrf.mxu0  ;;  %v2871_v62 = vpack.c.bf16 %v1866_v33, %v1818_v59 }
 0x5a0   : > { %v3043_v35 = vpop.f32.mrf.mxu1 }
 0x5a1   : > { %v3038_v63 = vpop.f32.mrf.mxu0  ;;  %3052 = vmatmul.mubr.msk.bf16.gmra.mxu0 %vm894_vm2, %v2871_v62 }
 0x5a2   : > { %v1869_v0 = vpop.f32.mrf.mxu1 }
 0x5a4   : > { %v3044_v4 = vpop.f32.mrf.mxu1 }
 0x651   : > { %v3049_v45 = vpop.f32.mrf.mxu0 }
 0x653   : > { %v1952_v40 = vpop.f32.mrf.mxu0 }
 0x655   : > { %v3050_v50 = vpop.f32.mrf.mxu0 }
 0x657   : > { %v1955_v7 = vpop.f32.mrf.mxu0 }
 0x661   : > { %v3053_v11 = vpop.f32.mrf.mxu0 }
 0x663   : > { %v1968_v12 = vpop.f32.mrf.mxu0  ;;  %1986 = sbr.rel (%p2828_p8) target bundleno = 1649 (0x671), region = 88 }
 0x665   : > { %v3054_v16 = vpop.f32.mrf.mxu0 }
 0x667   : > { %v1971_v19 = vpop.f32.mrf.mxu0 }
 0x668   : > { %v2829_v23 = vld [vmem:[%s3990_s7] ss:$0 sm:$0xff] }
 0x669   : > { %v1994_v5 = vadd.f32 %v2829_v23, %v3396_v1  ;;  %v1995_v25 = vadd.f32 %v2829_v23, %v3400_v3  ;;  %v1996_v27 = vadd.f32 %v2829_v23, %v3398_v2  ;;  %v1997_v28 = vadd.f32 %v2829_v23, %v3406_v6 }
 0x66a   : > { %v1998_v32 = vadd.f32 %v2829_v23, %v3412_v9  ;;  %v1999_v41 = vadd.f32 %v2829_v23, %v3414_v10  ;;  %v2000_v37 = vadd.f32 %v2829_v23, %v3420_v13  ;;  %v2001_v42 = vadd.f32 %v2829_v23, %v3422_v14 }
 0x66b   : > { %v2002_v31 = vadd.f32 %v1994_v5, %v1952_v40  ;;  %v2003_v24 = vadd.f32 %v1995_v25, %v1955_v7  ;;  %v2004_v22 = vadd.f32 %v3049_v45, %v1996_v27  ;;  %v2005_v43 = vadd.f32 %v3050_v50, %v1997_v28 }
 0x66c   : > { %v2006_v49 = vadd.f32 %v1998_v32, %v1968_v12  ;;  %v2007_v1 = vadd.f32 %v1999_v41, %v1971_v19  ;;  %v2008_v18 = vadd.f32 %v3053_v11, %v2000_v37  ;;  %v2009_v3 = vadd.f32 %v3054_v16, %v2001_v42 }
 0x66d   : > { %2010 = vst.msk [vmem:[#allocation2] sm:$0xff] %vm626_vm0, %v2002_v31  ;;  %2011 = vst.msk [vmem:[#allocation2 + $0x8] sm:$0xff] %vm626_vm0, %v2003_v24 }
 0x66e   : > { %2012 = vst.msk [vmem:[#allocation2 + $0x10] sm:$0xff] %vm626_vm0, %v2004_v22  ;;  %2013 = vst.msk [vmem:[#allocation2 + $0x18] sm:$0xff] %vm626_vm0, %v2005_v43 }
 0x66f   : > { %2014 = vst.msk [vmem:[#allocation2 + $0x20] sm:$0xff] %vm626_vm0, %v2006_v49  ;;  %2015 = vst.msk [vmem:[#allocation2 + $0x28] sm:$0xff] %vm626_vm0, %v2007_v1 }
 0x670   : > { %2016 = vst.msk [vmem:[#allocation2 + $0x30] sm:$0xff] %vm626_vm0, %v2008_v18  ;;  %2017 = vst.msk [vmem:[#allocation2 + $0x38] sm:$0xff] %vm626_vm0, %v2009_v3 }
 0x671 PF: > { %p2830_p9 = scmp.le.s32.totalorder %s3246_s23, 0 }
 0x673   : > { %2021 = sbr.rel (%p2830_p9) target bundleno = 1663 (0x67f), region = 92 }
 0x678   : > { %v2022_v2 = vld [vmem:[#allocation2] sm:$0xff]  ;;  %v2023_v6 = vld [vmem:[#allocation2 + $0x8] sm:$0xff]  ;;  %v2024_v9 = vld [vmem:[#allocation2 + $0x10] sm:$0xff] }
 0x679   : > { %v2030_v10 = vadd.f32 %v2022_v2, %v1952_v40  ;;  %v2031_v13 = vadd.f32 %v2023_v6, %v1955_v7  ;;  %v2032_v14 = vadd.f32 %v3049_v45, %v2024_v9  ;;  %v2025_v44 = vld [vmem:[#allocation2 + $0x18] sm:$0xff]  ;;  %v2026_v21 = vld [vmem:[#allocation2 + $0x20] sm:$0xff]  ;;  %v2027_v20 = vld [vmem:[#allocation2 + $0x28] sm:$0xff] }
 0x67a   : > { %v2033_v46 = vadd.f32 %v3050_v50, %v2025_v44  ;;  %v2034_v47 = vadd.f32 %v2026_v21, %v1968_v12  ;;  %v2035_v48 = vadd.f32 %v2027_v20, %v1971_v19  ;;  %v2028_v51 = vld [vmem:[#allocation2 + $0x30] sm:$0xff]  ;;  %v2029_v52 = vld [vmem:[#allocation2 + $0x38] sm:$0xff] }
 0x67b   : > { %2038 = vst.msk [vmem:[#allocation2] sm:$0xff] %vm626_vm0, %v2030_v10  ;;  %2039 = vst.msk [vmem:[#allocation2 + $0x8] sm:$0xff] %vm626_vm0, %v2031_v13  ;;  %v2036_v26 = vadd.f32 %v3053_v11, %v2028_v51  ;;  %v2037_v29 = vadd.f32 %v3054_v16, %v2029_v52 }
 0x67c   : > { %2040 = vst.msk [vmem:[#allocation2 + $0x10] sm:$0xff] %vm626_vm0, %v2032_v14  ;;  %2041 = vst.msk [vmem:[#allocation2 + $0x18] sm:$0xff] %vm626_vm0, %v2033_v46 }
 0x67d   : > { %2042 = vst.msk [vmem:[#allocation2 + $0x20] sm:$0xff] %vm626_vm0, %v2034_v47  ;;  %2043 = vst.msk [vmem:[#allocation2 + $0x28] sm:$0xff] %vm626_vm0, %v2035_v48 }
 0x67e   : > { %2044 = vst.msk [vmem:[#allocation2 + $0x30] sm:$0xff] %vm626_vm0, %v2036_v26  ;;  %2045 = vst.msk [vmem:[#allocation2 + $0x38] sm:$0xff] %vm626_vm0, %v2037_v29 }
 0x67f PF: > { %p2831_p10 = scmp.ne.s32.totalorder %s3246_s23, 1 }
 0x681   : > { %2049 = sbr.rel (%p2831_p10) target bundleno = 2593 (0xa21), region = 96 }
 0x686   : > { %v3770_v53 = vld [vmem:[#allocation2] sm:$0xff]  ;;  %v3772_v15 = vld [vmem:[#allocation2 + $0x10] sm:$0xff]  ;;  %v3774_v30 = vld [vmem:[#allocation2 + $0x8] sm:$0xff]  ;;  %vm2453_vm5 = vcmask 523264   ;;  %vm2652_vm6 = vcmask 1041409   ;;  %vm2654_vm7 = vcmask 1042434  }
 0x687   : > { %v2074_v17 = vsel %vm626_vm0, %v3770_v53, 0.0  ;;  %v2080_v38 = vsel %vm626_vm0, %v3772_v15, 0.0  ;;  %v3780_v34 = vld [vmem:[#allocation2 + $0x18] sm:$0xff]  ;;  %v2077_v54 = vsel %vm626_vm0, %v3774_v30, 0.0  ;;  %v3784_v55 = vld [vmem:[#allocation2 + $0x20] sm:$0xff]  ;;  %v3788_v8 = vld [vmem:[#allocation2 + $0x28] sm:$0xff] }
 0x688   : > { %2075 = vadd.xlane.f32.xlu0 %v2074_v17  ;;  %2081 = vadd.xlane.f32.xlu1 %v2080_v38  ;;  %v2083_v56 = vsel %vm626_vm0, %v3780_v34, 0.0  ;;  %v2086_v57 = vsel %vm626_vm0, %v3784_v55, 0.0  ;;  %v2089_v59 = vsel %vm626_vm0, %v3788_v8, 0.0  ;;  %v3794_v39 = vld [vmem:[#allocation2 + $0x30] sm:$0xff]  ;;  %v3796_v61 = vld [vmem:[#allocation2 + $0x38] sm:$0xff]  ;;  %v3186_v47 = vld [vmem:[%s3993_s10 + $0x8] sm:$0xff]  }
 0x689   : > { %v2092_v33 = vsel %vm626_vm0, %v3794_v39, 0.0  ;;  %v2095_v36 = vsel %vm626_vm0, %v3796_v61, 0.0  ;;  %v3187_v48 = vld [vmem:[%s3993_s10] sm:$0xff]   ;;  %3055 = vmatprep.subr.bf16.mxu0 %v3186_v47  ;;  %vm2656_vm8 = vcmask 1043459   ;;  %vm2658_vm9 = vcmask 1044484  }
 0x68a   : > { %3056 = vmatpush3.bf16.msra.mxu0 %v3186_v47  ;;  %vm2660_vm10 = vcmask 1045509   ;;  %vm2662_vm11 = vcmask 1046534   ;;  %vm2664_vm12 = vcmask 1047559  }
 0x68b   : > { %3057 = vmatprep.subr.bf16.mxu0 %v3187_v48 }
 0x68c   : > { %2078 = vadd.xlane.f32.xlu0 %v2077_v54  ;;  %2084 = vadd.xlane.f32.xlu1 %v2083_v56 }
 0x68e   : > { %3058 = vmatpush3.bf16.msra.mxu0 %v3187_v48 }
 0x690   : > { %2087 = vadd.xlane.f32.xlu0 %v2086_v57  ;;  %2090 = vadd.xlane.f32.xlu1 %v2089_v59 }
 0x694   : > { %2093 = vadd.xlane.f32.xlu0 %v2092_v33  ;;  %2096 = vadd.xlane.f32.xlu1 %v2095_v36 }
 0x711   : > { %v2076_v62 = vpop.xlane.xlu0 %2075  ;;  %v2082_v35 = vpop.xlane.xlu1 %2081 }
 0x712   : > { %v2098_v63 = vmul.f32 0.03125, %v2076_v62  ;;  %v2100_v0 = vmul.f32 0.03125, %v2082_v35 }
 0x714   : > { %v3803_v4 = vsub.f32 %v3770_v53, %v2098_v63  ;;  %v3806_v45 = vsub.f32 %v3772_v15, %v2100_v0 }
 0x715   : > { %v2079_v40 = vpop.xlane.xlu0 %2078  ;;  %v2085_v50 = vpop.xlane.xlu1 %2084 }
 0x716   : > { %v2099_v7 = vmul.f32 0.03125, %v2079_v40  ;;  %v2101_v11 = vmul.f32 0.03125, %v2085_v50  ;;  %v2114_v12 = vmul.f32 %v3803_v4, %v3803_v4  ;;  %v2116_v16 = vmul.f32 %v3806_v45, %v3806_v45 }
 0x718   : > { %v3813_v19 = vsub.f32 %v3774_v30, %v2099_v7  ;;  %v3816_v23 = vsub.f32 %v3780_v34, %v2101_v11  ;;  %v2122_v5 = vsel %vm626_vm0, %v2114_v12, 0.0  ;;  %v2128_v28 = vsel %vm626_vm0, %v2116_v16, 0.0 }
 0x719   : > { %2123 = vadd.xlane.f32.xlu0 %v2122_v5  ;;  %v2088_v25 = vpop.xlane.xlu0 %2087  ;;  %v2091_v27 = vpop.xlane.xlu1 %2090 }
 0x71a   : > { %v2102_v32 = vmul.f32 0.03125, %v2088_v25  ;;  %v2103_v41 = vmul.f32 0.03125, %v2091_v27  ;;  %v2115_v37 = vmul.f32 %v3813_v19, %v3813_v19  ;;  %v2117_v42 = vmul.f32 %v3816_v23, %v3816_v23 }
 0x71c   : > { %v3825_v31 = vsub.f32 %v3784_v55, %v2102_v32  ;;  %v3828_v24 = vsub.f32 %v3788_v8, %v2103_v41  ;;  %v2125_v22 = vsel %vm626_vm0, %v2115_v37, 0.0  ;;  %v2131_v1 = vsel %vm626_vm0, %v2117_v42, 0.0  ;;  %v2832_v32 = vld [vmem:[%s3991_s8] ss:$0 sm:$0xff] }
 0x71d   : > { %2129 = vadd.xlane.f32.xlu0 %v2128_v28  ;;  %2126 = vadd.xlane.f32.xlu1 %v2125_v22  ;;  %v2094_v43 = vpop.xlane.xlu0 %2093  ;;  %v2097_v49 = vpop.xlane.xlu1 %2096 }
 0x71e   : > { %v2104_v18 = vmul.f32 0.03125, %v2094_v43  ;;  %v2105_v3 = vmul.f32 0.03125, %v2097_v49  ;;  %v2118_v2 = vmul.f32 %v3825_v31, %v3825_v31  ;;  %v2119_v6 = vmul.f32 %v3828_v24, %v3828_v24  ;;  %v2833_v43 = vld [vmem:[%s3992_s9] ss:$0 sm:$0xff] }
 0x720   : > { %v3837_v9 = vsub.f32 %v3794_v39, %v2104_v18  ;;  %v3840_v10 = vsub.f32 %v3796_v61, %v2105_v3  ;;  %v2134_v13 = vsel %vm626_vm0, %v2118_v2, 0.0  ;;  %v2137_v14 = vsel %vm626_vm0, %v2119_v6, 0.0 }
 0x721   : > { %2132 = vadd.xlane.f32.xlu1 %v2131_v1  ;;  %2135 = vadd.xlane.f32.xlu0 %v2134_v13 }
 0x722   : > { %v2120_v44 = vmul.f32 %v3837_v9, %v3837_v9  ;;  %v2121_v21 = vmul.f32 %v3840_v10, %v3840_v10 }
 0x724   : > { %v2140_v20 = vsel %vm626_vm0, %v2120_v44, 0.0  ;;  %v2143_v46 = vsel %vm626_vm0, %v2121_v21, 0.0 }
 0x725   : > { %2138 = vadd.xlane.f32.xlu1 %v2137_v14  ;;  %2141 = vadd.xlane.f32.xlu0 %v2140_v20 }
 0x729   : > { %2144 = vadd.xlane.f32.xlu1 %v2143_v46 }
 0x7a2   : > { %v2124_v51 = vpop.xlane.xlu0 %2123 }
 0x7a3   : > { %v2146_v52 = vmul.f32 0.03125, %v2124_v51 }
 0x7a5   : > { %v2154_v26 = vadd.f32 1e-05, %v2146_v52 }
 0x7a6   : > { %v2127_v29 = vpop.xlane.xlu1 %2126  ;;  %v2130_v17 = vpop.xlane.xlu0 %2129 }
 0x7a7   : > { %3192 = vrsqrt.f32 %v2154_v26  ;;  %v2147_v38 = vmul.f32 0.03125, %v2127_v29  ;;  %v2148_v54 = vmul.f32 0.03125, %v2130_v17 }
 0x7a9   : > { %v2155_v56 = vadd.f32 1e-05, %v2147_v38  ;;  %v2156_v57 = vadd.f32 1e-05, %v2148_v54 }
 0x7aa   : > { %v2133_v59 = vpop.xlane.xlu1 %2132  ;;  %v2136_v33 = vpop.xlane.xlu0 %2135 }
 0x7ab   : > { %3194 = vrsqrt.f32 %v2155_v56  ;;  %v2149_v36 = vmul.f32 0.03125, %v2133_v59  ;;  %v2150_v62 = vmul.f32 0.03125, %v2136_v33  ;;  %v3190_v33 = vld [vmem:[%s3995_s12 + $0x8] sm:$0xff]  }
 0x7ac   : > { %3196 = vrsqrt.f32 %v2156_v57 }
 0x7ad   : > { %v2157_v35 = vadd.f32 1e-05, %v2149_v36  ;;  %v2158_v63 = vadd.f32 1e-05, %v2150_v62  ;;  %v3191_v36 = vld [vmem:[%s3995_s12] sm:$0xff]  }
 0x7ae   : > { %v2139_v0 = vpop.xlane.xlu1 %2138  ;;  %v2142_v40 = vpop.xlane.xlu0 %2141  ;;  %v2834_v62 = vld [vmem:[%s3994_s11] ss:$0 sm:$0xff] }
 0x7af   : > { %3198 = vrsqrt.f32 %v2157_v35  ;;  %v2151_v50 = vmul.f32 0.03125, %v2139_v0  ;;  %v2152_v7 = vmul.f32 0.03125, %v2142_v40 }
 0x7b0   : > { %3200 = vrsqrt.f32 %v2158_v63 }
 0x7b1   : > { %v2159_v11 = vadd.f32 1e-05, %v2151_v50  ;;  %v2160_v12 = vadd.f32 1e-05, %v2152_v7 }
 0x7b2   : > { %v2145_v16 = vpop.xlane.xlu1 %2144 }
 0x7b3   : > { %3202 = vrsqrt.f32 %v2159_v11  ;;  %v2153_v5 = vmul.f32 0.03125, %v2145_v16 }
 0x7b4   : > { %v3193_v25 = vpop.eup %3192  ;;  %3204 = vrsqrt.f32 %v2160_v12 }
 0x7b5   : > { %v2161_v27 = vadd.f32 1e-05, %v2153_v5  ;;  %v2170_v28 = vmul.f32 %v3193_v25, %v3803_v4 }
 0x7b7   : > { %3206 = vrsqrt.f32 %v2161_v27  ;;  %v2184_v22 = vmul.f32 %v2832_v32, %v2170_v28 }
 0x7b8   : > { %v3195_v41 = vpop.eup %3194 }
 0x7b9   : > { %v3197_v37 = vpop.eup %3196  ;;  %v2171_v42 = vmul.f32 %v3195_v41, %v3813_v19  ;;  %v2198_v4 = vadd.f32 %v2833_v43, %v2184_v22 }
 0x7ba   : > { %v2172_v49 = vmul.f32 %v3197_v37, %v3806_v45 }
 0x7bb   : > { %v2185_v1 = vmul.f32 %v2832_v32, %v2171_v42 }
 0x7bc   : > { %v3199_v18 = vpop.eup %3198  ;;  %v2186_v13 = vmul.f32 %v2832_v32, %v2172_v49 }
 0x7bd   : > { %v3201_v3 = vpop.eup %3200  ;;  %v2199_v2 = vadd.f32 %v2833_v43, %v2185_v1  ;;  %v2173_v6 = vmul.f32 %v3199_v18, %v3816_v23 }
 0x7be   : > { %v2174_v14 = vmul.f32 %v3201_v3, %v3825_v31  ;;  %v2200_v46 = vadd.f32 %v2833_v43, %v2186_v13 }
 0x7bf   : > { %v2872_v44 = vpack.c.bf16 %v2199_v2, %v2198_v4  ;;  %v2187_v21 = vmul.f32 %v2832_v32, %v2173_v6 }
 0x7c0   : > { %v3203_v19 = vpop.eup %3202  ;;  %v2188_v48 = vmul.f32 %v2832_v32, %v2174_v14 }
 0x7c1   : > { %v3205_v20 = vpop.eup %3204  ;;  %3059 = vmatprep.mubr.msk.bf16.mxu0 %vm626_vm0, %v2872_v44  ;;  %v2201_v47 = vadd.f32 %v2833_v43, %v2187_v21  ;;  %v2175_v45 = vmul.f32 %v3203_v19, %v3828_v24 }
 0x7c2   : > { %v2176_v51 = vmul.f32 %v3205_v20, %v3837_v9  ;;  %v2202_v23 = vadd.f32 %v2833_v43, %v2188_v48  ;;  %v3188_v9 = vld [vmem:[%s3995_s12 + $0x18] sm:$0xff]  }
 0x7c3   : > { %v2873_v52 = vpack.c.bf16 %v2201_v47, %v2200_v46  ;;  %v2189_v26 = vmul.f32 %v2832_v32, %v2175_v45  ;;  %3067 = vmatprep.subr.bf16.mxu1 %v3188_v9 }
 0x7c4   : > { %v3207_v29 = vpop.eup %3206  ;;  %v2190_v38 = vmul.f32 %v2832_v32, %v2176_v51  ;;  %3068 = vmatpush3.bf16.msra.mxu1 %v3188_v9 }
 0x7c5   : > { %3060 = vmatmul.mubr.msk.bf16.vlgmr.msra.gmra.mxu0 %vm626_vm0, %v2873_v52  ;;  %v2203_v31 = vadd.f32 %v2833_v43, %v2189_v26  ;;  %v2177_v17 = vmul.f32 %v3207_v29, %v3840_v10  ;;  %v3189_v10 = vld [vmem:[%s3995_s12 + $0x10] sm:$0xff]  }
 0x7c6   : > { %v2204_v57 = vadd.f32 %v2833_v43, %v2190_v38  ;;  %3069 = vmatprep.subr.bf16.mxu1 %v3189_v10 }
 0x7c7   : > { %v2874_v54 = vpack.c.bf16 %v2203_v31, %v2202_v23  ;;  %v2191_v56 = vmul.f32 %v2832_v32, %v2177_v17 }
 0x7c8   : > { %3070 = vmatpush3.bf16.msra.mxu1 %v3189_v10 }
 0x7c9   : > { %3063 = vmatprep.mubr.msk.bf16.mxu0 %vm626_vm0, %v2874_v54  ;;  %v2205_v59 = vadd.f32 %v2833_v43, %v2191_v56  ;;  %3071 = vmatprep.subr.bf16.mxu1 %v3190_v33 }
 0x7cb   : > { %v2875_v24 = vpack.c.bf16 %v2205_v59, %v2204_v57 }
 0x7cc   : > { %3072 = vmatpush3.bf16.msra.mxu1 %v3190_v33 }
 0x7cd   : > { %3064 = vmatmul.mubr.msk.bf16.gmra.mxu0 %vm626_vm0, %v2875_v24  ;;  %3073 = vmatprep.subr.bf16.mxu1 %v3191_v36 }
 0x7d0   : > { %3074 = vmatpush3.bf16.msra.mxu1 %v3191_v36 }
 0x885   : > { %v3061_v35 = vpop.f32.mrf.mxu0 }
 0x886   : > { %v3889_v63 = vadd.f32 %v3061_v35, %v2834_v62 }
 0x887   : > { %v2298_v0 = vpop.f32.mrf.mxu0 }
 0x888   : > { %v2331_v40 = vmul.f32 %v3889_v63, %v3889_v63  ;;  %v3893_v50 = vadd.f32 %v2834_v62, %v2298_v0 }
 0x889   : > { %v3062_v7 = vpop.f32.mrf.mxu0 }
 0x88a   : > { %v2339_v11 = vmul.f32 %v2331_v40, %v3889_v63  ;;  %v2329_v12 = vmul.f32 %v3893_v50, %v3893_v50  ;;  %v3898_v16 = vadd.f32 %v3062_v7, %v2834_v62 }
 0x88b   : > { %v2301_v5 = vpop.f32.mrf.mxu0 }
 0x88c   : > { %v2347_v25 = vmul.f32 0.044715, %v2339_v11  ;;  %v2337_v27 = vmul.f32 %v2329_v12, %v3893_v50  ;;  %v2332_v28 = vmul.f32 %v3898_v16, %v3898_v16  ;;  %v3903_v32 = vadd.f32 %v2834_v62, %v2301_v5 }
 0x88d   : > { %v3065_v41 = vpop.f32.mrf.mxu0 }
 0x88e   : > { %v2355_v37 = vadd.f32 %v2347_v25, %v3889_v63  ;;  %v2345_v42 = vmul.f32 0.044715, %v2337_v27  ;;  %v2340_v22 = vmul.f32 %v2332_v28, %v3898_v16  ;;  %v2330_v43 = vmul.f32 %v3903_v32, %v3903_v32 }
 0x88f   : > { %v3909_v49 = vadd.f32 %v3065_v41, %v2834_v62  ;;  %v2314_v1 = vpop.f32.mrf.mxu0 }
 0x890   : > { %v2363_v18 = vmul.f32 0.7978846, %v2355_v37  ;;  %v2353_v3 = vadd.f32 %v2345_v42, %v3893_v50  ;;  %v2348_v4 = vmul.f32 0.044715, %v2340_v22  ;;  %v2338_v2 = vmul.f32 %v2330_v43, %v3903_v32 }
 0x891   : > { %v2335_v6 = vmul.f32 %v3909_v49, %v3909_v49  ;;  %v3915_v13 = vadd.f32 %v2834_v62, %v2314_v1  ;;  %v3066_v14 = vpop.f32.mrf.mxu0 }
 0x892   : > { %v2361_v44 = vmul.f32 0.7978846, %v2353_v3  ;;  %v2356_v21 = vadd.f32 %v2348_v4, %v3898_v16  ;;  %v2346_v19 = vmul.f32 0.044715, %v2338_v2  ;;  %3208 = vtanh.f32 %v2363_v18 }
 0x893   : > { %v2343_v20 = vmul.f32 %v2335_v6, %v3909_v49  ;;  %v2333_v46 = vmul.f32 %v3915_v13, %v3915_v13  ;;  %v3921_v47 = vadd.f32 %v3066_v14, %v2834_v62  ;;  %v2317_v45 = vpop.f32.mrf.mxu0 }
 0x894   : > { %v2364_v48 = vmul.f32 0.7978846, %v2356_v21  ;;  %v2354_v51 = vadd.f32 %v2346_v19, %v3903_v32  ;;  %v2318_v52 = vadd.f32 %v2834_v62, %v2317_v45  ;;  %3210 = vtanh.f32 %v2361_v44 }
 0x895   : > { %v2351_v26 = vmul.f32 0.044715, %v2343_v20  ;;  %v2341_v29 = vmul.f32 %v2333_v46, %v3915_v13  ;;  %v2336_v23 = vmul.f32 %v3921_v47, %v3921_v47 }
 0x896   : > { %3212 = vtanh.f32 %v2364_v48  ;;  %v2362_v31 = vmul.f32 0.7978846, %v2354_v51  ;;  %v2334_v17 = vmul.f32 %v2318_v52, %v2318_v52 }
 0x897   : > { %v2359_v38 = vadd.f32 %v2351_v26, %v3909_v49  ;;  %v2349_v54 = vmul.f32 0.044715, %v2341_v29  ;;  %v2344_v56 = vmul.f32 %v2336_v23, %v3921_v47 }
 0x898   : > { %v2342_v57 = vmul.f32 %v2334_v17, %v2318_v52  ;;  %3214 = vtanh.f32 %v2362_v31  ;;  %v3269_v17 = vmov 0  }
 0x899   : > { %v2367_v59 = vmul.f32 0.7978846, %v2359_v38  ;;  %v2357_v24 = vadd.f32 %v2349_v54, %v3915_v13  ;;  %v2352_v9 = vmul.f32 0.044715, %v2344_v56  ;;  %3185 = vset.pattern.permute.xlu0 %v3269_v17  ;;  %v2857_v38 = vld [vmem:[%s3996_s13] ss:$0 sm:$0xff] }
 0x89a   : > { %v2350_v10 = vmul.f32 0.044715, %v2342_v57 }
 0x89b   : > { %3216 = vtanh.f32 %v2367_v59  ;;  %v2365_v33 = vmul.f32 0.7978846, %v2357_v24  ;;  %v2360_v36 = vadd.f32 %v2352_v9, %v3921_v47 }
 0x89c   : > { %v2358_v62 = vadd.f32 %v2350_v10, %v2318_v52 }
 0x89d   : > { %3218 = vtanh.f32 %v2365_v33  ;;  %v2368_v35 = vmul.f32 0.7978846, %v2360_v36 }
 0x89e   : > { %v2366_v0 = vmul.f32 0.7978846, %v2358_v62 }
 0x89f   : > { %3220 = vtanh.f32 %v2368_v35  ;;  %v3209_v40 = vpop.eup %3208 }
 0x8a0   : > { %3222 = vtanh.f32 %v2366_v0  ;;  %v2379_v5 = vadd.f32 1.0, %v3209_v40 }
 0x8a1   : > { %v3211_v7 = vpop.eup %3210 }
 0x8a2   : > { %v2377_v11 = vadd.f32 1.0, %v3211_v7  ;;  %v2387_v42 = vmul.f32 0.5, %v2379_v5 }
 0x8a3   : > { %v3213_v12 = vpop.eup %3212 }
 0x8a4   : > { %v2380_v25 = vadd.f32 1.0, %v3213_v12  ;;  %v2385_v37 = vmul.f32 0.5, %v2377_v11  ;;  %v2395_v2 = vmul.f32 %v2387_v42, %v3889_v63 }
 0x8a5   : > { %v3215_v27 = vpop.eup %3214 }
 0x8a6   : > { %v2388_v28 = vmul.f32 0.5, %v2380_v25  ;;  %v2378_v41 = vadd.f32 1.0, %v3215_v27  ;;  %v2393_v3 = vmul.f32 %v2385_v37, %v3893_v50 }
 0x8a8   : > { %v3217_v22 = vpop.eup %3216  ;;  %v2386_v43 = vmul.f32 0.5, %v2378_v41  ;;  %v2396_v1 = vmul.f32 %v2388_v28, %v3898_v16 }
 0x8a9   : > { %v2383_v6 = vadd.f32 1.0, %v3217_v22 }
 0x8aa   : > { %v3219_v18 = vpop.eup %3218  ;;  %v2394_v4 = vmul.f32 %v2386_v43, %v3903_v32  ;;  %v2877_v46 = vpack.c.bf16 %v2396_v1, %v2395_v2 }
 0x8ab   : > { %v2381_v14 = vadd.f32 1.0, %v3219_v18  ;;  %v2391_v16 = vmul.f32 0.5, %v2383_v6 }
 0x8ac   : > { %v3221_v44 = vpop.eup %3220  ;;  %v2876_v21 = vpack.c.bf16 %v2394_v4, %v2393_v3 }
 0x8ad   : > { %v3223_v19 = vpop.eup %3222  ;;  %v2384_v20 = vadd.f32 1.0, %v3221_v44  ;;  %v2389_v45 = vmul.f32 0.5, %v2381_v14  ;;  %v2399_v29 = vmul.f32 %v2391_v16, %v3909_v49  ;;  %v2858_v49 = vld [vmem:[%s3997_s14] ss:$0 sm:$0xff] }
 0x8ae   : > { %v2382_v48 = vadd.f32 1.0, %v3223_v19  ;;  %3075 = vmatprep.mubr.msk.bf16.mxu1 %vm2453_vm5, %v2876_v21 }
 0x8af   : > { %v2392_v51 = vmul.f32 0.5, %v2384_v20  ;;  %3076 = vmatmul.mubr.msk.bf16.vlgmr.msra.gmra.mxu1 %vm2453_vm5, %v2877_v46  ;;  %v2397_v63 = vmul.f32 %v2389_v45, %v3915_v13  ;;  %v2619_v20 = vand.u32 127, %v1297_v58 }
 0x8b0   : > { %v2390_v50 = vmul.f32 0.5, %v2382_v48 }
 0x8b1   : > { %v2400_v32 = vmul.f32 %v2392_v51, %v3921_v47  ;;  %v2622_v48 = vsub.s32 %v2619_v20, %v3592_v60 }
 0x8b2   : > { %v2398_v26 = vmul.f32 %v2390_v50, %v2318_v52 }
 0x8b3   : > { %v2879_v31 = vpack.c.bf16 %v2400_v32, %v2399_v29 }
 0x8b4   : > { %v2878_v23 = vpack.c.bf16 %v2398_v26, %v2397_v63 }
 0x8b6   : > { %3079 = vmatprep.mubr.msk.bf16.mxu1 %vm2453_vm5, %v2878_v23 }
 0x8b7   : > { %3080 = vmatmul.mubr.msk.bf16.gmra.mxu1 %vm2453_vm5, %v2879_v31 }
 0x96f   : > { %v3077_v54 = vpop.f32.mrf.mxu1 }
 0x970   : > { %v2533_v47 = vadd.f32 %v3077_v54, %v3772_v15 }
 0x971   : > { %v2500_v56 = vpop.f32.mrf.mxu1 }
 0x972   : > { %v2547_v13 = vadd.f32 %v2857_v38, %v2533_v47  ;;  %v2531_v52 = vadd.f32 %v2500_v56, %v3770_v53 }
 0x973   : > { %v3078_v57 = vpop.f32.mrf.mxu1 }
 0x974   : > { %v2545_v59 = vadd.f32 %v2857_v38, %v2531_v52  ;;  %v2534_v24 = vadd.f32 %v3078_v57, %v3780_v34  ;;  %v2562_v9 = vmul.f32 %v2858_v49, %v2547_v13 }
 0x975   : > { %v2503_v10 = vpop.f32.mrf.mxu1 }
 0x976   : > { %v2548_v33 = vadd.f32 %v2857_v38, %v2534_v24  ;;  %v2532_v36 = vadd.f32 %v2503_v10, %v3774_v30  ;;  %v2574_v62 = vsel %vm626_vm0, %v2562_v9, 0.0  ;;  %v2560_v15 = vmul.f32 %v2858_v49, %v2545_v59 }
 0x977   : > { %2575 = vadd.xlane.f32.xlu0 %v2574_v62  ;;  %v3081_v35 = vpop.f32.mrf.mxu1 }
 0x978   : > { %v2546_v0 = vadd.f32 %v2857_v38, %v2532_v36  ;;  %v2537_v40 = vadd.f32 %v3081_v35, %v3794_v39  ;;  %v2563_v7 = vmul.f32 %v2858_v49, %v2548_v33  ;;  %v2568_v53 = vsel %vm626_vm0, %v2560_v15, 0.0 }
 0x979   : > { %v2516_v11 = vpop.f32.mrf.mxu1 }
 0x97a   : > { %v2551_v12 = vadd.f32 %v2857_v38, %v2537_v40  ;;  %v2535_v34 = vadd.f32 %v2516_v11, %v3784_v55  ;;  %v2577_v5 = vsel %vm626_vm0, %v2563_v7, 0.0  ;;  %v2561_v25 = vmul.f32 %v2858_v49, %v2546_v0 }
 0x97b   : > { %2569 = vadd.xlane.f32.xlu0 %v2568_v53  ;;  %2578 = vadd.xlane.f32.xlu1 %v2577_v5  ;;  %v3082_v30 = vpop.f32.mrf.mxu1 }
 0x97c   : > { %v2549_v27 = vadd.f32 %v2857_v38, %v2535_v34  ;;  %v2538_v28 = vadd.f32 %v3082_v30, %v3796_v61  ;;  %v2566_v41 = vmul.f32 %v2858_v49, %v2551_v12  ;;  %v2571_v42 = vsel %vm626_vm0, %v2561_v25, 0.0 }
 0x97d   : > { %v2519_v37 = vpop.f32.mrf.mxu1 }
 0x97e   : > { %v2536_v39 = vadd.f32 %v2519_v37, %v3788_v8  ;;  %v2586_v22 = vsel %vm626_vm0, %v2566_v41, 0.0  ;;  %v2564_v43 = vmul.f32 %v2858_v49, %v2549_v27  ;;  %v2552_v55 = vadd.f32 %v2857_v38, %v2538_v28  ;;  %v2859_v8 = vld [vmem:[#allocation3] ss:$0 sm:$0xff] }
 0x97f   : > { %2572 = vadd.xlane.f32.xlu1 %v2571_v42  ;;  %2587 = vadd.xlane.f32.xlu0 %v2586_v22 }
 0x980   : > { %v2550_v1 = vadd.f32 %v2857_v38, %v2536_v39  ;;  %v2580_v18 = vsel %vm626_vm0, %v2564_v43, 0.0  ;;  %v2567_v61 = vmul.f32 %v2858_v49, %v2552_v55 }
 0x982   : > { %v2565_v3 = vmul.f32 %v2858_v49, %v2550_v1  ;;  %v2589_v2 = vsel %vm626_vm0, %v2567_v61, 0.0 }
 0x983   : > { %2581 = vadd.xlane.f32.xlu0 %v2580_v18 }
 0x984   : > { %v2583_v4 = vsel %vm626_vm0, %v2565_v3, 0.0 }
 0x985   : > { %2584 = vadd.xlane.f32.xlu1 %v2583_v4 }
 0x989   : > { %2590 = vadd.xlane.f32.xlu1 %v2589_v2 }
 0x999   : > { %2599 = vperm.xlu0 %3185, %v2859_v8  }
 0xa00   : > { %v2576_v6 = vpop.xlane.xlu0 %2575 }
 0xa04   : > { %v2570_v14 = vpop.xlane.xlu0 %2569  ;;  %v2579_v44 = vpop.xlane.xlu1 %2578 }
 0xa08   : > { %v2588_v21 = vpop.xlane.xlu0 %2587  ;;  %v2573_v19 = vpop.xlane.xlu1 %2572 }
 0xa0c   : > { %v2582_v46 = vpop.xlane.xlu0 %2581 }
 0xa0e   : > { %v2585_v45 = vpop.xlane.xlu1 %2584 }
 0xa12   : > { %v2591_v38 = vpop.xlane.xlu1 %2590 }
 0xa14   : > { %v2600_v16 = vpop.permute.xlu0 %2599 }
 0xa15   : > { %v2602_v51 = vadd.f32 %v2600_v16, %v2570_v14  ;;  %v2603_v50 = vadd.f32 %v2600_v16, %v2573_v19  ;;  %v2604_v32 = vadd.f32 %v2600_v16, %v2576_v6  ;;  %v2605_v63 = vadd.f32 %v2600_v16, %v2579_v44 }
 0xa16   : > { %v2606_v26 = vadd.f32 %v2600_v16, %v2582_v46  ;;  %v2607_v29 = vadd.f32 %v2600_v16, %v2585_v45  ;;  %v2608_v54 = vadd.f32 %v2600_v16, %v2588_v21  ;;  %v2609_v58 = vadd.f32 %v2600_v16, %v2591_v38 }
 0xa17   : > { %v2623_v23 = vrot.slane %v2602_v51, %v2622_v48  ;;  %v2627_v31 = vrot.slane %v2603_v50, %v2622_v48  ;;  %v2631_v17 = vrot.slane %v2604_v32, %v2622_v48  ;;  %v2635_v47 = vrot.slane %v2605_v63, %v2622_v48 }
 0xa18   : > { %v2639_v56 = vrot.slane %v2606_v26, %v2622_v48  ;;  %v2643_v13 = vrot.slane %v2607_v29, %v2622_v48  ;;  %v2647_v57 = vrot.slane %v2608_v54, %v2622_v48  ;;  %v2651_v24 = vrot.slane %v2609_v58, %v2622_v48 }
 0xa19   : > { %v2653_v60 = vsel %vm2652_vm6, %v2627_v31, %v2623_v23 }
 0xa1a   : > { %v2655_v49 = vsel %vm2654_vm7, %v2631_v17, %v2653_v60 }
 0xa1b   : > { %v2657_v52 = vsel %vm2656_vm8, %v2635_v47, %v2655_v49 }
 0xa1c   : > { %v2659_v59 = vsel %vm2658_vm9, %v2639_v56, %v2657_v52 }
 0xa1d   : > { %v2661_v9 = vsel %vm2660_vm10, %v2643_v13, %v2659_v59 }
 0xa1e   : > { %v2663_v10 = vsel %vm2662_vm11, %v2647_v57, %v2661_v9 }
 0xa1f   : > { %v2665_v33 = vsel %vm2664_vm12, %v2651_v24, %v2663_v10 }
 0xa20   : > { %2667 = vst.msk [vmem:[%s3589_s19] sm:$0xff] %vm1390_vm3, %v2665_v33 }
 0xa21 PF: > { %s28_s27 = sadd.s32 1, %s3262_s27   ;;  %s4002_s23 = smov %s3254_s25 }
 0xa22   : > { %p25_p11 = scmp.ge.s32.totalorder %s28_s27, 6   ;;  %s4003_s24 = smov %s3258_s26 }
 0xa23   : > { %s4004_s25 = smov %s4007_s15  ;;  %s4005_s26 = smov %s4011_s28 }
 0xa24   :  { %27 = sbr.rel (!%p25_p11) target bundleno = 3 (0x3), region = 138 }

</bundles_post_ra>
